<compile_context>
chip_gen: v6e
topology: v6e:2x2x1
jax: 0.10.0
libtpu: 0.0.40
codegen_flags: <defaults>
</compile_context>

<pallas_src>
import math
from functools import partial

import jax
import jax.numpy as jnp
from jax.experimental import pallas as pl
from jax.experimental.pallas import tpu as pltpu

_GELU_K = math.sqrt(2.0 / math.pi)


def _round_up(x, m):
    return (x + m - 1) // m * m


def _vmem_capacity_bytes():
    """Physical VMEM per TensorCore (trace-time query with a safe fallback)."""
    try:
        cap = int(pltpu.get_tpu_info().vmem_capacity_bytes)
        if cap > 0:
            return cap
    except Exception:
        pass
    return 64 << 20          # conservative (v7x-sized) fallback


# --------------------------------------------------------------------------
# Tiled matmul + bias kernel (patch projection and classifier head)
# --------------------------------------------------------------------------
def _matmul_bias_kernel(x_ref, w_ref, b_ref, o_ref):
    o_ref[...] = (jnp.dot(x_ref[...], w_ref[...],
                          preferred_element_type=jnp.float32)
                  + b_ref[...]).astype(o_ref.dtype)


def matmul_bias(x, w, b, tm=512):
    """x: (M, K) bf16, w: (K, N) bf16, b: (1, N) f32 -> (M, N) f32."""
    M, K = x.shape
    _, N = w.shape
    tm = min(tm, M)          # tm=512 is a multiple of 8 when tm < M
    return pl.pallas_call(
        _matmul_bias_kernel,
        out_shape=jax.ShapeDtypeStruct((M, N), jnp.float32),
        grid=(pl.cdiv(M, tm),),
        in_specs=[pl.BlockSpec((tm, K), lambda i: (i, 0)),
                  pl.BlockSpec((K, N), lambda i: (0, 0)),
                  pl.BlockSpec((1, N), lambda i: (0, 0))],
        out_specs=pl.BlockSpec((tm, N), lambda i: (i, 0)),
        compiler_params=pltpu.CompilerParams(
            dimension_semantics=("parallel",)),
    )(x, w, b)


# --------------------------------------------------------------------------
# Fused encoder kernel: grid = (batch_blocks, layer); per step:
#   LN -> QKV (one matmul) -> batched MHA -> out-proj (one matmul)
#     -> residual -> LN -> MLP -> residual
# --------------------------------------------------------------------------
def _layernorm(v, w, b):
    mu = jnp.mean(v, axis=-1, keepdims=True)
    c = v - mu
    var = jnp.mean(c * c, axis=-1, keepdims=True)
    return c * jax.lax.rsqrt(var + 1e-5) * w + b


def _encoder_kernel(x_ref,
                    ln1_w_ref, ln1_b_ref, qkv_w_ref, qkv_b_ref,
                    ow_ref, ob_ref, ln2_w_ref, ln2_b_ref,
                    fc1_w_ref, fc1_b_ref, fc2_w_ref, fc2_b_ref,
                    o_ref, tok_ref,
                    *, num_heads, head_size, seq_valid):
    l = pl.program_id(1)

    @pl.when(l == 0)
    def _():
        tok_ref[...] = x_ref[...]          # residual stream -> VMEM (resident)

    x = tok_ref[...]                       # (Bb, S, D) f32
    Bb, S, D = x.shape
    nh, dh = num_heads, head_size
    M = Bb * S

    # ---------------- attention ----------------
    h = _layernorm(x, ln1_w_ref[0], ln1_b_ref[0]).astype(jnp.bfloat16)
    # One full-width (M, D) x (D, 3D) matmul (full MXU N dimension).
    qkv = jnp.dot(h.reshape(M, D), qkv_w_ref[0],
                  preferred_element_type=jnp.float32) + qkv_b_ref[0]   # (M, 3D)

    def to_heads(a):                       # (M, D) -> (Bb*nh, S, dh)
        a = a.astype(jnp.bfloat16).reshape(Bb, S, nh, dh)
        return jnp.transpose(a, (0, 2, 1, 3)).reshape(Bb * nh, S, dh)

    # D-aligned lane slices (lane-friendly), then split into heads.
    q = to_heads(qkv[:, 0 * D:1 * D])
    k = to_heads(qkv[:, 1 * D:2 * D])
    v = to_heads(qkv[:, 2 * D:3 * D])

    scores = jnp.einsum("bqd,bkd->bqk", q, k,
                        preferred_element_type=jnp.float32)
    scores = scores * (1.0 / math.sqrt(dh))
    if seq_valid < S:                      # mask padded key tokens
        kpos = jax.lax.broadcasted_iota(jnp.int32, (1, 1, S), 2)
        scores = jnp.where(kpos < seq_valid, scores, -1e30)
    scores = scores - jnp.max(scores, axis=-1, keepdims=True)
    e = jnp.exp(scores)
    probs = e * pl.reciprocal(jnp.sum(e, axis=-1, keepdims=True), approx=True)

    ctx = jnp.einsum("bqk,bkd->bqd", probs.astype(jnp.bfloat16), v,
                     preferred_element_type=jnp.float32)     # (Bb*nh, S, dh)
    # Heads -> lanes relayout, then ONE (M, D) x (D, D) output projection.
    ctx = jnp.transpose(ctx.astype(jnp.bfloat16).reshape(Bb, nh, S, dh),
                        (0, 2, 1, 3)).reshape(M, D)
    attn = jnp.dot(ctx, ow_ref[0],
                   preferred_element_type=jnp.float32) + ob_ref[0]    # (M, D)
    x = x + attn.reshape(Bb, S, D)

    # ---------------- MLP ----------------
    h2 = _layernorm(x, ln2_w_ref[0], ln2_b_ref[0]).astype(jnp.bfloat16)
    a = jnp.dot(h2.reshape(M, D), fc1_w_ref[0],
                preferred_element_type=jnp.float32) + fc1_b_ref[0]
    # TODO(synk): on v6e/v7x the GELU polynomial could run in bf16 (bf16 VALU);
    # kept in f32 here so numerics are identical on all generations.
    g = 0.5 * a * (1.0 + jnp.tanh(_GELU_K * (a + 0.044715 * a * a * a)))
    m = jnp.dot(g.astype(jnp.bfloat16), fc2_w_ref[0],
                preferred_element_type=jnp.float32) + fc2_b_ref[0]
    x = x + m.reshape(Bb, S, D)

    tok_ref[...] = x                       # carry to next layer

    @pl.when(l == pl.num_programs(1) - 1)
    def _():
        # Only the leading rows (row 0 = CLS) go back to HBM.
        o_ref[...] = x[:, :o_ref.shape[1], :].astype(o_ref.dtype)


def _encoder_vmem_bytes(b_blk, S, D, I, nh, wbytes_per_layer, out_rows=8):
    """Rough per-step VMEM footprint (double-buffered weights + activations)."""
    M = b_blk * S
    act = 4 * (b_blk * S * D              # residual stream scratch (f32)
               + M * 3 * D                # qkv (f32)
               + 2 * b_blk * nh * S * S   # scores + probs (f32)
               + M * I                    # MLP intermediate (f32)
               + 3 * M * D)               # misc bf16/f32 temporaries (slack)
    io = 2 * 4 * (b_blk * S * D + b_blk * out_rows * D)   # double-buffered I/O
    return 2 * wbytes_per_layer + act + io + (6 << 20)    # + Mosaic scratch


def _choose_batch_block(B, S, D, I, nh, wbytes_per_layer, cap, max_blk=32):
    """Largest divisor of B (<= max_blk) whose footprint fits under `cap`."""
    best = 1
    for cand in range(1, min(B, max_blk) + 1):
        if B % cand == 0 and _encoder_vmem_bytes(cand, S, D, I, nh,
                                                 wbytes_per_layer) <= cap:
            best = cand
    return best


def vit_encoder(tok, w, *, num_heads, head_size, seq_valid, out_rows=8):
    """tok: (B, S_pad, D) f32; w: dict of stacked (L, ...) per-layer weights.

    Returns (B, out_rows, D); row 0 of each image is the CLS token.
    """
    B, S, D = tok.shape
    L, _, I = w["fc1_w"].shape
    names = ["ln1_w", "ln1_b", "qkv_w", "qkv_b", "attn_ow", "attn_ob",
             "ln2_w", "ln2_b", "fc1_w", "fc1_b", "fc2_w", "fc2_b"]
    weights = [w[n] for n in names]
    wbytes = sum(int(a.nbytes) // L for a in weights)     # per-layer weight bytes

    cap = (_vmem_capacity_bytes() * 3) // 4               # headroom under physical
    b_blk = _choose_batch_block(B, S, D, I, num_heads, wbytes, cap)
    vmem_limit = int(min(max(_encoder_vmem_bytes(b_blk, S, D, I, num_heads,
                                                 wbytes, out_rows),
                             16 << 20), cap))

    def wspec(a):
        nd = a.ndim
        return pl.BlockSpec((1,) + a.shape[1:],
                            lambda b, l, _nd=nd: (l,) + (0,) * (_nd - 1))

    kernel = partial(_encoder_kernel, num_heads=num_heads,
                     head_size=head_size, seq_valid=seq_valid)

    # TODO(synk): when B // b_blk < 2 on a 2-TensorCore chip (v7x), add a second
    # "parallel" grid axis over query-sequence blocks so both cores get work.
    return pl.pallas_call(
        kernel,
        out_shape=jax.ShapeDtypeStruct((B, out_rows, D), jnp.float32),
        grid=(B // b_blk, L),
        in_specs=[pl.BlockSpec((b_blk, S, D), lambda b, l: (b, 0, 0))]
                 + [wspec(a) for a in weights],
        out_specs=pl.BlockSpec((b_blk, out_rows, D), lambda b, l: (b, 0, 0)),
        scratch_shapes=[pltpu.VMEM((b_blk, S, D), jnp.float32)],
        compiler_params=pltpu.CompilerParams(
            dimension_semantics=("parallel", "arbitrary"),
            vmem_limit_bytes=vmem_limit),
    )(tok, *weights)


# --------------------------------------------------------------------------
# Parameters (canonical f32, torch-like shapes, per-layer axis stacked)
# --------------------------------------------------------------------------
def init_vit_params(key, cfg):
    std = cfg["initializer_range"]
    H, C, P = cfg["hidden_size"], cfg["num_channels"], cfg["patch_size"]
    I, L, NC = cfg["intermediate_size"], cfg["num_hidden_layers"], cfg["num_classes"]
    N = (cfg["image_size"] // P) ** 2
    ks = iter(jax.random.split(key, 16))
    nrm = lambda shape: std * jax.random.normal(next(ks), shape, jnp.float32)

    return {
        "proj_w": nrm((H, C, P, P)),               # Conv2d weight (out,in,kh,kw)
        "proj_b": jnp.zeros((1, H), jnp.float32),
        # TODO(synk): torch uses trunc-normal for cls/pos; plain normal here.
        "cls": nrm((1, 1, H)),
        "pos": nrm((1, N + 1, H)),
        "clf_w": nrm((NC, H)),
        "clf_b": jnp.zeros((1, NC), jnp.float32),
        "ln1_w": jnp.ones((L, 1, H), jnp.float32),
        "ln1_b": jnp.zeros((L, 1, H), jnp.float32),
        "qkv_w": nrm((L, H, 3 * H)),               # x @ W -> [q | k | v]
        "qkv_b": jnp.zeros((L, 1, 3 * H), jnp.float32),
        "attn_ow": nrm((L, H, H)),
        "attn_ob": jnp.zeros((L, 1, H), jnp.float32),
        "ln2_w": jnp.ones((L, 1, H), jnp.float32),
        "ln2_b": jnp.zeros((L, 1, H), jnp.float32),
        "fc1_w": nrm((L, H, I)),
        "fc1_b": jnp.zeros((L, 1, I), jnp.float32),
        "fc2_w": nrm((L, I, H)),
        "fc2_b": jnp.zeros((L, 1, H), jnp.float32),
    }


def _prepare_encoder_weights(p):
    """Cast matmul weights to bf16; layouts are the canonical x @ W orientation."""
    return dict(
        ln1_w=p["ln1_w"], ln1_b=p["ln1_b"],
        qkv_w=p["qkv_w"].astype(jnp.bfloat16), qkv_b=p["qkv_b"],
        attn_ow=p["attn_ow"].astype(jnp.bfloat16), attn_ob=p["attn_ob"],
        ln2_w=p["ln2_w"], ln2_b=p["ln2_b"],
        fc1_w=p["fc1_w"].astype(jnp.bfloat16), fc1_b=p["fc1_b"],
        fc2_w=p["fc2_w"].astype(jnp.bfloat16), fc2_b=p["fc2_b"],
    )


# --------------------------------------------------------------------------
# Forward pass (Pallas) and a pure-JAX reference with identical numerics
# --------------------------------------------------------------------------
def _patchify(x, P):
    B, C, Hi, Wi = x.shape
    nH, nW = Hi // P, Wi // P
    return x.reshape(B, C, nH, P, nW, P).transpose(0, 2, 4, 1, 3, 5) \
            .reshape(B, nH * nW, C * P * P)


def vit_forward(x, params, cfg):
    B = x.shape[0]
    P, H = cfg["patch_size"], cfg["hidden_size"]
    nh = cfg["num_attention_heads"]
    dh = H // nh
    NC = cfg["num_classes"]

    patches = _patchify(x, P)                              # (B, N, C*P*P)
    N = patches.shape[1]
    w_proj = params["proj_w"].reshape(H, -1).T.astype(jnp.bfloat16)
    pe = matmul_bias(patches.reshape(B * N, -1).astype(jnp.bfloat16),
                     w_proj, params["proj_b"]).reshape(B, N, H)

    cls = jnp.broadcast_to(params["cls"], (B, 1, H))
    tok = jnp.concatenate([cls, pe], axis=1) + params["pos"]
    # hidden_dropout: identity (eval mode)

    S_real = N + 1
    S_pad = _round_up(S_real, 8)                           # sublane alignment
    if S_pad != S_real:
        tok = jnp.pad(tok, ((0, 0), (0, S_pad - S_real), (0, 0)))

    enc_w = _prepare_encoder_weights(params)
    enc_out = vit_encoder(tok, enc_w, num_heads=nh, head_size=dh,
                          seq_valid=S_real)                # (B, 8, H); row 0 = CLS

    cls_rep = enc_out[:, 0, :].astype(jnp.bfloat16)        # (B, H)

    NC_pad = _round_up(NC, 128)                            # lane-dense output stores
    clf_w = jnp.pad(params["clf_w"].T.astype(jnp.bfloat16),
                    ((0, 0), (0, NC_pad - NC)))
    clf_b = jnp.pad(params["clf_b"], ((0, 0), (0, NC_pad - NC)))
    logits = matmul_bias(cls_rep, clf_w, clf_b)[:, :NC]
    return logits


# ---- reference (same mixed-precision policy, standard ViT formulation) ----
def _mm(a, b):
    return jax.lax.dot_general(
        a.astype(jnp.bfloat16), b.astype(jnp.bfloat16),
        dimension_numbers=(((a.ndim - 1,), (0,)), ((), ())),
        preferred_element_type=jnp.float32)


def _bmm(eq, a, b):
    return jnp.einsum(eq, a.astype(jnp.bfloat16), b.astype(jnp.bfloat16),
                      preferred_element_type=jnp.float32)


def _ln_ref(v, w, b):
    mu = jnp.mean(v, axis=-1, keepdims=True)
    var = jnp.mean((v - mu) ** 2, axis=-1, keepdims=True)
    return (v - mu) / jnp.sqrt(var + 1e-5) * w + b


def _gelu_new(a):
    return 0.5 * a * (1.0 + jnp.tanh(_GELU_K * (a + 0.044715 * a ** 3)))


def vit_reference(x, p, cfg):
    B = x.shape[0]
    P, H = cfg["patch_size"], cfg["hidden_size"]
    nh = cfg["num_attention_heads"]
    dh = H // nh
    patches = _patchify(x, P)
    w_proj = p["proj_w"].reshape(H, -1).T
    t = _mm(patches, w_proj) + p["proj_b"]
    cls = jnp.broadcast_to(p["cls"], (B, 1, H))
    t = jnp.concatenate([cls, t], axis=1) + p["pos"]
    for l in range(p["qkv_w"].shape[0]):
        h = _ln_ref(t, p["ln1_w"][l], p["ln1_b"][l])
        qkv = _mm(h, p["qkv_w"][l]) + p["qkv_b"][l]
        q, k, v = qkv[..., :H], qkv[..., H:2 * H], qkv[..., 2 * H:]
        split = lambda a: a.reshape(B, -1, nh, dh).transpose(0, 2, 1, 3)
        q, k, v = split(q), split(k), split(v)
        s = _bmm("bhqd,bhkd->bhqk", q, k) / math.sqrt(dh)
        pr = jax.nn.softmax(s, axis=-1)
        ctx = _bmm("bhqk,bhkd->bhqd", pr, v).transpose(0, 2, 1, 3) \
                                            .reshape(B, -1, H)
        t = t + _mm(ctx, p["attn_ow"][l]) + p["attn_ob"][l]
        h2 = _ln_ref(t, p["ln2_w"][l], p["ln2_b"][l])
        m = _mm(_gelu_new(_mm(h2, p["fc1_w"][l]) + p["fc1_b"][l]),
                p["fc2_w"][l]) + p["fc2_b"][l]
        t = t + m
    return _mm(t[:, 0, :], p["clf_w"].T) + p["clf_b"]


# --------------------------------------------------------------------------
if __name__ == "__main__":
    cfg = dict(
        image_size=16,
        patch_size=4,
        num_channels=4,
        hidden_size=32,
        num_attention_heads=4,
        intermediate_size=64,
        num_hidden_layers=2,
        num_classes=10,
        hidden_dropout_prob=0.0,            # dropout -> identity (eval)
        attention_probs_dropout_prob=0.0,
        qkv_bias=True,
        initializer_range=0.02,
        use_faster_attention=True,
    )

    key = jax.random.PRNGKey(0)
    kx, kp = jax.random.split(key)
    x = jax.random.normal(
        kx, (2, cfg["num_channels"], cfg["image_size"], cfg["image_size"]),
        jnp.float32)
    params = init_vit_params(kp, cfg)

    fwd = jax.jit(partial(vit_forward, cfg=cfg))
    logits = jax.block_until_ready(fwd(x, params))
    ref = vit_reference(x, params, cfg)

    assert logits.shape == (2, cfg["num_classes"]), logits.shape
    max_err = jnp.max(jnp.abs(logits - ref))
    assert jnp.allclose(logits, ref, atol=2e-3, rtol=2e-3), max_err
    print("KERNEL_OK")
</pallas_src>

<mosaic_0001>
module attributes {stable_mosaic.version = 11 : i64} {
  func.func @_matmul_bias_kernel(%arg0: i32, %arg1: memref<32x64xbf16, #tpu.memory_space<vmem>>, %arg2: memref<64x32xbf16, #tpu.memory_space<vmem>>, %arg3: memref<1x32xf32, #tpu.memory_space<vmem>>, %arg4: memref<32x32xf32, #tpu.memory_space<vmem>>) attributes {dimension_semantics = [#tpu.dimension_semantics<parallel>], iteration_bounds = array<i64: 1>, scalar_prefetch = 0 : i64, scratch_operands = 0 : i64, tpu.core_type = #tpu.core_type<tc>, window_params = [{transform_indices = @transform_0, window_bounds = array<i64: 32, 64>}, {pipeline_mode = #tpu.pipeline_mode<synchronous>, transform_indices = @transform_1, window_bounds = array<i64: 64, 32>}, {pipeline_mode = #tpu.pipeline_mode<synchronous>, transform_indices = @transform_2, window_bounds = array<i64: 1, 32>}, {transform_indices = @transform_3, window_bounds = array<i64: 32, 32>}]} {
    %c0 = arith.constant 0 : index
    %c0_0 = arith.constant 0 : index
    %0 = vector.load %arg1[%c0, %c0_0] : memref<32x64xbf16, #tpu.memory_space<vmem>>, vector<32x64xbf16>
    %c0_1 = arith.constant 0 : index
    %c0_2 = arith.constant 0 : index
    %1 = vector.load %arg2[%c0_1, %c0_2] : memref<64x32xbf16, #tpu.memory_space<vmem>>, vector<64x32xbf16>
    %cst = arith.constant dense<0.000000e+00> : vector<32x32xf32>
    %2 = tpu.matmul %0, %1, %cst {dimension_numbers = #tpu.dot_dimension_numbers<[1], [0], [0], [1], [0, 0, 1, 1], [], []>} : vector<32x64xbf16>, vector<64x32xbf16>, vector<32x32xf32> -> vector<32x32xf32>
    %c0_3 = arith.constant 0 : index
    %c0_4 = arith.constant 0 : index
    %3 = vector.load %arg3[%c0_3, %c0_4] : memref<1x32xf32, #tpu.memory_space<vmem>>, vector<1x32xf32>
    %4 = vector.broadcast %3 : vector<1x32xf32> to vector<32x32xf32>
    %5 = arith.addf %2, %4 : vector<32x32xf32>
    %c0_5 = arith.constant 0 : index
    %c0_6 = arith.constant 0 : index
    %6 = vector.load %arg4[%c0_5, %c0_6] : memref<32x32xf32, #tpu.memory_space<vmem>>, vector<32x32xf32>
    tpu.vector_store %arg4[%c0_5, %c0_6], %5 {strides = array<i32>} : memref<32x32xf32, #tpu.memory_space<vmem>>, vector<32x32xf32>,
    return
  }
  func.func @transform_0(%arg0: i32) -> (i32, i32) {
    %c0_i32 = arith.constant 0 : i32
    %c0_i32_0 = arith.constant 0 : i32
    return %arg0, %c0_i32 : i32, i32
  }
  func.func @transform_1(%arg0: i32) -> (i32, i32) {
    %c0_i32 = arith.constant 0 : i32
    %c0_i32_0 = arith.constant 0 : i32
    %c0_i32_1 = arith.constant 0 : i32
    return %c0_i32, %c0_i32_0 : i32, i32
  }
  func.func @transform_2(%arg0: i32) -> (i32, i32) {
    %c0_i32 = arith.constant 0 : i32
    %c0_i32_0 = arith.constant 0 : i32
    %c0_i32_1 = arith.constant 0 : i32
    return %c0_i32, %c0_i32_0 : i32, i32
  }
  func.func @transform_3(%arg0: i32) -> (i32, i32) {
    %c0_i32 = arith.constant 0 : i32
    %c0_i32_0 = arith.constant 0 : i32
    return %arg0, %c0_i32 : i32, i32
  }
}

module attributes {stable_mosaic.version = 11 : i64} {
  func.func @_encoder_kernel(%arg0: i32, %arg1: i32, %arg2: memref<2x24x32xf32, #tpu.memory_space<vmem>>, %arg3: memref<1x1x32xf32, #tpu.memory_space<vmem>>, %arg4: memref<1x1x32xf32, #tpu.memory_space<vmem>>, %arg5: memref<1x32x96xbf16, #tpu.memory_space<vmem>>, %arg6: memref<1x1x96xf32, #tpu.memory_space<vmem>>, %arg7: memref<1x32x32xbf16, #tpu.memory_space<vmem>>, %arg8: memref<1x1x32xf32, #tpu.memory_space<vmem>>, %arg9: memref<1x1x32xf32, #tpu.memory_space<vmem>>, %arg10: memref<1x1x32xf32, #tpu.memory_space<vmem>>, %arg11: memref<1x32x64xbf16, #tpu.memory_space<vmem>>, %arg12: memref<1x1x64xf32, #tpu.memory_space<vmem>>, %arg13: memref<1x64x32xbf16, #tpu.memory_space<vmem>>, %arg14: memref<1x1x32xf32, #tpu.memory_space<vmem>>, %arg15: memref<2x8x32xf32, #tpu.memory_space<vmem>>, %arg16: memref<2x24x32xf32, #tpu.memory_space<vmem>>) attributes {dimension_semantics = [#tpu.dimension_semantics<parallel>, #tpu.dimension_semantics<arbitrary>], iteration_bounds = array<i64: 1, 2>, scalar_prefetch = 0 : i64, scratch_operands = 1 : i64, tpu.core_type = #tpu.core_type<tc>, window_params = [{transform_indices = @transform_0, window_bounds = array<i64: 2, 24, 32>}, {transform_indices = @transform_1, window_bounds = array<i64: 1, 1, 32>}, {transform_indices = @transform_2, window_bounds = array<i64: 1, 1, 32>}, {transform_indices = @transform_3, window_bounds = array<i64: 1, 32, 96>}, {transform_indices = @transform_4, window_bounds = array<i64: 1, 1, 96>}, {transform_indices = @transform_5, window_bounds = array<i64: 1, 32, 32>}, {transform_indices = @transform_6, window_bounds = array<i64: 1, 1, 32>}, {transform_indices = @transform_7, window_bounds = array<i64: 1, 1, 32>}, {transform_indices = @transform_8, window_bounds = array<i64: 1, 1, 32>}, {transform_indices = @transform_9, window_bounds = array<i64: 1, 32, 64>}, {transform_indices = @transform_10, window_bounds = array<i64: 1, 1, 64>}, {transform_indices = @transform_11, window_bounds = array<i64: 1, 64, 32>}, {transform_indices = @transform_12, window_bounds = array<i64: 1, 1, 32>}, {transform_indices = @transform_13, window_bounds = array<i64: 2, 8, 32>}]} {
    %c0_i32 = arith.constant 0 : i32
    %0 = arith.cmpi eq, %arg1, %c0_i32 : i32
    %1 = arith.extui %0 : i1 to i32
    %c0_i32_0 = arith.constant 0 : i32
    %2 = arith.cmpi ne, %1, %c0_i32_0 : i32
    scf.if %2 {
      %c0_66 = arith.constant 0 : index
      %c0_67 = arith.constant 0 : index
      %c0_68 = arith.constant 0 : index
      %151 = vector.load %arg2[%c0_66, %c0_67, %c0_68] : memref<2x24x32xf32, #tpu.memory_space<vmem>>, vector<2x24x32xf32>
      %c0_69 = arith.constant 0 : index
      %c0_70 = arith.constant 0 : index
      %c0_71 = arith.constant 0 : index
      %152 = vector.load %arg16[%c0_69, %c0_70, %c0_71] : memref<2x24x32xf32, #tpu.memory_space<vmem>>, vector<2x24x32xf32>
      tpu.vector_store %arg16[%c0_69, %c0_70, %c0_71], %151 {strides = array<i32>} : memref<2x24x32xf32, #tpu.memory_space<vmem>>, vector<2x24x32xf32>,
    } else {
    }
    %c0 = arith.constant 0 : index
    %c0_1 = arith.constant 0 : index
    %c0_2 = arith.constant 0 : index
    %3 = vector.load %arg16[%c0, %c0_1, %c0_2] : memref<2x24x32xf32, #tpu.memory_space<vmem>>, vector<2x24x32xf32>
    %c0_3 = arith.constant 0 : index
    %c0_4 = arith.constant 0 : index
    %c0_5 = arith.constant 0 : index
    %4 = vector.load %arg3[%c0_3, %c0_4, %c0_5] : memref<1x1x32xf32, #tpu.memory_space<vmem>>, vector<1x1x32xf32>
    %5 = vector.shape_cast %4 : vector<1x1x32xf32> to vector<1x32xf32>
    %c0_6 = arith.constant 0 : index
    %c0_7 = arith.constant 0 : index
    %c0_8 = arith.constant 0 : index
    %6 = vector.load %arg4[%c0_6, %c0_7, %c0_8] : memref<1x1x32xf32, #tpu.memory_space<vmem>>, vector<1x1x32xf32>
    %7 = vector.shape_cast %6 : vector<1x1x32xf32> to vector<1x32xf32>
    %cst = arith.constant dense<0.000000e+00> : vector<2x24xf32>
    %8 = vector.multi_reduction <add>, %3, %cst [2] : vector<2x24x32xf32> to vector<2x24xf32>
    %9 = vector.shape_cast %8 : vector<2x24xf32> to vector<2x24x1xf32>
    %cst_9 = arith.constant 3.200000e+01 : f32
    %10 = vector.broadcast %cst_9 : f32 to vector<2x24x1xf32>
    %11 = arith.divf %9, %10 : vector<2x24x1xf32>
    %12 = vector.broadcast %11 : vector<2x24x1xf32> to vector<2x24x32xf32>
    %13 = arith.subf %3, %12 : vector<2x24x32xf32>
    %14 = arith.mulf %13, %13 : vector<2x24x32xf32>
    %cst_10 = arith.constant dense<0.000000e+00> : vector<2x24xf32>
    %15 = vector.multi_reduction <add>, %14, %cst_10 [2] : vector<2x24x32xf32> to vector<2x24xf32>
    %16 = vector.shape_cast %15 : vector<2x24xf32> to vector<2x24x1xf32>
    %cst_11 = arith.constant 3.200000e+01 : f32
    %17 = vector.broadcast %cst_11 : f32 to vector<2x24x1xf32>
    %18 = arith.divf %16, %17 : vector<2x24x1xf32>
    %cst_12 = arith.constant 9.99999974E-6 : f32
    %19 = vector.broadcast %cst_12 : f32 to vector<2x24x1xf32>
    %20 = arith.addf %18, %19 : vector<2x24x1xf32>
    %21 = math.rsqrt %20 : vector<2x24x1xf32>
    %22 = vector.broadcast %21 : vector<2x24x1xf32> to vector<2x24x32xf32>
    %23 = arith.mulf %13, %22 : vector<2x24x32xf32>
    %24 = vector.shape_cast %5 : vector<1x32xf32> to vector<1x1x32xf32>
    %25 = vector.broadcast %24 : vector<1x1x32xf32> to vector<2x24x32xf32>
    %26 = arith.mulf %23, %25 : vector<2x24x32xf32>
    %27 = vector.shape_cast %7 : vector<1x32xf32> to vector<1x1x32xf32>
    %28 = vector.broadcast %27 : vector<1x1x32xf32> to vector<2x24x32xf32>
    %29 = arith.addf %26, %28 : vector<2x24x32xf32>
    %30 = arith.truncf %29 : vector<2x24x32xf32> to vector<2x24x32xbf16>
    %31 = vector.shape_cast %30 : vector<2x24x32xbf16> to vector<48x32xbf16>
    %c0_13 = arith.constant 0 : index
    %c0_14 = arith.constant 0 : index
    %c0_15 = arith.constant 0 : index
    %32 = vector.load %arg5[%c0_13, %c0_14, %c0_15] : memref<1x32x96xbf16, #tpu.memory_space<vmem>>, vector<1x32x96xbf16>
    %33 = vector.shape_cast %32 : vector<1x32x96xbf16> to vector<32x96xbf16>
    %cst_16 = arith.constant dense<0.000000e+00> : vector<48x96xf32>
    %34 = tpu.matmul %31, %33, %cst_16 {dimension_numbers = #tpu.dot_dimension_numbers<[1], [0], [0], [1], [0, 0, 1, 1], [], []>} : vector<48x32xbf16>, vector<32x96xbf16>, vector<48x96xf32> -> vector<48x96xf32>
    %c0_17 = arith.constant 0 : index
    %c0_18 = arith.constant 0 : index
    %c0_19 = arith.constant 0 : index
    %35 = vector.load %arg6[%c0_17, %c0_18, %c0_19] : memref<1x1x96xf32, #tpu.memory_space<vmem>>, vector<1x1x96xf32>
    %36 = vector.shape_cast %35 : vector<1x1x96xf32> to vector<1x96xf32>
    %37 = vector.broadcast %36 : vector<1x96xf32> to vector<48x96xf32>
    %38 = arith.addf %34, %37 : vector<48x96xf32>
    %39 = vector.extract_strided_slice %38 {offsets = [0, 0], sizes = [48, 32], strides = [1, 1]} : vector<48x96xf32> to vector<48x32xf32>
    %40 = arith.truncf %39 : vector<48x32xf32> to vector<48x32xbf16>
    %41 = vector.shape_cast %40 : vector<48x32xbf16> to vector<2x24x4x8xbf16>
    %42 = tpu.transpose %41, [0, 2, 1, 3] : vector<2x24x4x8xbf16> -> vector<2x4x24x8xbf16>
    %43 = vector.shape_cast %42 : vector<2x4x24x8xbf16> to vector<8x24x8xbf16>
    %44 = vector.extract_strided_slice %38 {offsets = [0, 32], sizes = [48, 32], strides = [1, 1]} : vector<48x96xf32> to vector<48x32xf32>
    %45 = arith.truncf %44 : vector<48x32xf32> to vector<48x32xbf16>
    %46 = vector.shape_cast %45 : vector<48x32xbf16> to vector<2x24x4x8xbf16>
    %47 = tpu.transpose %46, [0, 2, 1, 3] : vector<2x24x4x8xbf16> -> vector<2x4x24x8xbf16>
    %48 = vector.shape_cast %47 : vector<2x4x24x8xbf16> to vector<8x24x8xbf16>
    %49 = vector.extract_strided_slice %38 {offsets = [0, 64], sizes = [48, 32], strides = [1, 1]} : vector<48x96xf32> to vector<48x32xf32>
    %50 = arith.truncf %49 : vector<48x32xf32> to vector<48x32xbf16>
    %51 = vector.shape_cast %50 : vector<48x32xbf16> to vector<2x24x4x8xbf16>
    %52 = tpu.transpose %51, [0, 2, 1, 3] : vector<2x24x4x8xbf16> -> vector<2x4x24x8xbf16>
    %53 = vector.shape_cast %52 : vector<2x4x24x8xbf16> to vector<8x24x8xbf16>
    "tpu.trace_start"() <{level = 10 : i32, message = "bqd,bkd->bqk"}> : () -> ()
    %cst_20 = arith.constant dense<0.000000e+00> : vector<8x24x24xf32>
    %54 = tpu.matmul %43, %48, %cst_20 {dimension_numbers = #tpu.dot_dimension_numbers<[2], [2], [1], [1], [0, 0, 0, 1, 1, 1], [0], [0]>} : vector<8x24x8xbf16>, vector<8x24x8xbf16>, vector<8x24x24xf32> -> vector<8x24x24xf32>
    "tpu.trace_stop"() : () -> ()
    %cst_21 = arith.constant 0.353553385 : f32
    %55 = vector.broadcast %cst_21 : f32 to vector<8x24x24xf32>
    %56 = arith.mulf %54, %55 : vector<8x24x24xf32>
    %57 = tpu.iota {dimensions = array<i32: 2>} : vector<1x1x24xi32>
    %c17_i32 = arith.constant 17 : i32
    %58 = vector.broadcast %c17_i32 : i32 to vector<1x1x24xi32>
    %59 = arith.cmpi slt, %57, %58 : vector<1x1x24xi32>
    %cst_22 = arith.constant -1.000000e+30 : f32
    %60 = vector.shape_cast %59 : vector<1x1x24xi1> to vector<1x1x24xi1>
    %61 = vector.broadcast %60 : vector<1x1x24xi1> to vector<8x24x24xi1>
    %62 = vector.broadcast %cst_22 : f32 to vector<8x24x24xf32>
    %63 = arith.select %61, %56, %62 : vector<8x24x24xi1>, vector<8x24x24xf32>
    %cst_23 = arith.constant dense<0xFF800000> : vector<8x24xf32>
    %64 = vector.multi_reduction <maximumf>, %63, %cst_23 [2] : vector<8x24x24xf32> to vector<8x24xf32>
    %65 = vector.shape_cast %64 : vector<8x24xf32> to vector<8x24x1xf32>
    %66 = vector.broadcast %65 : vector<8x24x1xf32> to vector<8x24x24xf32>
    %67 = arith.subf %63, %66 : vector<8x24x24xf32>
    %68 = math.exp %67 : vector<8x24x24xf32>
    %cst_24 = arith.constant dense<0.000000e+00> : vector<8x24xf32>
    %69 = vector.multi_reduction <add>, %68, %cst_24 [2] : vector<8x24x24xf32> to vector<8x24xf32>
    %70 = vector.shape_cast %69 : vector<8x24xf32> to vector<8x24x1xf32>
    %71 = tpu.reciprocal %70 {approx = true} : vector<8x24x1xf32> -> vector<8x24x1xf32>
    %72 = vector.broadcast %71 : vector<8x24x1xf32> to vector<8x24x24xf32>
    %73 = arith.mulf %68, %72 : vector<8x24x24xf32>
    %74 = arith.truncf %73 : vector<8x24x24xf32> to vector<8x24x24xbf16>
    "tpu.trace_start"() <{level = 10 : i32, message = "bqk,bkd->bqd"}> : () -> ()
    %cst_25 = arith.constant dense<0.000000e+00> : vector<8x24x8xf32>
    %75 = tpu.matmul %74, %53, %cst_25 {dimension_numbers = #tpu.dot_dimension_numbers<[2], [1], [1], [2], [0, 0, 0, 1, 1, 2], [0], [0]>} : vector<8x24x24xbf16>, vector<8x24x8xbf16>, vector<8x24x8xf32> -> vector<8x24x8xf32>
    "tpu.trace_stop"() : () -> ()
    %76 = arith.truncf %75 : vector<8x24x8xf32> to vector<8x24x8xbf16>
    %77 = vector.shape_cast %76 : vector<8x24x8xbf16> to vector<2x4x24x8xbf16>
    %78 = tpu.transpose %77, [0, 2, 1, 3] : vector<2x4x24x8xbf16> -> vector<2x24x4x8xbf16>
    %79 = vector.shape_cast %78 : vector<2x24x4x8xbf16> to vector<48x32xbf16>
    %c0_26 = arith.constant 0 : index
    %c0_27 = arith.constant 0 : index
    %c0_28 = arith.constant 0 : index
    %80 = vector.load %arg7[%c0_26, %c0_27, %c0_28] : memref<1x32x32xbf16, #tpu.memory_space<vmem>>, vector<1x32x32xbf16>
    %81 = vector.shape_cast %80 : vector<1x32x32xbf16> to vector<32x32xbf16>
    %cst_29 = arith.constant dense<0.000000e+00> : vector<48x32xf32>
    %82 = tpu.matmul %79, %81, %cst_29 {dimension_numbers = #tpu.dot_dimension_numbers<[1], [0], [0], [1], [0, 0, 1, 1], [], []>} : vector<48x32xbf16>, vector<32x32xbf16>, vector<48x32xf32> -> vector<48x32xf32>
    %c0_30 = arith.constant 0 : index
    %c0_31 = arith.constant 0 : index
    %c0_32 = arith.constant 0 : index
    %83 = vector.load %arg8[%c0_30, %c0_31, %c0_32] : memref<1x1x32xf32, #tpu.memory_space<vmem>>, vector<1x1x32xf32>
    %84 = vector.shape_cast %83 : vector<1x1x32xf32> to vector<1x32xf32>
    %85 = vector.broadcast %84 : vector<1x32xf32> to vector<48x32xf32>
    %86 = arith.addf %82, %85 : vector<48x32xf32>
    %87 = vector.shape_cast %86 : vector<48x32xf32> to vector<2x24x32xf32>
    %88 = arith.addf %3, %87 : vector<2x24x32xf32>
    %c0_33 = arith.constant 0 : index
    %c0_34 = arith.constant 0 : index
    %c0_35 = arith.constant 0 : index
    %89 = vector.load %arg9[%c0_33, %c0_34, %c0_35] : memref<1x1x32xf32, #tpu.memory_space<vmem>>, vector<1x1x32xf32>
    %90 = vector.shape_cast %89 : vector<1x1x32xf32> to vector<1x32xf32>
    %c0_36 = arith.constant 0 : index
    %c0_37 = arith.constant 0 : index
    %c0_38 = arith.constant 0 : index
    %91 = vector.load %arg10[%c0_36, %c0_37, %c0_38] : memref<1x1x32xf32, #tpu.memory_space<vmem>>, vector<1x1x32xf32>
    %92 = vector.shape_cast %91 : vector<1x1x32xf32> to vector<1x32xf32>
    %cst_39 = arith.constant dense<0.000000e+00> : vector<2x24xf32>
    %93 = vector.multi_reduction <add>, %88, %cst_39 [2] : vector<2x24x32xf32> to vector<2x24xf32>
    %94 = vector.shape_cast %93 : vector<2x24xf32> to vector<2x24x1xf32>
    %cst_40 = arith.constant 3.200000e+01 : f32
    %95 = vector.broadcast %cst_40 : f32 to vector<2x24x1xf32>
    %96 = arith.divf %94, %95 : vector<2x24x1xf32>
    %97 = vector.broadcast %96 : vector<2x24x1xf32> to vector<2x24x32xf32>
    %98 = arith.subf %88, %97 : vector<2x24x32xf32>
    %99 = arith.mulf %98, %98 : vector<2x24x32xf32>
    %cst_41 = arith.constant dense<0.000000e+00> : vector<2x24xf32>
    %100 = vector.multi_reduction <add>, %99, %cst_41 [2] : vector<2x24x32xf32> to vector<2x24xf32>
    %101 = vector.shape_cast %100 : vector<2x24xf32> to vector<2x24x1xf32>
    %cst_42 = arith.constant 3.200000e+01 : f32
    %102 = vector.broadcast %cst_42 : f32 to vector<2x24x1xf32>
    %103 = arith.divf %101, %102 : vector<2x24x1xf32>
    %cst_43 = arith.constant 9.99999974E-6 : f32
    %104 = vector.broadcast %cst_43 : f32 to vector<2x24x1xf32>
    %105 = arith.addf %103, %104 : vector<2x24x1xf32>
    %106 = math.rsqrt %105 : vector<2x24x1xf32>
    %107 = vector.broadcast %106 : vector<2x24x1xf32> to vector<2x24x32xf32>
    %108 = arith.mulf %98, %107 : vector<2x24x32xf32>
    %109 = vector.shape_cast %90 : vector<1x32xf32> to vector<1x1x32xf32>
    %110 = vector.broadcast %109 : vector<1x1x32xf32> to vector<2x24x32xf32>
    %111 = arith.mulf %108, %110 : vector<2x24x32xf32>
    %112 = vector.shape_cast %92 : vector<1x32xf32> to vector<1x1x32xf32>
    %113 = vector.broadcast %112 : vector<1x1x32xf32> to vector<2x24x32xf32>
    %114 = arith.addf %111, %113 : vector<2x24x32xf32>
    %115 = arith.truncf %114 : vector<2x24x32xf32> to vector<2x24x32xbf16>
    %116 = vector.shape_cast %115 : vector<2x24x32xbf16> to vector<48x32xbf16>
    %c0_44 = arith.constant 0 : index
    %c0_45 = arith.constant 0 : index
    %c0_46 = arith.constant 0 : index
    %117 = vector.load %arg11[%c0_44, %c0_45, %c0_46] : memref<1x32x64xbf16, #tpu.memory_space<vmem>>, vector<1x32x64xbf16>
    %118 = vector.shape_cast %117 : vector<1x32x64xbf16> to vector<32x64xbf16>
    %cst_47 = arith.constant dense<0.000000e+00> : vector<48x64xf32>
    %119 = tpu.matmul %116, %118, %cst_47 {dimension_numbers = #tpu.dot_dimension_numbers<[1], [0], [0], [1], [0, 0, 1, 1], [], []>} : vector<48x32xbf16>, vector<32x64xbf16>, vector<48x64xf32> -> vector<48x64xf32>
    %c0_48 = arith.constant 0 : index
    %c0_49 = arith.constant 0 : index
    %c0_50 = arith.constant 0 : index
    %120 = vector.load %arg12[%c0_48, %c0_49, %c0_50] : memref<1x1x64xf32, #tpu.memory_space<vmem>>, vector<1x1x64xf32>
    %121 = vector.shape_cast %120 : vector<1x1x64xf32> to vector<1x64xf32>
    %122 = vector.broadcast %121 : vector<1x64xf32> to vector<48x64xf32>
    %123 = arith.addf %119, %122 : vector<48x64xf32>
    %cst_51 = arith.constant 5.000000e-01 : f32
    %124 = vector.broadcast %cst_51 : f32 to vector<48x64xf32>
    %125 = arith.mulf %124, %123 : vector<48x64xf32>
    %cst_52 = arith.constant 4.471500e-02 : f32
    %126 = vector.broadcast %cst_52 : f32 to vector<48x64xf32>
    %127 = arith.mulf %126, %123 : vector<48x64xf32>
    %128 = arith.mulf %127, %123 : vector<48x64xf32>
    %129 = arith.mulf %128, %123 : vector<48x64xf32>
    %130 = arith.addf %123, %129 : vector<48x64xf32>
    %cst_53 = arith.constant 0.797884583 : f32
    %131 = vector.broadcast %cst_53 : f32 to vector<48x64xf32>
    %132 = arith.mulf %131, %130 : vector<48x64xf32>
    %133 = math.tanh %132 : vector<48x64xf32>
    %cst_54 = arith.constant 1.000000e+00 : f32
    %134 = vector.broadcast %cst_54 : f32 to vector<48x64xf32>
    %135 = arith.addf %134, %133 : vector<48x64xf32>
    %136 = arith.mulf %125, %135 : vector<48x64xf32>
    %137 = arith.truncf %136 : vector<48x64xf32> to vector<48x64xbf16>
    %c0_55 = arith.constant 0 : index
    %c0_56 = arith.constant 0 : index
    %c0_57 = arith.constant 0 : index
    %138 = vector.load %arg13[%c0_55, %c0_56, %c0_57] : memref<1x64x32xbf16, #tpu.memory_space<vmem>>, vector<1x64x32xbf16>
    %139 = vector.shape_cast %138 : vector<1x64x32xbf16> to vector<64x32xbf16>
    %cst_58 = arith.constant dense<0.000000e+00> : vector<48x32xf32>
    %140 = tpu.matmul %137, %139, %cst_58 {dimension_numbers = #tpu.dot_dimension_numbers<[1], [0], [0], [1], [0, 0, 1, 1], [], []>} : vector<48x64xbf16>, vector<64x32xbf16>, vector<48x32xf32> -> vector<48x32xf32>
    %c0_59 = arith.constant 0 : index
    %c0_60 = arith.constant 0 : index
    %c0_61 = arith.constant 0 : index
    %141 = vector.load %arg14[%c0_59, %c0_60, %c0_61] : memref<1x1x32xf32, #tpu.memory_space<vmem>>, vector<1x1x32xf32>
    %142 = vector.shape_cast %141 : vector<1x1x32xf32> to vector<1x32xf32>
    %143 = vector.broadcast %142 : vector<1x32xf32> to vector<48x32xf32>
    %144 = arith.addf %140, %143 : vector<48x32xf32>
    %145 = vector.shape_cast %144 : vector<48x32xf32> to vector<2x24x32xf32>
    %146 = arith.addf %88, %145 : vector<2x24x32xf32>
    %c0_62 = arith.constant 0 : index
    %c0_63 = arith.constant 0 : index
    %c0_64 = arith.constant 0 : index
    %147 = vector.load %arg16[%c0_62, %c0_63, %c0_64] : memref<2x24x32xf32, #tpu.memory_space<vmem>>, vector<2x24x32xf32>
    tpu.vector_store %arg16[%c0_62, %c0_63, %c0_64], %146 {strides = array<i32>} : memref<2x24x32xf32, #tpu.memory_space<vmem>>, vector<2x24x32xf32>,
    %c1_i32 = arith.constant 1 : i32
    %148 = arith.cmpi eq, %arg1, %c1_i32 : i32
    %149 = arith.extui %148 : i1 to i32
    %c0_i32_65 = arith.constant 0 : i32
    %150 = arith.cmpi ne, %149, %c0_i32_65 : i32
    scf.if %150 {
      %151 = vector.extract_strided_slice %146 {offsets = [0, 0, 0], sizes = [2, 8, 32], strides = [1, 1, 1]} : vector<2x24x32xf32> to vector<2x8x32xf32>
      %c0_66 = arith.constant 0 : index
      %c0_67 = arith.constant 0 : index
      %c0_68 = arith.constant 0 : index
      %152 = vector.load %arg15[%c0_66, %c0_67, %c0_68] : memref<2x8x32xf32, #tpu.memory_space<vmem>>, vector<2x8x32xf32>
      tpu.vector_store %arg15[%c0_66, %c0_67, %c0_68], %151 {strides = array<i32>} : memref<2x8x32xf32, #tpu.memory_space<vmem>>, vector<2x8x32xf32>,
    } else {
    }
    return
  }
  func.func @transform_0(%arg0: i32, %arg1: i32) -> (i32, i32, i32) {
    %c0_i32 = arith.constant 0 : i32
    %c0_i32_0 = arith.constant 0 : i32
    %c0_i32_1 = arith.constant 0 : i32
    return %arg0, %c0_i32, %c0_i32_0 : i32, i32, i32
  }
  func.func @transform_1(%arg0: i32, %arg1: i32) -> (i32, i32, i32) {
    %c0_i32 = arith.constant 0 : i32
    %c0_i32_0 = arith.constant 0 : i32
    %c0_i32_1 = arith.constant 0 : i32
    return %arg1, %c0_i32, %c0_i32_0 : i32, i32, i32
  }
  func.func @transform_2(%arg0: i32, %arg1: i32) -> (i32, i32, i32) {
    %c0_i32 = arith.constant 0 : i32
    %c0_i32_0 = arith.constant 0 : i32
    %c0_i32_1 = arith.constant 0 : i32
    return %arg1, %c0_i32, %c0_i32_0 : i32, i32, i32
  }
  func.func @transform_3(%arg0: i32, %arg1: i32) -> (i32, i32, i32) {
    %c0_i32 = arith.constant 0 : i32
    %c0_i32_0 = arith.constant 0 : i32
    %c0_i32_1 = arith.constant 0 : i32
    return %arg1, %c0_i32, %c0_i32_0 : i32, i32, i32
  }
  func.func @transform_4(%arg0: i32, %arg1: i32) -> (i32, i32, i32) {
    %c0_i32 = arith.constant 0 : i32
    %c0_i32_0 = arith.constant 0 : i32
    %c0_i32_1 = arith.constant 0 : i32
    return %arg1, %c0_i32, %c0_i32_0 : i32, i32, i32
  }
  func.func @transform_5(%arg0: i32, %arg1: i32) -> (i32, i32, i32) {
    %c0_i32 = arith.constant 0 : i32
    %c0_i32_0 = arith.constant 0 : i32
    %c0_i32_1 = arith.constant 0 : i32
    return %arg1, %c0_i32, %c0_i32_0 : i32, i32, i32
  }
  func.func @transform_6(%arg0: i32, %arg1: i32) -> (i32, i32, i32) {
    %c0_i32 = arith.constant 0 : i32
    %c0_i32_0 = arith.constant 0 : i32
    %c0_i32_1 = arith.constant 0 : i32
    return %arg1, %c0_i32, %c0_i32_0 : i32, i32, i32
  }
  func.func @transform_7(%arg0: i32, %arg1: i32) -> (i32, i32, i32) {
    %c0_i32 = arith.constant 0 : i32
    %c0_i32_0 = arith.constant 0 : i32
    %c0_i32_1 = arith.constant 0 : i32
    return %arg1, %c0_i32, %c0_i32_0 : i32, i32, i32
  }
  func.func @transform_8(%arg0: i32, %arg1: i32) -> (i32, i32, i32) {
    %c0_i32 = arith.constant 0 : i32
    %c0_i32_0 = arith.constant 0 : i32
    %c0_i32_1 = arith.constant 0 : i32
    return %arg1, %c0_i32, %c0_i32_0 : i32, i32, i32
  }
  func.func @transform_9(%arg0: i32, %arg1: i32) -> (i32, i32, i32) {
    %c0_i32 = arith.constant 0 : i32
    %c0_i32_0 = arith.constant 0 : i32
    %c0_i32_1 = arith.constant 0 : i32
    return %arg1, %c0_i32, %c0_i32_0 : i32, i32, i32
  }
  func.func @transform_10(%arg0: i32, %arg1: i32) -> (i32, i32, i32) {
    %c0_i32 = arith.constant 0 : i32
    %c0_i32_0 = arith.constant 0 : i32
    %c0_i32_1 = arith.constant 0 : i32
    return %arg1, %c0_i32, %c0_i32_0 : i32, i32, i32
  }
  func.func @transform_11(%arg0: i32, %arg1: i32) -> (i32, i32, i32) {
    %c0_i32 = arith.constant 0 : i32
    %c0_i32_0 = arith.constant 0 : i32
    %c0_i32_1 = arith.constant 0 : i32
    return %arg1, %c0_i32, %c0_i32_0 : i32, i32, i32
  }
  func.func @transform_12(%arg0: i32, %arg1: i32) -> (i32, i32, i32) {
    %c0_i32 = arith.constant 0 : i32
    %c0_i32_0 = arith.constant 0 : i32
    %c0_i32_1 = arith.constant 0 : i32
    return %arg1, %c0_i32, %c0_i32_0 : i32, i32, i32
  }
  func.func @transform_13(%arg0: i32, %arg1: i32) -> (i32, i32, i32) {
    %c0_i32 = arith.constant 0 : i32
    %c0_i32_0 = arith.constant 0 : i32
    %c0_i32_1 = arith.constant 0 : i32
    return %arg0, %c0_i32, %c0_i32_0 : i32, i32, i32
  }
}

module attributes {stable_mosaic.version = 11 : i64} {
  func.func @_matmul_bias_kernel(%arg0: i32, %arg1: memref<2x32xbf16, #tpu.memory_space<vmem>>, %arg2: memref<32x128xbf16, #tpu.memory_space<vmem>>, %arg3: memref<1x128xf32, #tpu.memory_space<vmem>>, %arg4: memref<2x128xf32, #tpu.memory_space<vmem>>) attributes {dimension_semantics = [#tpu.dimension_semantics<parallel>], iteration_bounds = array<i64: 1>, scalar_prefetch = 0 : i64, scratch_operands = 0 : i64, tpu.core_type = #tpu.core_type<tc>, window_params = [{transform_indices = @transform_0, window_bounds = array<i64: 2, 32>}, {pipeline_mode = #tpu.pipeline_mode<synchronous>, transform_indices = @transform_1, window_bounds = array<i64: 32, 128>}, {pipeline_mode = #tpu.pipeline_mode<synchronous>, transform_indices = @transform_2, window_bounds = array<i64: 1, 128>}, {transform_indices = @transform_3, window_bounds = array<i64: 2, 128>}]} {
    %c0 = arith.constant 0 : index
    %c0_0 = arith.constant 0 : index
    %0 = vector.load %arg1[%c0, %c0_0] : memref<2x32xbf16, #tpu.memory_space<vmem>>, vector<2x32xbf16>
    %c0_1 = arith.constant 0 : index
    %c0_2 = arith.constant 0 : index
    %1 = vector.load %arg2[%c0_1, %c0_2] : memref<32x128xbf16, #tpu.memory_space<vmem>>, vector<32x128xbf16>
    %cst = arith.constant dense<0.000000e+00> : vector<2x128xf32>
    %2 = tpu.matmul %0, %1, %cst {dimension_numbers = #tpu.dot_dimension_numbers<[1], [0], [0], [1], [0, 0, 1, 1], [], []>} : vector<2x32xbf16>, vector<32x128xbf16>, vector<2x128xf32> -> vector<2x128xf32>
    %c0_3 = arith.constant 0 : index
    %c0_4 = arith.constant 0 : index
    %3 = vector.load %arg3[%c0_3, %c0_4] : memref<1x128xf32, #tpu.memory_space<vmem>>, vector<1x128xf32>
    %4 = vector.broadcast %3 : vector<1x128xf32> to vector<2x128xf32>
    %5 = arith.addf %2, %4 : vector<2x128xf32>
    %c0_5 = arith.constant 0 : index
    %c0_6 = arith.constant 0 : index
    %6 = vector.load %arg4[%c0_5, %c0_6] : memref<2x128xf32, #tpu.memory_space<vmem>>, vector<2x128xf32>
    tpu.vector_store %arg4[%c0_5, %c0_6], %5 {strides = array<i32>} : memref<2x128xf32, #tpu.memory_space<vmem>>, vector<2x128xf32>,
    return
  }
  func.func @transform_0(%arg0: i32) -> (i32, i32) {
    %c0_i32 = arith.constant 0 : i32
    %c0_i32_0 = arith.constant 0 : i32
    return %arg0, %c0_i32 : i32, i32
  }
  func.func @transform_1(%arg0: i32) -> (i32, i32) {
    %c0_i32 = arith.constant 0 : i32
    %c0_i32_0 = arith.constant 0 : i32
    %c0_i32_1 = arith.constant 0 : i32
    return %c0_i32, %c0_i32_0 : i32, i32
  }
  func.func @transform_2(%arg0: i32) -> (i32, i32) {
    %c0_i32 = arith.constant 0 : i32
    %c0_i32_0 = arith.constant 0 : i32
    %c0_i32_1 = arith.constant 0 : i32
    return %c0_i32, %c0_i32_0 : i32, i32
  }
  func.func @transform_3(%arg0: i32) -> (i32, i32) {
    %c0_i32 = arith.constant 0 : i32
    %c0_i32_0 = arith.constant 0 : i32
    return %arg0, %c0_i32 : i32, i32
  }
}

</mosaic_0001>

<bundles_post_ra>
// kernel: vit_forward.3
= control target key start
LH: loop header
LB: loop body
LE: loop exit
PB: predicated region body
PF: predicated region fallthrough
CT: control target
= control target key end

     0   :  { %vm68_vm0 = vcmask 523264   ;;  %vm124_vm1 = vcmask 261120   ;;  %s219_s1 = inlined_call_operand.vmem [shape: bf16[64,32], index: 1, kind: input, shape index: {}]   ;;  %s220_s0 = inlined_call_operand.vmem [shape: bf16[32,64], index: 0, kind: input, shape index: {}]   ;;  %s221_s2 = inlined_call_operand.vmem [shape: f32[1,32], index: 2, kind: input, shape index: {}]   ;;  %s222_s3 = inlined_call_operand.vmem [shape: f32[32,32], index: 3, kind: output, shape index: {}]  }
   0x1   :  { %v160_v0 = vld [vmem:[%s219_s1 + $0x18] sm:$0xff]   ;;  %v161_v1 = vld [vmem:[%s219_s1 + $0x10] sm:$0xff]   ;;  %v162_v2 = vld [vmem:[%s219_s1 + $0x8] sm:$0xff]  }
   0x2   :  { %148 = vmatprep.subr.bf16.mxu0 %v160_v0  ;;  %v164_v3 = vld [vmem:[%s220_s0] sm:$0xff]   ;;  %v165_v5 = vld [vmem:[%s220_s0 + $0x8] sm:$0xff]  }
   0x3   :  { %149 = vmatpush3.bf16.msra.mxu0 %v160_v0  ;;  %156 = vmatprep.mubr.msk.bf16.mxu0 %vm68_vm0, %v164_v3  ;;  %v163_v4 = vld [vmem:[%s219_s1] sm:$0xff]  }
   0x4   :  { %150 = vmatprep.subr.bf16.mxu0 %v161_v1  ;;  %v133_v6 = vld [vmem:[%s221_s2] ss:$0 sm:$0xff] }
   0x7   :  { %151 = vmatpush3.bf16.msra.mxu0 %v161_v1 }
   0x8   :  { %152 = vmatprep.subr.bf16.mxu0 %v162_v2 }
   0xb   :  { %153 = vmatpush3.bf16.msra.mxu0 %v162_v2 }
   0xc   :  { %154 = vmatprep.subr.bf16.mxu0 %v163_v4 }
   0xf   :  { %155 = vmatpush3.bf16.msra.mxu0 %v163_v4 }
  0x12   :  { %157 = vmatmul.mubr.msk.bf16.vlgmr.msra.gmra.mxu0 %vm68_vm0, %v165_v5 }
  0xd2   :  { %v158_v7 = vpop.f32.mrf.mxu0 }
  0xd3   :  { %v118_v8 = vadd.f32 %v158_v7, %v133_v6 }
  0xd4   :  { %v109_v9 = vpop.f32.mrf.mxu0 }
  0xd5   :  { %127 = vst.msk [vmem:[%s222_s3 + $0x10] sm:$0xff] %vm124_vm1, %v118_v8  ;;  %v110_v10 = vadd.f32 %v133_v6, %v109_v9 }
  0xd6   :  { %v159_v11 = vpop.f32.mrf.mxu0 }
  0xd7   :  { %125 = vst.msk [vmem:[%s222_s3] sm:$0xff] %vm124_vm1, %v110_v10  ;;  %v121_v12 = vadd.f32 %v159_v11, %v133_v6 }
  0xd8   :  { %v112_v13 = vpop.f32.mrf.mxu0 }
  0xd9   :  { %128 = vst.msk [vmem:[%s222_s3 + $0x18] sm:$0xff] %vm124_vm1, %v121_v12  ;;  %v113_v14 = vadd.f32 %v133_v6, %v112_v13 }
  0xdb   :  { %126 = vst.msk [vmem:[%s222_s3 + $0x8] sm:$0xff] %vm124_vm1, %v113_v14 }

// kernel: vit_forward.5
= control target key start
LH: loop header
LB: loop body
LE: loop exit
PB: predicated region body
PF: predicated region fallthrough
CT: control target
= control target key end

     0   :  { %v141_v1 = vmov 0.0   ;;  %vm142_vm0 = vmmov 0   ;;  %s179_s0 = inlined_call_operand.vmem [shape: bf16[2,32], index: 0, kind: input, shape index: {}]   ;;  %s180_s1 = inlined_call_operand.vmem [shape: bf16[32,128], index: 1, kind: input, shape index: {}]   ;;  %s181_s2 = inlined_call_operand.vmem [shape: f32[1,128], index: 2, kind: input, shape index: {}]   ;;  %s182_s3 = inlined_call_operand.hbm [shape: f32[2,128], index: 3, kind: output, shape index: {}]  }
   0x1   :  { %v117_v0 = vld [vmem:[%s180_s1 + $0x8] sm:$0xff]   ;;  %106 = vmatprep.subr.bf16.mxu0 %v141_v1  ;;  %v118_v2 = vld [vmem:[%s180_s1] sm:$0xff]   ;;  %110 = vmatprep.mubr.msk.bf16.mxu0 %vm142_vm0, %v141_v1 }
   0x2   :  { %107 = vmatpush3.bf16.msra.mxu0 %v117_v0 }
   0x3   :  { %108 = vmatprep.subr.bf16.mxu0 %v141_v1 }
   0x4   :  { %8 = vsyncpa [#allocation3], 0  ;;  %v16_v3 = vld [vmem:[%s179_s0] sm:$0x1]  ;;  %vm40_vm1 = vcmask 261120   ;;  %s143_s20 = smov [#allocation2]  }
   0x5   :  { %v99_v4 = vld [vmem:[%s181_s2] ss:$0 sm:$0xff]  ;;  %s91_s21 = sshll.u32 %s143_s20, 4  ;;  %s92_s21 = int_to_ptr.vmem [resolvable:$true] %s91_s21 }
   0x6   :  { %109 = vmatpush3.bf16.msra.mxu0 %v118_v2  ;;  %s119_s1 = scalar_lea.vmem %s92_s21, 32  ;;  %p124_p1 = scmp.lt.s32.totalorder %s92_s21, %s92_s21 }
   0x7   :  { %p120_p0 = scmp.ne.s32.totalorder %s92_s21, %s119_s1  ;;  %p125_p2 = scmp.lt.s32.totalorder %s119_s1, %s119_s1 }
   0x9   :  { %111 = vmatmul.mubr.msk.bf16.vlgmr.msra.gmra.mxu0 %vm40_vm1, %v16_v3  ;;  %p126_p3 = por %p125_p2, %p124_p1 }
   0xb   :  { %p127_p4 = pnand %p126_p3, %p120_p0 }
  0xc9   :  { %v78_v5 = vpop.f32.mrf.mxu0 }
  0xca   :  { %v79_v6 = vadd.f32 %v99_v4, %v78_v5 }
  0xcb   :  { %v112_v7 = vpop.f32.mrf.mxu0 }
  0xcc   :  { %84 = vst [vmem:[#allocation2] sm:$0x3] %v79_v6 }
  0xcd   :  { %v81_v8 = vpop.f32.mrf.mxu0 }
  0xce   :  { %130 = shalt.err (!%p127_p4)
}
  0xcf   :  { %94 = dma.vmem_to_hbm [thread:$0]  %s92_s21, 32, %s182_s3, [#allocation3]   ;;  %v113_v9 = vpop.f32.mrf.mxu0 }
  0xd0   :  { %139 = dma.done.wait [#allocation3], 32  }
  0xd1   :  { %140 = vsyncadd [#allocation3], 4294967264 }
  0xd2   :  { %98 = vsyncpa [#allocation3], 1 }

// kernel: vit_forward.4
= control target key start
LH: loop header
LB: loop body
LE: loop exit
PB: predicated region body
PF: predicated region fallthrough
CT: control target
= control target key end

     0   :  { %s6988_s25 = smov 0   ;;  %s6990_s26 = smov 0   ;;  %s8859_s0 = inlined_call_operand.vmem [shape: f32[2,24,32], index: 0, kind: input, shape index: {}]   ;;  %s8860_s1 = inlined_call_operand.vmem [shape: f32[2,1,32], index: 1, kind: input, shape index: {}]   ;;  %s8861_s2 = inlined_call_operand.vmem [shape: f32[2,1,32], index: 2, kind: input, shape index: {}]   ;;  %s8862_s3 = inlined_call_operand.vmem [shape: bf16[2,32,96], index: 3, kind: input, shape index: {}]   ;;  %s8863_s4 = inlined_call_operand.vmem [shape: f32[2,1,96], index: 4, kind: input, shape index: {}]   ;;  %s8864_s5 = inlined_call_operand.vmem [shape: bf16[2,32,32], index: 5, kind: input, shape index: {}]   ;;  %s8865_s6 = inlined_call_operand.vmem [shape: f32[2,1,32], index: 6, kind: input, shape index: {}]   ;;  %s8866_s7 = inlined_call_operand.vmem [shape: f32[2,1,32], index: 7, kind: input, shape index: {}]   ;;  %s8867_s8 = inlined_call_operand.vmem [shape: f32[2,1,32], index: 8, kind: input, shape index: {}]   ;;  %s8868_s9 = inlined_call_operand.vmem [shape: bf16[2,32,64], index: 9, kind: input, shape index: {}]   ;;  %s8869_s10 = inlined_call_operand.vmem [shape: f32[2,1,64], index: 10, kind: input, shape index: {}]   ;;  %s8870_s11 = inlined_call_operand.vmem [shape: bf16[2,64,32], index: 11, kind: input, shape index: {}]   ;;  %s8871_s12 = inlined_call_operand.vmem [shape: f32[2,1,32], index: 12, kind: input, shape index: {}]   ;;  %s8872_s13 = inlined_call_operand.vmem [shape: f32[2,8,32], index: 13, kind: output, shape index: {}]  }
   0x1   :  { %8898 = sst [smem:[#allocation18_spill]] %s8862_s3  ;;  %s6992_s27 = smov 0  }
   0x2   :  { %8899 = sst [smem:[#allocation19_spill]] %s8864_s5 }
   0x3   :  { %8900 = sst [smem:[#allocation20_spill]] %s8872_s13 }
   0x4 LB: > { %8901 = sst [smem:[#allocation3_spill]] %s6899_s26  ;;  %s32_s28 = sadd.s32 1, %s6899_s26  ;;  %s6903_s27 = sphi %s6992_s27, %s23_s27   ;;  %s6899_s26 = sphi %s6990_s26, %s8975_s26   ;;  %s6895_s25 = sphi %s6988_s25, %s8974_s25  }
   0x5   : > { %8902 = sst [smem:[#allocation4_spill]] %s6903_s27  ;;  %p6269_p0 = scmp.ge.s32.totalorder %s6903_s27, 1 }
   0x6   : > { %p33_p1 = scmp.ge.s32.totalorder %s32_s28, 2  ;;  %p505_p2 = scmp.lt.s32.totalorder %s6903_s27, 3 }
   0x8   : > { %s8977_s28 = smov (%p33_p1, %s32_s28), 0  ;;  %p506_p3 = pnand %p6269_p0, %p505_p2 }
   0x9   : > { %8903 = sst [smem:[#allocation5_spill]] %s8977_s28 }
   0xa   : > { %509 = sbr.rel (%p506_p3) target bundleno = 2791 (0xae7), region = 72 }
   0xf   : > { %p601_p4 = scmp.lt.s32.totalorder %s6895_s25, 1  ;;  %s8904_s3 = sld [smem:[#allocation18_spill]] }
  0x10   : > { %s8905_s5 = sld [smem:[#allocation19_spill]]  ;;  %p6278_p5 = scmp.ne.s32.totalorder %s6895_s25, 0 }
  0x11   : > { %s7010_s29 = scalar_select %p601_p4, %s6895_s25, 1 }
  0x13   : > { %s6384_s19 = sshll.u32 %s7010_s29, 4  ;;  %s625_s13 = scalar_lea.vmem %s8866_s7, %s7010_s29 }
  0x14   : > { %s628_s22 = scalar_lea.vmem %s8867_s8, %s7010_s29  ;;  %s644_s20 = scalar_lea.vmem %s8871_s12, %s7010_s29 }
  0x15   : > { %s7028_s30 = scalar_lea.vmem %s8904_s3, %s6384_s19  ;;  %s7050_s3 = scalar_lea.vmem %s8868_s9, %s6384_s19 }
  0x16   : > { %s7033_s26 = scalar_lea.vmem %s8905_s5, %s6384_s19  ;;  %s636_s5 = scalar_lea.vmem %s8869_s10, %s7010_s29 }
  0x17   : > { %8906 = sst [smem:[#allocation6_spill]] %s7033_s26  ;;  %s6387_s26 = sshll.u32 %s7010_s29, 5 }
  0x18   : > { %s7060_s16 = scalar_lea.vmem %s8870_s11, %s6387_s26  ;;  %655 = sbr.rel (%p6278_p5) target bundleno = 33 (0x21), region = 76 }
  0x1d   : > { %v656_v0 = vld [vmem:[%s8859_s0] sm:$0xff]  ;;  %vm662_vm0 = vcmask 261120   ;;  %v657_v1 = vld [vmem:[%s8859_s0 + $0x8] sm:$0xff]  ;;  %v658_v2 = vld [vmem:[%s8859_s0 + $0x10] sm:$0xff] }
  0x1e   : > { %663 = vst.msk [vmem:[#allocation2] sm:$0xff] %vm662_vm0, %v656_v0  ;;  %664 = vst.msk [vmem:[#allocation2 + $0x8] sm:$0xff] %vm662_vm0, %v657_v1  ;;  %v659_v3 = vld [vmem:[%s8859_s0 + $0x18] sm:$0xff]  ;;  %v660_v4 = vld [vmem:[%s8859_s0 + $0x20] sm:$0xff] }
  0x1f   : > { %665 = vst.msk [vmem:[#allocation2 + $0x10] sm:$0xff] %vm662_vm0, %v658_v2  ;;  %v661_v5 = vld [vmem:[%s8859_s0 + $0x28] sm:$0xff]  ;;  %666 = vst.msk [vmem:[#allocation2 + $0x18] sm:$0xff] %vm662_vm0, %v659_v3 }
  0x20   : > { %667 = vst.msk [vmem:[#allocation2 + $0x20] sm:$0xff] %vm662_vm0, %v660_v4  ;;  %668 = vst.msk [vmem:[#allocation2 + $0x28] sm:$0xff] %vm662_vm0, %v661_v5 }
  0x21 PF: > { %vm677_vm1 = vcmask 261120   ;;  %v6733_v48 = vld [vmem:[%s7028_s30 + $0x8] sm:$0xff]   ;;  %v8877_v49 = vmov 0.0   ;;  %vm6906_vm2 = vmmov 0   ;;  %v6734_v50 = vld [vmem:[%s7028_s30] sm:$0xff]   ;;  %s8907_s23 = scalar_lea.vmem %s8860_s1, %s7010_s29  ;;  %s8908_s14 = scalar_lea.vmem %s8861_s2, %s7010_s29  ;;  %vm3349_vm3 = vcmask 64512  }
  0x22   : > { %6476 = vmatprep.subr.bf16.mxu1 %v8877_v49  ;;  %6480 = vmatprep.mubr.msk.bf16.mxu1 %vm6906_vm2, %v8877_v49  ;;  %s8909_s15 = scalar_lea.vmem %s8863_s4, %s7010_s29  ;;  %s6907_s18 = smov 120   ;;  %vm4170_vm4 = vcmask 1043456   ;;  %vm3883_vm6 = vcmask 195584   ;;  %vm5584_vm7 = vcmask 130048   ;;  %vm5995_vm8 = vcmask 523264  }
  0x23   : > { %6477 = vmatpush3.bf16.msra.mxu1 %v6733_v48  ;;  %s6908_s17 = smov 112   ;;  %s6909_s21 = smov 104  }
  0x24   : > { %6478 = vmatprep.subr.bf16.mxu1 %v8877_v49  ;;  %s6910_s30 = smov 96   ;;  %s6914_s19 = smov 64  }
  0x25   : > { %v669_v6 = vld [vmem:[#allocation2] sm:$0xff]  ;;  %v670_v8 = vld [vmem:[#allocation2 + $0x8] sm:$0xff]  ;;  %s6915_s24 = smov 16   ;;  %s6916_s28 = smov 8  }
  0x26   : > { %v671_v7 = vld [vmem:[#allocation2 + $0x10] sm:$0xff]  ;;  %v678_v9 = vsel %vm677_vm1, %v669_v6, 0.0  ;;  %v672_v11 = vld [vmem:[#allocation2 + $0x18] sm:$0xff]  ;;  %v681_v14 = vsel %vm677_vm1, %v670_v8, 0.0  ;;  %p6379_p6 = scmp.ne.s32.totalorder %s6895_s25, 1 }
  0x27   : > { %v684_v10 = vsel %vm677_vm1, %v671_v7, 0.0  ;;  %v673_v12 = vld [vmem:[#allocation2 + $0x20] sm:$0xff]  ;;  %v674_v13 = vld [vmem:[#allocation2 + $0x28] sm:$0xff]  ;;  %679 = vadd.xlane.f32.xlu0 %v678_v9  ;;  %v687_v15 = vsel %vm677_vm1, %v672_v11, 0.0  ;;  %6479 = vmatpush3.bf16.msra.mxu1 %v6734_v50 }
  0x28   : > { %685 = vadd.xlane.f32.xlu1 %v684_v10  ;;  %v690_v16 = vsel %vm677_vm1, %v673_v12, 0.0  ;;  %v693_v17 = vsel %vm677_vm1, %v674_v13, 0.0 }
  0x2b   : > { %682 = vadd.xlane.f32.xlu0 %v681_v14 }
  0x2c   : > { %688 = vadd.xlane.f32.xlu1 %v687_v15 }
  0x2f   : > { %691 = vadd.xlane.f32.xlu0 %v690_v16 }
  0x30   : > { %694 = vadd.xlane.f32.xlu1 %v693_v17 }
  0xb0   : > { %v680_v18 = vpop.xlane.xlu0 %679 }
  0xb1   : > { %v686_v19 = vpop.xlane.xlu1 %685  ;;  %v697_v20 = vmul.f32 0.03125, %v680_v18 }
  0xb2   : > { %v699_v21 = vmul.f32 0.03125, %v686_v19 }
  0xb3   : > { %v7091_v22 = vsub.f32 %v669_v6, %v697_v20 }
  0xb4   : > { %v7093_v23 = vsub.f32 %v671_v7, %v699_v21  ;;  %v683_v24 = vpop.xlane.xlu0 %682  ;;  %v6279_v7 = vld [vmem:[%s8907_s23] ss:$0 sm:$0xff]  ;;  %s8963_s23 = sld [smem:[#allocation6_spill]] }
  0xb5   : > { %v689_v25 = vpop.xlane.xlu1 %688  ;;  %v698_v26 = vmul.f32 0.03125, %v683_v24  ;;  %v709_v28 = vmul.f32 %v7091_v22, %v7091_v22 }
  0xb6   : > { %v700_v27 = vmul.f32 0.03125, %v689_v25  ;;  %v711_v29 = vmul.f32 %v7093_v23, %v7093_v23 }
  0xb7   : > { %v704_v30 = vsub.f32 %v670_v8, %v698_v26  ;;  %v715_v32 = vsel %vm677_vm1, %v709_v28, 0.0 }
  0xb8   : > { %v7099_v31 = vsub.f32 %v672_v11, %v700_v27  ;;  %716 = vadd.xlane.f32.xlu0 %v715_v32  ;;  %v692_v33 = vpop.xlane.xlu0 %691  ;;  %v721_v35 = vsel %vm677_vm1, %v711_v29, 0.0 }
  0xb9   : > { %v695_v34 = vpop.xlane.xlu1 %694  ;;  %v701_v36 = vmul.f32 0.03125, %v692_v33  ;;  %v710_v38 = vmul.f32 %v704_v30, %v704_v30 }
  0xba   : > { %v702_v37 = vmul.f32 0.03125, %v695_v34  ;;  %v712_v39 = vmul.f32 %v7099_v31, %v7099_v31 }
  0xbb   : > { %v707_v40 = vsub.f32 %v673_v12, %v701_v36  ;;  %v718_v42 = vsel %vm677_vm1, %v710_v38, 0.0  ;;  %v6280_v12 = vld [vmem:[%s8908_s14] ss:$0 sm:$0xff]  ;;  %s6917_s14 = smov 24  }
  0xbc   : > { %v7105_v41 = vsub.f32 %v674_v13, %v702_v37  ;;  %722 = vadd.xlane.f32.xlu0 %v721_v35  ;;  %719 = vadd.xlane.f32.xlu1 %v718_v42  ;;  %v724_v43 = vsel %vm677_vm1, %v712_v39, 0.0  ;;  %v6281_v39 = vld [vmem:[%s8909_s15] ss:$0 sm:$0xff]  ;;  %s8971_s15 = scalar_lea.vmem %s8865_s6, %s7010_s29 }
  0xbd   : > { %v713_v44 = vmul.f32 %v707_v40, %v707_v40 }
  0xbe   : > { %v714_v45 = vmul.f32 %v7105_v41, %v7105_v41 }
  0xbf   : > { %v727_v46 = vsel %vm677_vm1, %v713_v44, 0.0 }
  0xc0   : > { %725 = vadd.xlane.f32.xlu1 %v724_v43  ;;  %728 = vadd.xlane.f32.xlu0 %v727_v46  ;;  %v730_v47 = vsel %vm677_vm1, %v714_v45, 0.0 }
  0xc4   : > { %731 = vadd.xlane.f32.xlu1 %v730_v47 }
 0x141   : > { %v717_v51 = vpop.xlane.xlu0 %716 }
 0x142   : > { %v733_v52 = vmul.f32 0.03125, %v717_v51 }
 0x144   : > { %v739_v53 = vadd.f32 1e-05, %v733_v52 }
 0x145   : > { %v720_v54 = vpop.xlane.xlu1 %719  ;;  %v723_v55 = vpop.xlane.xlu0 %722 }
 0x146   : > { %6743 = vrsqrt.f32 %v739_v53  ;;  %v734_v56 = vmul.f32 0.03125, %v720_v54  ;;  %v735_v57 = vmul.f32 0.03125, %v723_v55 }
 0x148   : > { %v740_v58 = vadd.f32 1e-05, %v734_v56  ;;  %v741_v59 = vadd.f32 1e-05, %v735_v57 }
 0x149   : > { %v726_v60 = vpop.xlane.xlu1 %725  ;;  %v729_v61 = vpop.xlane.xlu0 %728 }
 0x14a   : > { %6745 = vrsqrt.f32 %v740_v58  ;;  %v736_v62 = vmul.f32 0.03125, %v726_v60  ;;  %v737_v63 = vmul.f32 0.03125, %v729_v61 }
 0x14b   : > { %6747 = vrsqrt.f32 %v741_v59 }
 0x14c   : > { %v742_v0 = vadd.f32 1e-05, %v736_v62  ;;  %v743_v1 = vadd.f32 1e-05, %v737_v63 }
 0x14d   : > { %v732_v2 = vpop.xlane.xlu1 %731 }
 0x14e   : > { %6749 = vrsqrt.f32 %v742_v0  ;;  %v738_v3 = vmul.f32 0.03125, %v732_v2  ;;  %v6911_v2 = vmov 1983009808  }
 0x14f   : > { %6751 = vrsqrt.f32 %v743_v1 }
 0x150   : > { %v744_v4 = vadd.f32 1e-05, %v738_v3  ;;  %v967_v3 = vunpack.c.l.s4 %v6911_v2 }
 0x152   : > { %6753 = vrsqrt.f32 %v744_v4  ;;  %v8879_v4 = vlaneseq }
 0x153   : > { %v6744_v5 = vpop.eup %6743 }
 0x154   : > { %v751_v6 = vmul.f32 %v6744_v5, %v7091_v22 }
 0x156   : > { %v763_v10 = vmul.f32 %v6279_v7, %v751_v6  ;;  %v968_v6 = vunpack.c.0.s8 %v967_v3 }
 0x157   : > { %v6746_v8 = vpop.eup %6745 }
 0x158   : > { %v752_v9 = vmul.f32 %v6746_v8, %v704_v30  ;;  %v6748_v11 = vpop.eup %6747  ;;  %v775_v16 = vadd.f32 %v6280_v12, %v763_v10 }
 0x159   : > { %v753_v18 = vmul.f32 %v6748_v11, %v7093_v23 }
 0x15a   : > { %v764_v13 = vmul.f32 %v6279_v7, %v752_v9  ;;  %v8880_v9 = vmov 0  }
 0x15b   : > { %v6750_v14 = vpop.eup %6749  ;;  %v765_v25 = vmul.f32 %v6279_v7, %v753_v18  ;;  %v7186_v10 = vpack.i.b16 %v8880_v9, %v8880_v9 }
 0x15c   : > { %v6752_v15 = vpop.eup %6751  ;;  %v776_v17 = vadd.f32 %v6280_v12, %v764_v13  ;;  %v754_v19 = vmul.f32 %v6750_v14, %v7099_v31 }
 0x15d   : > { %v755_v20 = vmul.f32 %v6752_v15, %v707_v40  ;;  %v777_v30 = vadd.f32 %v6280_v12, %v765_v25  ;;  %8911 = vst [vmem:[#allocation8_spill] sm:$0xff] %v7186_v10 }
 0x15e   : > { %v781_v21 = vpack.c.bf16 %v776_v17, %v775_v16  ;;  %v766_v22 = vmul.f32 %v6279_v7, %v754_v19 }
 0x15f   : > { %v6754_v24 = vpop.eup %6753  ;;  %v767_v27 = vmul.f32 %v6279_v7, %v755_v20 }
 0x160   : > { %6481 = vmatmul.mubr.msk.bf16.vlgmr.msra.gmra.mxu1 %vm677_vm1, %v781_v21  ;;  %v756_v26 = vmul.f32 %v6754_v24, %v7105_v41  ;;  %v778_v28 = vadd.f32 %v6280_v12, %v766_v22 }
 0x161   : > { %6484 = vmatprep.mubr.msk.bf16.mxu1 %vm6906_vm2, %v8877_v49  ;;  %v779_v23 = vadd.f32 %v6280_v12, %v767_v27 }
 0x162   : > { %v768_v29 = vmul.f32 %v6279_v7, %v756_v26  ;;  %v6388_v31 = vpack.c.bf16 %v778_v28, %v777_v30  ;;  %v970_v7 = vshrl.u32 %v8879_v4, 7 }
 0x163   : > { %v783_v34 = vpack.c.bf16 %v779_v23, %v778_v28 }
 0x164   : > { %v780_v32 = vadd.f32 %v6280_v12, %v768_v29  ;;  %v6913_v12 = vmov 1934713408   ;;  %v7191_v15 = vsub.s32 %v968_v6, %v970_v7 }
 0x165   : > { %v793_v36 = vunpack.c.h.b16 %v783_v34  ;;  %v998_v13 = vunpack.c.l.s4 %v6913_v12 }
 0x166   : > { %v784_v33 = vpack.c.bf16 %v780_v32, %v780_v32 }
 0x167   : > { %v999_v22 = vunpack.c.0.s8 %v998_v13 }
 0x168   : > { %6485 = vmatmul.mubr.msk.bf16.gmra.mxu1 %vm677_vm1, %v6388_v31  ;;  %v794_v35 = vunpack.c.l.b16 %v784_v33 }
 0x169   : > { %6488 = vmatprep.mubr.msk.bf16.mxu1 %vm6906_vm2, %v8877_v49  ;;  %v7210_v33 = vsub.s32 %v999_v22, %v970_v7 }
 0x16a   : > { %v808_v37 = vpack.c.b16 %v794_v35, %v793_v36 }
 0x170   : > { %6489 = vmatmul.mubr.msk.bf16.gmra.mxu1 %vm677_vm1, %v808_v37 }
 0x220   : > { %v864_v38 = vpop.f32.mrf.mxu1 }
 0x221   : > { %v865_v42 = vadd.f32 %v6281_v39, %v864_v38 }
 0x222   : > { %v6482_v40 = vpop.f32.mrf.mxu1 }
 0x224   : > { %v867_v41 = vpop.f32.mrf.mxu1 }
 0x225   : > { %v868_v43 = vadd.f32 %v6281_v39, %v867_v41 }
 0x226   : > { %v6483_v44 = vpop.f32.mrf.mxu1 }
 0x227   : > { %v7145_v45 = vpack.c.bf16 %v868_v43, %v865_v42 }
 0x228   : > { %v872_v46 = vpop.f32.mrf.mxu1 }
 0x229   : > { %893 = vrot.lane.b32.xlu1 %v7145_v45, %s6907_s18  ;;  %v873_v50 = vadd.f32 %v6281_v39, %v872_v46  ;;  %v915_v21 = vshrl.u32 %v7145_v45, 16 }
 0x22a   : > { %v6486_v47 = vpop.f32.mrf.mxu1 }
 0x22c   : > { %v875_v48 = vpop.f32.mrf.mxu1 }
 0x22d   : > { %v876_v51 = vadd.f32 %v6281_v39, %v875_v48 }
 0x22e   : > { %v6487_v52 = vpop.f32.mrf.mxu1 }
 0x22f   : > { %v7148_v53 = vpack.c.bf16 %v876_v51, %v873_v50 }
 0x230   : > { %v880_v54 = vpop.f32.mrf.mxu1 }
 0x231   : > { %901 = vrot.lane.b32.xlu1 %v7148_v53, %s6908_s17  ;;  %895 = vrot.lane.b32.xlu0 %v7148_v53, %s6907_s18  ;;  %v881_v57 = vadd.f32 %v6281_v39, %v880_v54 }
 0x232   : > { %v6490_v55 = vpop.f32.mrf.mxu1 }
 0x234   : > { %v883_v56 = vpop.f32.mrf.mxu1 }
 0x235   : > { %v884_v58 = vadd.f32 %v6281_v39, %v883_v56  ;;  %907 = vrot.lane.b32.xlu1 %v7148_v53, %s6909_s21  ;;  %899 = vrot.lane.b32.xlu0 %v7145_v45, %s6908_s17 }
 0x236   : > { %v6491_v59 = vpop.f32.mrf.mxu1 }
 0x237   : > { %v7154_v60 = vpack.c.bf16 %v884_v58, %v881_v57 }
 0x239   : > { %905 = vrot.lane.b32.xlu1 %v7145_v45, %s6909_s21  ;;  %897 = vrot.lane.b32.xlu0 %v7154_v60, %s6907_s18 }
 0x23d   : > { %903 = vrot.lane.b32.xlu1 %v7154_v60, %s6908_s17  ;;  %909 = vrot.lane.b32.xlu0 %v7154_v60, %s6909_s21 }
 0x241   : > { %1711 = vrot.lane.b32.xlu1 %v7148_v53, %s6910_s30 }
 0x245   : > { %1709 = vrot.lane.b32.xlu1 %v7145_v45, %s6910_s30 }
 0x29b   : > { %v894_v61 = vpop.permute.xlu1 %893 }
 0x29c   : > { %1715 = vrot.lane.b32.xlu0 %v894_v61, %s6910_s30  ;;  %v913_v11 = vpack.i.b16 %v894_v61, %v7145_v45  ;;  %v916_v18 = vshrl.u32 %v894_v61, 16 }
 0x29e   : > { %v965_v19 = vcombine.high %v913_v11, %v7186_v10  ;;  %v972_v25 = vrot.slane %v913_v11, %v7191_v15  ;;  %v917_v29 = vpack.i.b16 %v916_v18, %v915_v21 }
 0x2a0   : > { %v979_v30 = vrot.slane %v965_v19, %v7191_v15  ;;  %v1038_v39 = vrot.slane %v917_v29, %v7191_v15  ;;  %v1031_v43 = vcombine.high %v917_v29, %v7186_v10 }
 0x2a2   : > { %v1045_v52 = vrot.slane %v1031_v43, %v7191_v15 }
 0x2a3   : > { %v7165_v62 = vpop.permute.xlu1 %901  ;;  %v7167_v63 = vpop.permute.xlu0 %895 }
 0x2a4   : > { %1723 = vrot.lane.b32.xlu1 %v7165_v62, %s6910_s30  ;;  %1717 = vrot.lane.b32.xlu0 %v7167_v63, %s6910_s30 }
 0x2a7   : > { %v7173_v0 = vpop.permute.xlu1 %907  ;;  %v900_v1 = vpop.permute.xlu0 %899 }
 0x2a8   : > { %1729 = vrot.lane.b32.xlu0 %v7173_v0, %s6910_s30  ;;  %1721 = vrot.lane.b32.xlu1 %v900_v1, %s6910_s30  ;;  %v923_v20 = vshrl.u32 %v900_v1, 16  ;;  %v943_v43 = vpack.i.b16 %v7173_v0, %v7165_v62 }
 0x2ab   : > { %v906_v5 = vpop.permute.xlu1 %905  ;;  %v7180_v8 = vpop.permute.xlu0 %897 }
 0x2ac   : > { %1727 = vrot.lane.b32.xlu0 %v906_v5, %s6910_s30  ;;  %8910 = vst [vmem:[#allocation7_spill] sm:$0xff] %v7180_v8  ;;  %1713 = vrot.lane.b32.xlu1 %v7154_v60, %s6910_s30  ;;  %v921_v16 = vpack.i.b16 %v906_v5, %v900_v1  ;;  %v924_v17 = vshrl.u32 %v906_v5, 16 }
 0x2ae   : > { %v925_v26 = vpack.i.b16 %v924_v17, %v923_v20  ;;  %v980_v27 = vcombine.high %v921_v16, %v7186_v10  ;;  %v987_v28 = vrot.slane %v921_v16, %v7191_v15 }
 0x2af   : > { %v7189_v14 = vpop.permute.xlu1 %903  ;;  %v7199_v24 = vpop.permute.xlu0 %909 }
 0x2b0   : > { %8912 = vst [vmem:[#allocation9_spill] sm:$0xff] %v7189_v14  ;;  %1719 = vrot.lane.b32.xlu0 %v7180_v8, %s6910_s30  ;;  %1725 = vrot.lane.b32.xlu1 %v7189_v14, %s6910_s30  ;;  %8913 = vst [vmem:[#allocation10_spill] sm:$0xff] %v7199_v24  ;;  %v994_v23 = vrot.slane %v980_v27, %v7191_v15  ;;  %v995_v32 = vcombine.low %v972_v25, %v987_v28 }
 0x2b1   : > { %v996_v31 = vcombine.high %v972_v25, %v987_v28  ;;  %v1053_v36 = vrot.slane %v925_v26, %v7191_v15  ;;  %v1046_v40 = vcombine.high %v925_v26, %v7186_v10 }
 0x2b2   : > { %v1011_v34 = vcombine.low %v979_v30, %v994_v23  ;;  %v1012_v35 = vcombine.high %v979_v30, %v994_v23  ;;  %v1003_v37 = vrot.slane %v995_v32, %v7210_v33 }
 0x2b3   : > { %v1010_v38 = vrot.slane %v996_v31, %v7210_v33  ;;  %v1061_v44 = vcombine.low %v1038_v39, %v1053_v36  ;;  %v1062_v46 = vcombine.high %v1038_v39, %v1053_v36  ;;  %v1060_v48 = vrot.slane %v1046_v40, %v7191_v15 }
 0x2b4   : > { %1731 = vrot.lane.b32.xlu0 %v7199_v24, %s6910_s30  ;;  %2527 = vrot.lane.b32.xlu1 %v7148_v53, %s6914_s19  ;;  %v1019_v41 = vrot.slane %v1011_v34, %v7210_v33  ;;  %v1026_v42 = vrot.slane %v1012_v35, %v7210_v33  ;;  %v946_v40 = vshrl.u32 %v7173_v0, 16  ;;  %s8972_s30 = sld [smem:[#allocation20_spill]] (!%p6379_p6) }
 0x2b5   : > { %v6288_v47 = vcombine.high %v1003_v37, %v1010_v38  ;;  %v1069_v54 = vrot.slane %v1061_v44, %v7210_v33  ;;  %v1076_v55 = vrot.slane %v1062_v46, %v7210_v33  ;;  %v1077_v58 = vcombine.low %v1045_v52, %v1060_v48 }
 0x2b6   : > { %v1377_v50 = vcombine.low %v1019_v41, %v1026_v42  ;;  %v6289_v51 = vcombine.high %v1019_v41, %v1026_v42  ;;  %v1078_v59 = vcombine.high %v1045_v52, %v1060_v48  ;;  %v945_v41 = vshrl.u32 %v7165_v62, 16 }
 0x2b7   : > { %v1376_v57 = vrot.slane %v6288_v47, %v7191_v15  ;;  %v1411_v2 = vcombine.low %v1069_v54, %v1076_v55  ;;  %v6290_v3 = vcombine.high %v1069_v54, %v1076_v55  ;;  %v938_v42 = vshrl.u32 %v7167_v63, 16 }
 0x2b8   : > { %2525 = vrot.lane.b32.xlu0 %v7145_v45, %s6914_s19  ;;  %2531 = vrot.lane.b32.xlu1 %v894_v61, %s6914_s19  ;;  %v1361_v45 = vcombine.low %v1003_v37, %v1010_v38  ;;  %v1384_v61 = vrot.slane %v1377_v50, %v7191_v15  ;;  %v1092_v7 = vrot.slane %v1078_v59, %v7210_v33  ;;  %v937_v44 = vshrl.u32 %v7148_v53, 16 }
 0x2b9   : > { %v1418_v12 = vrot.slane %v1411_v2, %v7191_v15  ;;  %v1426_v17 = vrot.slane %v6290_v3, %v7191_v15  ;;  %v947_v46 = vpack.i.b16 %v946_v40, %v945_v41  ;;  %v1119_v48 = vrot.slane %v943_v43, %v7191_v15 }
 0x2ba   : > { %v1368_v56 = vrot.slane %v1361_v45, %v7191_v15  ;;  %v935_v45 = vpack.i.b16 %v7167_v63, %v7148_v53  ;;  %v939_v47 = vpack.i.b16 %v938_v42, %v937_v44  ;;  %v961_v54 = vshrl.u32 %v7189_v14, 16 }
 0x2bb   : > { %v1443_v25 = vcombine.low %v1418_v12, %v1426_v17  ;;  %v1185_v50 = vrot.slane %v947_v46, %v7191_v15  ;;  %v962_v55 = vshrl.u32 %v7199_v24, 16  ;;  %v1112_v53 = vcombine.high %v943_v43, %v7186_v10 }
 0x2bc   : > { %2537 = vrot.lane.b32.xlu0 %v900_v1, %s6914_s19  ;;  %2533 = vrot.lane.b32.xlu1 %v7167_v63, %s6914_s19  ;;  %v1392_v1 = vrot.slane %v6289_v51, %v7191_v15  ;;  %v1393_v6 = vcombine.low %v1368_v56, %v1376_v57  ;;  %v1104_v51 = vrot.slane %v935_v45, %v7191_v15  ;;  %v953_v63 = vshrl.u32 %v7154_v60, 16 }
 0x2bd   : > { %v1450_v28 = vrot.slane %v1443_v25, %v7210_v33  ;;  %v1170_v52 = vrot.slane %v939_v47, %v7191_v15  ;;  %v963_v59 = vpack.i.b16 %v962_v55, %v961_v54  ;;  %v959_v3 = vpack.i.b16 %v7199_v24, %v7189_v14 }
 0x2be   : > { %v1401_v11 = vcombine.low %v1384_v61, %v1392_v1  ;;  %v1400_v13 = vrot.slane %v1393_v6, %v7210_v33  ;;  %v1097_v61 = vcombine.high %v935_v45, %v7186_v10  ;;  %v951_v12 = vpack.i.b16 %v7180_v8, %v7154_v60 }
 0x2bf   : > { %v1193_v56 = vcombine.low %v1170_v52, %v1185_v50  ;;  %v1194_v57 = vcombine.high %v1170_v52, %v1185_v50  ;;  %v1310_v17 = vcombine.high %v963_v59, %v7186_v10  ;;  %v1251_v40 = vrot.slane %v959_v3, %v7191_v15 }
 0x2c0   : > { %2543 = vrot.lane.b32.xlu0 %v906_v5, %s6914_s19  ;;  %2539 = vrot.lane.b32.xlu1 %v7165_v62, %s6914_s19  ;;  %v1085_v5 = vrot.slane %v1077_v58, %v7210_v33  ;;  %v1408_v16 = vrot.slane %v1401_v11, %v7210_v33  ;;  %v1127_v62 = vcombine.low %v1104_v51, %v1119_v48  ;;  %v954_v58 = vshrl.u32 %v7180_v8, 16 }
 0x2c1   : > { %v1201_v6 = vrot.slane %v1193_v56, %v7210_v33  ;;  %v1163_v11 = vcombine.high %v939_v47, %v7186_v10  ;;  %v1236_v45 = vrot.slane %v951_v12, %v7191_v15 }
 0x2c2   : > { %v1427_v18 = vcombine.low %v1085_v5, %v1092_v7  ;;  %v6291_v19 = vcombine.high %v1085_v5, %v1092_v7  ;;  %v7247_v20 = vcombine.high %v1400_v13, %v1408_v16  ;;  %v1409_v27 = vcombine.low %v1400_v13, %v1408_v16 }
 0x2c3   : > { %v1135_v1 = vrot.slane %v1127_v62, %v7210_v33  ;;  %v1208_v5 = vrot.slane %v1194_v57, %v7210_v33  ;;  %v955_v7 = vpack.i.b16 %v954_v58, %v953_v63  ;;  %v1126_v13 = vrot.slane %v1112_v53, %v7191_v15 }
 0x2c4   : > { %2545 = vrot.lane.b32.xlu1 %v7173_v0, %s6914_s19  ;;  %v1434_v21 = vrot.slane %v1427_v18, %v7191_v15  ;;  %v1442_v22 = vrot.slane %v6291_v19, %v7191_v15  ;;  %v1664_v32 = vshrl.u32 %v1409_v27, 16  ;;  %v1670_v31 = vshrl.u32 %v7247_v20, 16 }
 0x2c5   : > { %v1128_v0 = vcombine.high %v1104_v51, %v1119_v48  ;;  %v1178_v16 = vcombine.high %v947_v46, %v7186_v10  ;;  %v1111_v18 = vrot.slane %v1097_v61, %v7191_v15  ;;  %v1486_v25 = vcombine.low %v1201_v6, %v1208_v5 }
 0x2c6   : > { %v1451_v26 = vcombine.low %v1434_v21, %v1442_v22  ;;  %v1244_v21 = vcombine.high %v959_v3, %v7186_v10  ;;  %v1259_v62 = vcombine.low %v1236_v45, %v1251_v40 }
 0x2c7   : > { %v1142_v2 = vrot.slane %v1128_v0, %v7210_v33  ;;  %v1493_v43 = vrot.slane %v1486_v25, %v7191_v15  ;;  %v1260_v0 = vcombine.high %v1236_v45, %v1251_v40 }
 0x2c8   : > { %2529 = vrot.lane.b32.xlu1 %v7154_v60, %s6914_s19  ;;  %v1458_v29 = vrot.slane %v1451_v26, %v7210_v33  ;;  %v6293_v26 = vcombine.high %v1201_v6, %v1208_v5  ;;  %v1229_v60 = vcombine.high %v951_v12, %v7186_v10  ;;  %v1258_v41 = vrot.slane %v1244_v21, %v7191_v15 }
 0x2c9   : > { %v1461_v19 = vcombine.low %v1135_v1, %v1142_v2  ;;  %v6292_v22 = vcombine.high %v1135_v1, %v1142_v2  ;;  %v1267_v12 = vrot.slane %v1259_v62, %v7210_v33 }
 0x2ca   : > { %v1459_v30 = vcombine.low %v1450_v28, %v1458_v29  ;;  %v7253_v23 = vcombine.high %v1450_v28, %v1458_v29  ;;  %v1177_v28 = vrot.slane %v1163_v11, %v7191_v15  ;;  %v1317_v29 = vrot.slane %v963_v59, %v7191_v15 }
 0x2cb   : > { %v1476_v42 = vrot.slane %v6292_v22, %v7191_v15  ;;  %v1501_v44 = vrot.slane %v6293_v26, %v7191_v15  ;;  %v1243_v47 = vrot.slane %v1229_v60, %v7191_v15 }
 0x2cc   : > { %v1663_v34 = vpack.i.b16 %v1459_v30, %v1409_v27  ;;  %v1665_v35 = vshrl.u32 %v1459_v30, 16  ;;  %v1671_v37 = vshrl.u32 %v7253_v23, 16  ;;  %v1295_v27 = vcombine.high %v955_v7, %v7186_v10  ;;  %v7299_v30 = vpop.permute.xlu1 %1711 }
 0x2cd   : > { %v1275_v56 = vcombine.low %v1243_v47, %v1258_v41  ;;  %v1276_v57 = vcombine.high %v1243_v47, %v1258_v41  ;;  %v1502_v1 = vcombine.low %v1493_v43, %v1501_v44  ;;  %v1753_v60 = vshrl.u32 %v7299_v30, 16 }
 0x2ce   : > { %6496 = vmatprep.mubr.msk.bf16.mxu1 %vm3349_vm3, %v1663_v34  ;;  %v1666_v38 = vpack.i.b16 %v1665_v35, %v1664_v32  ;;  %v7260_v39 = vpack.i.b16 %v1671_v37, %v1670_v31  ;;  %v1143_v32 = vcombine.low %v1111_v18, %v1126_v13  ;;  %v1144_v31 = vcombine.high %v1111_v18, %v1126_v13 }
 0x2cf   : > { %v1192_v34 = vrot.slane %v1178_v16, %v7191_v15  ;;  %v1324_v35 = vrot.slane %v1310_v17, %v7191_v15  ;;  %v1468_v37 = vrot.slane %v1461_v19, %v7191_v15  ;;  %v1309_v46 = vrot.slane %v1295_v27, %v7191_v15 }
 0x2d0   : > { %6504 = vmatprep.mubr.msk.bf16.mxu0 %vm3349_vm3, %v1666_v38  ;;  %v1302_v38 = vrot.slane %v955_v7, %v7191_v15  ;;  %v7313_v58 = vpop.permute.xlu1 %1709  ;;  %v1151_v63 = vrot.slane %v1143_v32, %v7210_v33  ;;  %v1158_v59 = vrot.slane %v1144_v31, %v7210_v33  ;;  %v1274_v13 = vrot.slane %v1260_v0, %v7210_v33 }
 0x2d1   : > { %v1209_v51 = vcombine.low %v1177_v28, %v1192_v34  ;;  %v1210_v52 = vcombine.high %v1177_v28, %v1192_v34  ;;  %v1341_v54 = vcombine.low %v1309_v46, %v1324_v35  ;;  %v1342_v55 = vcombine.high %v1309_v46, %v1324_v35 }
 0x2d2   : > { %v1325_v48 = vcombine.low %v1302_v38, %v1317_v29  ;;  %v1326_v50 = vcombine.high %v1302_v38, %v1317_v29  ;;  %v1477_v61 = vcombine.low %v1468_v37, %v1476_v42  ;;  %v7328_v16 = vrot.slane %v1275_v56, %v7210_v33 }
 0x2d3   : > { %v1217_v6 = vrot.slane %v1209_v51, %v7210_v33  ;;  %v1224_v5 = vrot.slane %v1210_v52, %v7210_v33  ;;  %v1349_v7 = vrot.slane %v1341_v54, %v7210_v33  ;;  %v1356_v11 = vrot.slane %v1342_v55, %v7210_v33 }
 0x2d4   : > { %v1333_v2 = vrot.slane %v1325_v48, %v7210_v33  ;;  %v1340_v3 = vrot.slane %v1326_v50, %v7210_v33  ;;  %8914 = vst [vmem:[#allocation11_spill] sm:$0xff] %v7328_v16  ;;  %v7331_v17 = vrot.slane %v1276_v57, %v7210_v33  ;;  %v7334_v21 = vrot.slane %v1477_v61, %v7210_v33 }
 0x2d5   : > { %v7337_v22 = vrot.slane %v1502_v1, %v7210_v33  ;;  %v1511_v25 = vcombine.low %v1151_v63, %v1158_v59  ;;  %v6294_v26 = vcombine.high %v1151_v63, %v1158_v59  ;;  %v1737_v29 = vshrl.u32 %v7313_v58, 16 }
 0x2d6   : > { %8915 = vst [vmem:[#allocation12_spill] sm:$0xff] %v7331_v17  ;;  %v1577_v27 = vcombine.low %v1333_v2, %v1340_v3  ;;  %v6297_v28 = vcombine.high %v1333_v2, %v1340_v3  ;;  %v1636_v32 = vcombine.low %v1349_v7, %v1356_v11  ;;  %v6299_v31 = vcombine.high %v1349_v7, %v1356_v11 }
 0x2d7   : > { %v1561_v34 = vcombine.low %v1217_v6, %v1224_v5  ;;  %v6296_v35 = vcombine.high %v1217_v6, %v1224_v5  ;;  %v1527_v37 = vcombine.low %v1267_v12, %v1274_v13  ;;  %v6295_v38 = vcombine.high %v1267_v12, %v1274_v13 }
 0x2d8   : > { %v1518_v45 = vrot.slane %v1511_v25, %v7191_v15  ;;  %v1526_v47 = vrot.slane %v6294_v26, %v7191_v15  ;;  %v1584_v51 = vrot.slane %v1577_v27, %v7191_v15  ;;  %v1592_v52 = vrot.slane %v6297_v28, %v7191_v15 }
 0x2d9   : > { %v7355_v54 = vrot.slane %v1636_v32, %v7191_v15  ;;  %v7358_v55 = vrot.slane %v6299_v31, %v7191_v15  ;;  %v1568_v62 = vrot.slane %v1561_v34, %v7191_v15  ;;  %v1576_v0 = vrot.slane %v6296_v35, %v7191_v15 }
 0x2da   : > { %v1534_v61 = vrot.slane %v1527_v37, %v7191_v15  ;;  %v1542_v1 = vrot.slane %v6295_v38, %v7191_v15  ;;  %v1543_v2 = vcombine.low %v1518_v45, %v1526_v47  ;;  %v1676_v7 = vshrl.u32 %v7334_v21, 16 }
 0x2db   : > { %8916 = vst [vmem:[#allocation13_spill] sm:$0xff] %v7355_v54  ;;  %8917 = vst [vmem:[#allocation14_spill] sm:$0xff] %v7358_v55  ;;  %v1601_v11 = vcombine.low %v1584_v51, %v1592_v52  ;;  %v1593_v25 = vcombine.low %v1568_v62, %v1576_v0 }
 0x2dc   : > { %v7385_v35 = vrot.slane %v1543_v2, %v7210_v33  ;;  %v1551_v37 = vcombine.low %v1534_v61, %v1542_v1 }
 0x2de   : > { %v7412_v2 = vrot.slane %v1551_v37, %v7210_v33 }
 0x30e   : > { %v7315_v53 = vpop.permute.xlu0 %1715 }
 0x30f   : > { %v1735_v38 = vpack.i.b16 %v7315_v53, %v7313_v58 }
 0x311   : > { %v1781_v61 = vcombine.high %v1735_v38, %v7186_v10 }
 0x316   : > { %v1724_v18 = vpop.permute.xlu1 %1723  ;;  %v1718_v19 = vpop.permute.xlu0 %1717 }
 0x317   : > { %v1751_v48 = vpack.i.b16 %v1718_v19, %v7299_v30  ;;  %v1761_v56 = vshrl.u32 %v1724_v18, 16  ;;  %v1754_v57 = vshrl.u32 %v1718_v19, 16  ;;  %v1677_v30 = vshrl.u32 %v7337_v22, 16 }
 0x318   : > { %v7378_v19 = vcombine.high %v7337_v22, %v8880_v9 }
 0x319   : > { %v1920_v3 = vrot.slane %v1751_v48, %v7191_v15  ;;  %v1913_v12 = vcombine.high %v1751_v48, %v7186_v10  ;;  %v1755_v26 = vpack.i.b16 %v1754_v57, %v1753_v60  ;;  %v7380_v32 = vpack.i.b16 %v1677_v30, %v1676_v7 }
 0x31a   : > { %v1730_v42 = vpop.permute.xlu0 %1729  ;;  %v7345_v43 = vpop.permute.xlu1 %1721  ;;  %v7392_v60 = vrot.slane %v1601_v11, %v7210_v33 }
 0x31b   : > { %v1759_v44 = vpack.i.b16 %v1730_v42, %v1724_v18  ;;  %v1762_v50 = vshrl.u32 %v1730_v42, 16  ;;  %v7374_v18 = vcombine.high %v7334_v21, %v8880_v9  ;;  %v1738_v42 = vshrl.u32 %v7315_v53, 16 }
 0x31c   : > { %8918 = vst [vmem:[#allocation15_spill] sm:$0xff] %v7392_v60  ;;  %v1927_v45 = vrot.slane %v1913_v12, %v7191_v15  ;;  %v1979_v51 = vcombine.high %v1755_v26, %v7186_v10  ;;  %v1986_v52 = vrot.slane %v1755_v26, %v7191_v15  ;;  %v1745_v0 = vshrl.u32 %v7345_v43, 16 }
 0x31d   : > { %v1935_v63 = vrot.slane %v1759_v44, %v7191_v15  ;;  %v1928_v59 = vcombine.high %v1759_v44, %v7186_v10  ;;  %v1763_v6 = vpack.i.b16 %v1762_v50, %v1761_v56  ;;  %v7397_v50 = vrot.slane %v1593_v25, %v7210_v33 }
 0x31e   : > { %v1728_v5 = vpop.permute.xlu0 %1727  ;;  %v7370_v13 = vpop.permute.xlu1 %1713  ;;  %v1993_v7 = vrot.slane %v1979_v51, %v7191_v15 }
 0x31f   : > { %v1943_v27 = vcombine.low %v1920_v3, %v1935_v63  ;;  %v1944_v28 = vcombine.high %v1920_v3, %v1935_v63  ;;  %v1942_v31 = vrot.slane %v1928_v59, %v7191_v15  ;;  %v1743_v34 = vpack.i.b16 %v1728_v5, %v7345_v43  ;;  %8919 = vst [vmem:[#allocation16_spill] sm:$0xff] %v7397_v50 }
 0x320   : > { %v1994_v44 = vcombine.high %v1763_v6, %v7186_v10  ;;  %v2001_v47 = vrot.slane %v1763_v6, %v7191_v15  ;;  %v1746_v48 = vshrl.u32 %v1728_v5, 16  ;;  %v1739_v59 = vpack.i.b16 %v1738_v42, %v1737_v29 }
 0x321   : > { %v1951_v62 = vrot.slane %v1943_v27, %v7210_v33  ;;  %v1958_v53 = vrot.slane %v1944_v28, %v7210_v33  ;;  %v1959_v56 = vcombine.low %v1927_v45, %v1942_v31  ;;  %v1960_v57 = vcombine.high %v1927_v45, %v1942_v31 }
 0x322   : > { %v1796_v63 = vcombine.high %v1743_v34, %v7186_v10  ;;  %v7405_v30 = vpop.permute.xlu1 %1725  ;;  %v2008_v1 = vrot.slane %v1994_v44, %v7191_v15  ;;  %v1788_v3 = vrot.slane %v1735_v38, %v7191_v15  ;;  %v2009_v6 = vcombine.low %v1986_v52, %v2001_v47  ;;  %v1720_v28 = vpop.permute.xlu0 %1719 }
 0x323   : > { %v1747_v43 = vpack.i.b16 %v1746_v48, %v1745_v0  ;;  %v7417_v5 = vcombine.low %v7397_v50, %v7392_v60  ;;  %v2010_v11 = vcombine.high %v1986_v52, %v2001_v47  ;;  %v2277_v58 = vcombine.low %v1951_v62, %v1958_v53 }
 0x324   : > { %v1803_v29 = vrot.slane %v1743_v34, %v7191_v15  ;;  %v1967_v12 = vrot.slane %v1959_v56, %v7210_v33  ;;  %v1974_v25 = vrot.slane %v1960_v57, %v7210_v33  ;;  %v6304_v26 = vcombine.high %v1951_v62, %v1958_v53 }
 0x325   : > { %8920 = vst [vmem:[#allocation17_spill] sm:$0xff] %v7417_v5  ;;  %v1810_v27 = vrot.slane %v1796_v63, %v7191_v15  ;;  %v1795_v31 = vrot.slane %v1781_v61, %v7191_v15  ;;  %v1847_v37 = vcombine.high %v1739_v59, %v7186_v10  ;;  %v1854_v38 = vrot.slane %v1739_v59, %v7191_v15 }
 0x326   : > { %v2025_v42 = vcombine.low %v1993_v7, %v2008_v1  ;;  %v2017_v44 = vrot.slane %v2009_v6, %v7210_v33  ;;  %v2026_v45 = vcombine.high %v1993_v7, %v2008_v1  ;;  %v1862_v34 = vcombine.high %v1747_v43, %v7186_v10  ;;  %v7430_v48 = vpop.permute.xlu1 %2527 }
 0x327   : > { %v1869_v47 = vrot.slane %v1747_v43, %v7191_v15  ;;  %v2024_v51 = vrot.slane %v2010_v11, %v7210_v33  ;;  %v7434_v52 = vrot.slane %v2277_v58, %v7191_v15  ;;  %v1811_v62 = vcombine.low %v1788_v3, %v1803_v29  ;;  %v1732_v58 = vpop.permute.xlu0 %1731 }
 0x328   : > { %v1812_v53 = vcombine.high %v1788_v3, %v1803_v29  ;;  %v7437_v0 = vrot.slane %v6304_v26, %v7191_v15  ;;  %v2327_v56 = vcombine.low %v1967_v12, %v1974_v25  ;;  %v1827_v57 = vcombine.low %v1795_v31, %v1810_v27 }
 0x329   : > { %v1828_v63 = vcombine.high %v1795_v31, %v1810_v27  ;;  %v1861_v59 = vrot.slane %v1847_v37, %v7191_v15  ;;  %v7441_v61 = vrot.slane %v2025_v42, %v7210_v33  ;;  %v6306_v1 = vcombine.high %v1967_v12, %v1974_v25 }
 0x32a   : > { %v1769_v6 = vshrl.u32 %v7370_v13, 16  ;;  %v7445_v43 = vrot.slane %v2026_v45, %v7210_v33  ;;  %v1876_v7 = vrot.slane %v1862_v34, %v7191_v15  ;;  %v1877_v3 = vcombine.low %v1854_v38, %v1869_v47  ;;  %v2532_v45 = vpop.permute.xlu1 %2531 }
 0x32b   : > { %v1878_v11 = vcombine.high %v1854_v38, %v1869_v47  ;;  %v2302_v29 = vcombine.low %v2017_v44, %v2024_v51  ;;  %v6305_v26 = vcombine.high %v2017_v44, %v2024_v51  ;;  %v1819_v27 = vrot.slane %v1811_v62, %v7210_v33 }
 0x32c   : > { %v1826_v31 = vrot.slane %v1812_v53, %v7210_v33  ;;  %v7453_v12 = vrot.slane %v2327_v56, %v7191_v15  ;;  %v1835_v25 = vrot.slane %v1827_v57, %v7210_v33  ;;  %v1842_v42 = vrot.slane %v1828_v63, %v7210_v33 }
 0x32d   : > { %v7458_v38 = vrot.slane %v6306_v1, %v7191_v15  ;;  %v1777_v44 = vshrl.u32 %v7405_v30, 16  ;;  %v1770_v34 = vshrl.u32 %v1720_v28, 16  ;;  %v1778_v47 = vshrl.u32 %v1732_v58, 16 }
 0x32e   : > { %v1885_v51 = vrot.slane %v1877_v3, %v7210_v33  ;;  %v1892_v62 = vrot.slane %v1878_v11, %v7210_v33  ;;  %v1893_v53 = vcombine.low %v1861_v59, %v1876_v7  ;;  %v1775_v56 = vpack.i.b16 %v1732_v58, %v7405_v30 }
 0x32f   : > { %v7465_v49 = vrot.slane %v2302_v29, %v7191_v15  ;;  %v7468_v57 = vrot.slane %v6305_v26, %v7191_v15  ;;  %v1894_v63 = vcombine.high %v1861_v59, %v1876_v7  ;;  %v2177_v1 = vcombine.low %v1819_v27, %v1826_v31 }
 0x330   : > { %v6300_v4 = vcombine.high %v1819_v27, %v1826_v31  ;;  %v2193_v41 = vcombine.low %v1835_v25, %v1842_v42  ;;  %v1767_v40 = vpack.i.b16 %v1720_v28, %v7370_v13  ;;  %v1779_v36 = vpack.i.b16 %v1778_v47, %v1777_v44  ;;  %v2526_v27 = vpop.permute.xlu0 %2525  ;;  %v7480_v31 = vpop.permute.xlu1 %2533 }
 0x331   : > { %v1771_v30 = vpack.i.b16 %v1770_v34, %v1769_v6  ;;  %v7477_v29 = vrot.slane %v1893_v53, %v7210_v33  ;;  %v6301_v26 = vcombine.high %v1835_v25, %v1842_v42  ;;  %v2227_v59 = vcombine.low %v1885_v51, %v1892_v62 }
 0x332   : > { %v2060_v7 = vcombine.high %v1775_v56, %v7186_v10  ;;  %v7483_v13 = vrot.slane %v1894_v63, %v7210_v33  ;;  %v7486_v28 = vrot.slane %v2177_v1, %v7191_v15  ;;  %v6302_v44 = vcombine.high %v1885_v51, %v1892_v62 }
 0x333   : > { %v2067_v6 = vrot.slane %v1775_v56, %v7191_v15  ;;  %v7490_v34 = vrot.slane %v6300_v4, %v7191_v15  ;;  %v7493_v25 = vrot.slane %v2193_v41, %v7191_v15  ;;  %v2045_v42 = vcombine.high %v1767_v40, %v7186_v10 }
 0x334   : > { %v2126_v47 = vcombine.high %v1779_v36, %v7186_v10  ;;  %v2052_v53 = vrot.slane %v1767_v40, %v7191_v15  ;;  %v2554_v63 = vshrl.u32 %v2532_v45, 16  ;;  %v2551_v46 = vpack.i.b16 %v2532_v45, %v2526_v27  ;;  %v7516_v9 = vpop.permute.xlu0 %2537 }
 0x335   : > { %v2553_v11 = vshrl.u32 %v2526_v27, 16  ;;  %v7499_v1 = vrot.slane %v6301_v26, %v7191_v15  ;;  %v7502_v51 = vrot.slane %v2227_v59, %v7191_v15  ;;  %v2111_v4 = vcombine.high %v1771_v30, %v7186_v10 }
 0x336   : > { %v2074_v41 = vrot.slane %v2060_v7, %v7191_v15  ;;  %v7507_v62 = vrot.slane %v6302_v44, %v7191_v15  ;;  %v2075_v56 = vcombine.low %v2052_v53, %v2067_v6  ;;  %v2076_v3 = vcombine.high %v2052_v53, %v2067_v6  ;;  %v2540_v7 = vpop.permute.xlu1 %2539 }
 0x337   : > { %v2133_v40 = vrot.slane %v1779_v36, %v7191_v15  ;;  %v2059_v59 = vrot.slane %v2045_v42, %v7191_v15  ;;  %v2140_v27 = vrot.slane %v2126_v47, %v7191_v15  ;;  %v2118_v44 = vrot.slane %v1771_v30, %v7191_v15 }
 0x338   : > { %v2555_v58 = vpack.i.b16 %v2554_v63, %v2553_v11  ;;  %v2597_v6 = vcombine.high %v2551_v46, %v7186_v10  ;;  %v7522_v36 = vpack.i.b16 %v7480_v31, %v7430_v48  ;;  %v2125_v53 = vrot.slane %v2111_v4, %v7191_v15 }
 0x339   : > { %v2091_v45 = vcombine.low %v2059_v59, %v2074_v41  ;;  %v2092_v26 = vcombine.high %v2059_v59, %v2074_v41  ;;  %v7526_v42 = vrot.slane %v2551_v46, %v7191_v15  ;;  %v2083_v47 = vrot.slane %v2075_v56, %v7210_v33 }
 0x33a   : > { %v2090_v37 = vrot.slane %v2076_v3, %v7210_v33  ;;  %v2141_v24 = vcombine.low %v2118_v44, %v2133_v40  ;;  %v2142_v30 = vcombine.high %v2118_v44, %v2133_v40  ;;  %v2157_v11 = vcombine.low %v2125_v53, %v2140_v27 }
 0x33b   : > { %v2570_v63 = vshrl.u32 %v7480_v31, 16  ;;  %v8921_v8 = vcombine.low %v7434_v52, %v7437_v0  ;;  %v2318_v4 = vcombine.low %v7465_v49, %v7468_v57  ;;  %v2158_v46 = vcombine.high %v2125_v53, %v2140_v27  ;;  %v2544_v49 = vpop.permute.xlu0 %2543  ;;  %v2546_v0 = vpop.permute.xlu1 %2545 }
 0x33c   : > { %v7540_v41 = vrot.slane %v2597_v6, %v7191_v15  ;;  %v2663_v3 = vcombine.high %v2555_v58, %v7186_v10  ;;  %v2729_v56 = vcombine.high %v7522_v36, %v7186_v10  ;;  %v2099_v31 = vrot.slane %v2091_v45, %v7210_v33 }
 0x33d   : > { %v7535_v14 = vrot.slane %v8921_v8, %v7210_v33  ;;  %v2106_v40 = vrot.slane %v2092_v26, %v7210_v33  ;;  %v7548_v52 = vrot.slane %v2555_v58, %v7191_v15  ;;  %v7551_v8 = vrot.slane %v2318_v4, %v7210_v33 }
 0x33e   : > { %v7554_v57 = vrot.slane %v2141_v24, %v7210_v33  ;;  %v7557_v59 = vrot.slane %v2142_v30, %v7210_v33  ;;  %v2343_v27 = vcombine.low %v2083_v47, %v2090_v37  ;;  %v6307_v44 = vcombine.high %v2083_v47, %v2090_v37 }
 0x33f   : > { %v2165_v45 = vrot.slane %v2157_v11, %v7210_v33  ;;  %v2491_v26 = vpack.i.b16 %v7551_v8, %v7535_v14  ;;  %v2492_v58 = vshrl.u32 %v7535_v14, 16  ;;  %v2493_v6 = vshrl.u32 %v7551_v8, 16 }
 0x340   : > { %v2172_v53 = vrot.slane %v2158_v46, %v7210_v33  ;;  %v2559_v4 = vpack.i.b16 %v2544_v49, %v7516_v9  ;;  %v2575_v24 = vpack.i.b16 %v2546_v0, %v2540_v7  ;;  %v2578_v50 = vshrl.u32 %v2546_v0, 16 }
 0x341   : > { %v7567_v30 = vrot.slane %v2663_v3, %v7191_v15  ;;  %v8922_v37 = vshrl.u32 %v7430_v48, 16  ;;  %6672 = vmatprep.subr.msk.bf16.mxu1 %vm3349_vm3, %v2491_v26  ;;  %v3360_v11 = vsel %vm3349_vm3, %v2491_v26, 0  ;;  %v2494_v60 = vpack.i.b16 %v2493_v6, %v2492_v58 }
 0x342   : > { %v7574_v54 = vrot.slane %v2343_v27, %v7191_v15  ;;  %v2427_v55 = vcombine.low %v2099_v31, %v2106_v40  ;;  %v6310_v46 = vcombine.high %v2099_v31, %v2106_v40  ;;  %6493 = vmatpush3.bf16.xpose.msra.mxu1 %v3360_v11  ;;  %v2577_v17 = vshrl.u32 %v2540_v7, 16 }
 0x343   : > { %v2571_v47 = vpack.i.b16 %v2570_v63, %v8922_v37  ;;  %v7577_v0 = vrot.slane %v6307_v44, %v7191_v15  ;;  %v2393_v3 = vcombine.low %v7554_v57, %v7557_v59  ;;  %6674 = vmatprep.subr.msk.bf16.mxu0 %vm3349_vm3, %v2494_v60  ;;  %v3420_v48 = vsel %vm3349_vm3, %v2494_v60, 0 }
 0x344   : > { %v2562_v63 = vshrl.u32 %v2544_v49, 16  ;;  %v2452_v26 = vcombine.low %v2165_v45, %v2172_v53  ;;  %6501 = vmatpush3.bf16.xpose.msra.mxu0 %v3420_v48  ;;  %v2619_v27 = vrot.slane %v2559_v4, %v7191_v15  ;;  %v2579_v58 = vpack.i.b16 %v2578_v50, %v2577_v17 }
 0x345   : > { %v2744_v31 = vcombine.high %v2575_v24, %v7186_v10  ;;  %v6311_v40 = vcombine.high %v2165_v45, %v2172_v53  ;;  %v2795_v44 = vcombine.high %v2571_v47, %v7186_v10  ;;  %v2561_v6 = vshrl.u32 %v7516_v9, 16 }
 0x346   : > { %v7590_v37 = vrot.slane %v2427_v55, %v7191_v15  ;;  %v7593_v60 = vrot.slane %v6310_v46, %v7191_v15  ;;  %v2736_v49 = vrot.slane %v7522_v36, %v7191_v15  ;;  %v2612_v17 = vcombine.high %v2559_v4, %v7186_v10 }
 0x347   : > { %v7599_v50 = vrot.slane %v2393_v3, %v7191_v15  ;;  %v2743_v45 = vrot.slane %v2729_v56, %v7191_v15  ;;  %v2802_v53 = vrot.slane %v2571_v47, %v7191_v15  ;;  %v2563_v11 = vpack.i.b16 %v2562_v63, %v2561_v6 }
 0x348   : > { %v7604_v9 = vrot.slane %v2452_v26, %v7191_v15  ;;  %v2627_v55 = vcombine.low %v7526_v42, %v2619_v27  ;;  %v2758_v46 = vrot.slane %v2744_v31, %v7191_v15  ;;  %v2810_v48 = vcombine.high %v2579_v58, %v7186_v10 }
 0x349   : > { %v7610_v36 = vrot.slane %v6311_v40, %v7191_v15  ;;  %v2809_v4 = vrot.slane %v2795_v44, %v7191_v15  ;;  %v2751_v3 = vrot.slane %v2575_v24, %v7191_v15  ;;  %v2209_v56 = vcombine.low %v7486_v28, %v7490_v34 }
 0x34a   : > { %v2626_v47 = vrot.slane %v2612_v17, %v7191_v15  ;;  %v2628_v63 = vcombine.high %v7526_v42, %v2619_v27  ;;  %v2775_v26 = vcombine.low %v2743_v45, %v2758_v46  ;;  %v2776_v6 = vcombine.high %v2743_v45, %v2758_v46 }
 0x34b   : > { %v2678_v31 = vcombine.high %v2563_v11, %v7186_v10  ;;  %v2685_v7 = vrot.slane %v2563_v11, %v7191_v15  ;;  %v2817_v40 = vrot.slane %v2579_v58, %v7191_v15  ;;  %v2824_v16 = vrot.slane %v2810_v48, %v7191_v15 }
 0x34c   : > { %v7623_v44 = vrot.slane %v2627_v55, %v7210_v33  ;;  %v7626_v24 = vrot.slane %v2775_v26, %v7210_v33  ;;  %v7629_v28 = vrot.slane %v2776_v6, %v7210_v33  ;;  %v2217_v34 = vcombine.low %v7493_v25, %v7499_v1 }
 0x34d   : > { %v2759_v42 = vcombine.low %v2736_v49, %v2751_v3  ;;  %v2760_v27 = vcombine.high %v2736_v49, %v2751_v3  ;;  %v2841_v17 = vcombine.low %v2809_v4, %v2824_v16  ;;  %v2842_v45 = vcombine.high %v2809_v4, %v2824_v16 }
 0x34e   : > { %v7634_v58 = vrot.slane %v2628_v63, %v7210_v33  ;;  %v2643_v11 = vcombine.low %v7540_v41, %v2626_v47  ;;  %v2825_v48 = vcombine.low %v2802_v53, %v2817_v40  ;;  %v2826_v26 = vcombine.high %v2802_v53, %v2817_v40 }
 0x34f   : > { %v7642_v6 = vrot.slane %v2841_v17, %v7210_v33  ;;  %v7645_v25 = vrot.slane %v2842_v45, %v7210_v33  ;;  %v2644_v16 = vcombine.high %v7540_v41, %v2626_v47  ;;  %v2224_v1 = vrot.slane %v2217_v34, %v7210_v33 }
 0x350   : > { %v8923_v49 = vcombine.low %v7477_v29, %v7483_v13  ;;  %v8924_v3 = vcombine.high %v7477_v29, %v7483_v13  ;;  %v2767_v63 = vrot.slane %v2759_v42, %v7210_v33  ;;  %v2774_v40 = vrot.slane %v2760_v27, %v7210_v33 }
 0x351   : > { %v2692_v47 = vrot.slane %v2678_v31, %v7191_v15  ;;  %v2216_v34 = vrot.slane %v2209_v56, %v7210_v33  ;;  %v2259_v45 = vcombine.low %v7502_v51, %v7507_v62  ;;  %v2693_v29 = vcombine.low %v7548_v52, %v2685_v7 }
 0x352   : > { %v2250_v4 = vrot.slane %v8923_v49, %v7191_v15  ;;  %v2258_v53 = vrot.slane %v8924_v3, %v7191_v15  ;;  %v2694_v13 = vcombine.high %v7548_v52, %v2685_v7  ;;  %v2833_v42 = vrot.slane %v2825_v48, %v7210_v33 }
 0x353   : > { %v2840_v27 = vrot.slane %v2826_v26, %v7210_v33  ;;  %v2225_v3 = vcombine.low %v2216_v34, %v2224_v1  ;;  %v2266_v17 = vrot.slane %v2259_v45, %v7210_v33  ;;  %v8925_v31 = vmov 0  }
 0x354   : > { %v2267_v49 = vcombine.low %v2250_v4, %v2258_v53  ;;  %v2326_v56 = vcombine.high %v7551_v8, %v8925_v31  ;;  %v7676_v46 = vrot.slane %v2643_v11, %v7210_v33  ;;  %v2658_v51 = vrot.slane %v2644_v16, %v7210_v33 }
 0x355   : > { %v3093_v62 = vcombine.low %v2767_v63, %v2774_v40  ;;  %v6316_v4 = vcombine.high %v2767_v63, %v2774_v40  ;;  %v2993_v52 = vcombine.low %v7623_v44, %v7634_v58  ;;  %v6312_v7 = vcombine.high %v7623_v44, %v7634_v58 }
 0x356   : > { %v2274_v41 = vrot.slane %v2267_v49, %v7210_v33  ;;  %v2301_v26 = vcombine.high %v7535_v14, %v8925_v31  ;;  %v7686_v53 = vrot.slane %v2693_v29, %v7210_v33  ;;  %v7689_v8 = vrot.slane %v2694_v13, %v7210_v33 }
 0x357   : > { %v3118_v11 = vcombine.low %v2833_v42, %v2840_v27  ;;  %v6317_v16 = vcombine.high %v2833_v42, %v2840_v27  ;;  %v2480_v63 = vshrl.u32 %v2225_v3, 16  ;;  %v2499_v49 = vshrl.u32 %v2326_v56, 16 }
 0x358   : > { %v2275_v48 = vcombine.low %v2266_v17, %v2274_v41  ;;  %v2709_v55 = vcombine.low %v7567_v30, %v2692_v47  ;;  %v2710_v44 = vcombine.high %v7567_v30, %v2692_v47  ;;  %v3100_v58 = vrot.slane %v3093_v62, %v7191_v15 }
 0x359   : > { %v3108_v14 = vrot.slane %v6316_v4, %v7191_v15  ;;  %v2497_v10 = vpack.i.b16 %v2326_v56, %v2301_v26  ;;  %v2498_v5 = vshrl.u32 %v2301_v26, 16  ;;  %v3125_v42 = vrot.slane %v3118_v11, %v7191_v15 }
 0x35a   : > { %v2479_v45 = vpack.i.b16 %v2275_v48, %v2225_v3  ;;  %v2481_v40 = vshrl.u32 %v2275_v48, 16  ;;  %v3133_v27 = vrot.slane %v6317_v16, %v7191_v15  ;;  %v2226_v3 = vcombine.high %v2216_v34, %v2224_v1 }
 0x35b   : > { %v2443_v30 = vcombine.low %v7590_v37, %v7593_v60  ;;  %v8926_v47 = vcombine.high %v7554_v57, %v7557_v59  ;;  %v2500_v4 = vpack.i.b16 %v2499_v49, %v2498_v5  ;;  %v2276_v48 = vcombine.high %v2266_v17, %v2274_v41 }
 0x35c   : > { %6673 = vmatprep.subr.msk.bf16.mxu1 %vm3349_vm3, %v2479_v45  ;;  %v3357_v29 = vsel %vm3349_vm3, %v2479_v45, 0  ;;  %v2482_v13 = vpack.i.b16 %v2481_v40, %v2480_v63  ;;  %v3000_v26 = vrot.slane %v2993_v52, %v7191_v15  ;;  %v3008_v1 = vrot.slane %v6312_v7, %v7191_v15 }
 0x35d   : > { %6495 = vmatpush3.bf16.xpose.msra.mxu1 %v3357_v29  ;;  %v2408_v62 = vrot.slane %v8926_v47, %v7191_v15  ;;  %v3009_v34 = vcombine.low %v7676_v46, %v2658_v51  ;;  %v2468_v37 = vcombine.low %v7604_v9, %v7610_v36  ;;  %v2717_v57 = vrot.slane %v2709_v55, %v7210_v33 }
 0x35e   : > { %6675 = vmatprep.subr.msk.bf16.mxu0 %vm3349_vm3, %v2482_v13  ;;  %6676 = vmatprep.subr.msk.bf16.mxu1 %vm3349_vm3, %v2497_v10  ;;  %v3417_v56 = vsel %vm3349_vm3, %v2482_v13, 0  ;;  %v2724_v59 = vrot.slane %v2710_v44, %v7210_v33  ;;  %v6313_v60 = vcombine.high %v7676_v46, %v2658_v51  ;;  %v3109_v11 = vcombine.low %v3100_v58, %v3108_v14 }
 0x35f   : > { %6503 = vmatpush3.bf16.xpose.msra.mxu0 %v3417_v56  ;;  %v3043_v5 = vcombine.low %v7686_v53, %v7689_v8  ;;  %v2486_v17 = vshrl.u32 %v2226_v3, 16  ;;  %v7720_v41 = vrot.slane %v2443_v30, %v7210_v33  ;;  %v3134_v52 = vcombine.low %v3125_v42, %v3133_v27 }
 0x360   : > { %6678 = vmatprep.subr.msk.bf16.mxu0 %vm3349_vm3, %v2500_v4  ;;  %v3480_v7 = vsel %vm3349_vm3, %v2497_v10, 0  ;;  %v2487_v9 = vshrl.u32 %v2276_v48, 16  ;;  %v2359_v36 = vcombine.low %v7453_v12, %v7458_v38  ;;  %v2367_v55 = vcombine.low %v7574_v54, %v7577_v0 }
 0x361   : > { %v2485_v46 = vpack.i.b16 %v2276_v48, %v2226_v3  ;;  %v7728_v51 = vrot.slane %v2468_v37, %v7210_v33  ;;  %v8927_v16 = vcombine.low %v7441_v61, %v7445_v43  ;;  %v8928_v10 = vcombine.high %v7441_v61, %v7445_v43 }
 0x362   : > { %v8929_v12 = vpack.i.b16 %v7337_v22, %v7334_v21  ;;  %v7743_v54 = vrot.slane %v3109_v11, %v7210_v33  ;;  %v7746_v38 = vrot.slane %v3134_v52, %v7210_v33  ;;  %v3016_v0 = vrot.slane %v3009_v34, %v7191_v15 }
 0x363   : > { %v2384_v45 = vrot.slane %v8927_v16, %v7191_v15  ;;  %v2392_v63 = vrot.slane %v8928_v10, %v7191_v15  ;;  %v3024_v40 = vrot.slane %v6313_v60, %v7191_v15  ;;  %v6314_v49 = vcombine.high %v7686_v53, %v7689_v8 }
 0x364   : > { %6497 = vmatmul.mubr.msk.bf16.vlgmr.msra.gmra.mxu1 %vm3349_vm3, %v8929_v12  ;;  %v3059_v61 = vcombine.low %v2717_v57, %v2724_v59  ;;  %v8930_v21 = vpack.i.b16 %v7253_v23, %v7247_v20  ;;  %v1683_v22 = vshrl.u32 %v7378_v19, 16  ;;  %v2417_v43 = vcombine.low %v7599_v50, %v2408_v62 }
 0x365   : > { %6509 = vmatpush3.bf16.xpose.msra.mxu1 %v3480_v7  ;;  %v6315_v44 = vcombine.high %v2717_v57, %v2724_v59  ;;  %v3540_v58 = vsel %vm3349_vm3, %v2500_v4, 0  ;;  %v2488_v53 = vpack.i.b16 %v2487_v9, %v2486_v17  ;;  %v7763_v8 = vrot.slane %v2359_v36, %v7210_v33 }
 0x366   : > { %6512 = vmatprep.mubr.msk.bf16.mxu1 %vm3349_vm3, %v8930_v21  ;;  %6505 = vmatmul.mubr.msk.bf16.vlgmr.msra.gmra.mxu0 %vm3349_vm3, %v7380_v32  ;;  %v2516_v20 = vshrl.u32 %v7720_v41, 16  ;;  %v7769_v23 = vrot.slane %v2367_v55, %v7210_v33  ;;  %v2409_v50 = vcombine.low %v2384_v45, %v2392_v63  ;;  %v3025_v14 = vcombine.low %v3000_v26, %v3008_v1 }
 0x367   : > { %6677 = vmatprep.subr.msk.bf16.mxu1 %vm3349_vm3, %v2485_v46  ;;  %6517 = vmatpush3.bf16.xpose.msra.mxu0 %v3540_v58  ;;  %v2517_v32 = vshrl.u32 %v7728_v51, 16  ;;  %v7775_v29 = vcombine.high %v7743_v54, %v8925_v31  ;;  %v7779_v13 = vcombine.high %v7746_v38, %v8925_v31  ;;  %v7782_v42 = vrot.slane %v2417_v43, %v7210_v33  ;;  %v8935_v43 = vld [vmem:[#allocation17_spill] sm:$0xff] }
 0x368   : > { %6520 = vmatprep.mubr.msk.bf16.mxu0 %vm3349_vm3, %v7260_v39  ;;  %6679 = vmatprep.subr.msk.bf16.mxu0 %vm3349_vm3, %v2488_v53  ;;  %v3033_v39 = vcombine.low %v3016_v0, %v3024_v40  ;;  %v3050_v27 = vrot.slane %v3043_v5, %v7191_v15  ;;  %v3058_v3 = vrot.slane %v6314_v49, %v7191_v15  ;;  %v3477_v47 = vsel %vm3349_vm3, %v2485_v46, 0 }
 0x369   : > { %v3066_v30 = vrot.slane %v3059_v61, %v7191_v15  ;;  %v2515_v62 = vpack.i.b16 %v7728_v51, %v7720_v41  ;;  %v3074_v4 = vrot.slane %v6315_v44, %v7191_v15  ;;  %v3537_v48 = vsel %vm3349_vm3, %v2488_v53, 0 }
 0x36a   : > { %v3040_v56 = vrot.slane %v3033_v39, %v7210_v33  ;;  %v7794_v26 = vrot.slane %v2409_v50, %v7210_v33  ;;  %v3032_v1 = vrot.slane %v3025_v14, %v7210_v33  ;;  %v3075_v34 = vcombine.low %v3050_v27, %v3058_v3 }
 0x36b   : > { %v2518_v37 = vpack.i.b16 %v2517_v32, %v2516_v20  ;;  %v3083_v57 = vcombine.low %v3066_v30, %v3074_v4  ;;  %v3318_v59 = vshrl.u32 %v7775_v29, 16  ;;  %v3319_v60 = vshrl.u32 %v7779_v13, 16  ;;  %v8937_v4 = vld [vmem:[#allocation12_spill] sm:$0xff] }
 0x36c   : > { %v2425_v11 = vcombine.low %v7794_v26, %v7782_v42  ;;  %v7801_v5 = vcombine.low %v3032_v1, %v3040_v56  ;;  %v8931_v17 = vcombine.low %v7626_v24, %v7629_v28  ;;  %v8932_v7 = vcombine.high %v7626_v24, %v7629_v28 }
 0x36d   : > { %6511 = vmatpush3.bf16.xpose.msra.mxu1 %v3477_v47  ;;  %v3082_v36 = vrot.slane %v3075_v34, %v7210_v33  ;;  %v3090_v55 = vrot.slane %v3083_v57, %v7210_v33  ;;  %v7818_v46 = vcombine.high %v3032_v1, %v3040_v56  ;;  %v7820_v16 = vpack.i.b16 %v3319_v60, %v3318_v59  ;;  %v8936_v56 = vld [vmem:[#allocation11_spill] sm:$0xff] }
 0x36e   : > { %v7807_v52 = vrot.slane %v8931_v17, %v7191_v15  ;;  %v7813_v9 = vrot.slane %v8932_v7, %v7191_v15  ;;  %6680 = vmatprep.subr.msk.bf16.mxu1 %vm3349_vm3, %v2515_v62  ;;  %v1559_v45 = vcombine.low %v7385_v35, %v7412_v2  ;;  %v8933_v24 = vcombine.low %v7642_v6, %v7645_v25  ;;  %v8941_v17 = vld [vmem:[#allocation13_spill] sm:$0xff] }
 0x36f   : > { %6519 = vmatpush3.bf16.xpose.msra.mxu0 %v3537_v48  ;;  %v8934_v63 = vcombine.high %v7642_v6, %v7645_v25  ;;  %v1681_v0 = vpack.i.b16 %v7378_v19, %v7374_v18  ;;  %v2375_v40 = vcombine.low %v7763_v8, %v7769_v23  ;;  %v7843_v49 = vcombine.low %v3082_v36, %v3090_v55 }
 0x370   : > { %v3175_v10 = vcombine.low %v7807_v52, %v7813_v9  ;;  %v7830_v28 = vrot.slane %v8933_v24, %v7191_v15  ;;  %6682 = vmatprep.subr.msk.bf16.mxu0 %vm3349_vm3, %v2518_v37  ;;  %v7845_v61 = vcombine.high %v3082_v36, %v3090_v55  ;;  %v1682_v21 = vshrl.u32 %v7374_v18, 16 }
 0x371   : > { %v7836_v12 = vrot.slane %v8934_v63, %v7191_v15  ;;  %v1689_v44 = vshrl.u32 %v8935_v43, 16  ;;  %v2505_v58 = vshrl.u32 %v2425_v11, 16  ;;  %v3297_v25 = vshrl.u32 %v7801_v5, 16 }
 0x372   : > { %v3298_v53 = vshrl.u32 %v7843_v49, 16  ;;  %v3305_v20 = vshrl.u32 %v7818_v46, 16  ;;  %v3306_v50 = vshrl.u32 %v7845_v61, 16  ;;  %v3600_v14 = vsel %vm3349_vm3, %v2515_v62, 0 }
 0x373   : > { %v3225_v6 = vcombine.low %v7830_v28, %v7836_v12  ;;  %v1687_v32 = vpack.i.b16 %v8935_v43, %v1559_v45  ;;  %v1684_v18 = vpack.i.b16 %v1683_v22, %v1682_v21  ;;  %v1688_v39 = vshrl.u32 %v1559_v45, 16 }
 0x374   : > { %6513 = vmatmul.mubr.msk.bf16.vlgmr.msra.gmra.mxu1 %vm3349_vm3, %v1681_v0  ;;  %v2503_v27 = vpack.i.b16 %v2425_v11, %v2375_v40  ;;  %v2504_v3 = vshrl.u32 %v2375_v40, 16  ;;  %v7860_v30 = vpack.i.b16 %v3298_v53, %v3297_v25  ;;  %v7862_v47 = vpack.i.b16 %v3306_v50, %v3305_v20  ;;  %v8940_v11 = vld [vmem:[#allocation14_spill] sm:$0xff]  ;;  %v8943_v0 = vld [vmem:[#allocation16_spill] sm:$0xff] }
 0x375   : > { %v8938_v48 = vcombine.low %v8936_v56, %v8937_v4  ;;  %6525 = vmatpush3.bf16.xpose.msra.mxu1 %v3600_v14  ;;  %6528 = vmatprep.mubr.msk.bf16.mxu1 %vm3349_vm3, %v1687_v32  ;;  %v1690_v62 = vpack.i.b16 %v1689_v44, %v1688_v39  ;;  %v8939_v19 = vcombine.high %v8936_v56, %v8937_v4  ;;  %v3660_v34 = vsel %vm3349_vm3, %v2518_v37, 0 }
 0x376   : > { %6521 = vmatmul.mubr.msk.bf16.vlgmr.msra.gmra.mxu0 %vm3349_vm3, %v1684_v18  ;;  %6681 = vmatprep.subr.msk.bf16.mxu1 %vm3349_vm3, %v2503_v27  ;;  %v2506_v57 = vpack.i.b16 %v2505_v58, %v2504_v3  ;;  %v2476_v59 = vcombine.high %v7728_v51, %v8925_v31  ;;  %v2451_v60 = vcombine.high %v7720_v41, %v8925_v31  ;;  %v3597_v45 = vsel %vm3349_vm3, %v2503_v27, 0  ;;  %v8942_v51 = vld [vmem:[#allocation15_spill] sm:$0xff] }
 0x377   : > { %v1618_v1 = vrot.slane %v8938_v48, %v7191_v15  ;;  %v1626_v22 = vrot.slane %v8939_v19, %v7191_v15  ;;  %6533 = vmatpush3.bf16.xpose.msra.mxu0 %v3660_v34  ;;  %6536 = vmatprep.mubr.msk.bf16.mxu0 %vm3349_vm3, %v1690_v62  ;;  %v1652_v7 = vcombine.low %v8941_v17, %v8940_v11  ;;  %v3313_v11 = vshrl.u32 %v7746_v38, 16 }
 0x378   : > { %6683 = vmatprep.subr.msk.bf16.mxu0 %vm3349_vm3, %v2506_v57  ;;  %v2523_v36 = vshrl.u32 %v2476_v59, 16  ;;  %v2521_v37 = vpack.i.b16 %v2476_v59, %v2451_v60  ;;  %v2522_v24 = vshrl.u32 %v2451_v60, 16  ;;  %v1610_v40 = vcombine.high %v8943_v0, %v8942_v51 }
 0x379   : > { %v1627_v55 = vcombine.low %v1618_v1, %v1626_v22  ;;  %v1659_v63 = vrot.slane %v1652_v7, %v7210_v33  ;;  %v3657_v21 = vsel %vm3349_vm3, %v2506_v57, 0  ;;  %v2426_v44 = vcombine.high %v7794_v26, %v7782_v42 }
 0x37a   : > { %v2524_v41 = vpack.i.b16 %v2523_v36, %v2522_v24  ;;  %v1560_v58 = vcombine.high %v7385_v35, %v7412_v2  ;;  %v2376_v53 = vcombine.high %v7763_v8, %v7769_v23  ;;  %v1695_v20 = vshrl.u32 %v1610_v40, 16 }
 0x37b   : > { %v1634_v43 = vrot.slane %v1627_v55, %v7210_v33  ;;  %v1701_v25 = vshrl.u32 %v1659_v63, 16  ;;  %v2511_v32 = vshrl.u32 %v2426_v44, 16  ;;  %v3720_v42 = vsel %vm3349_vm3, %v2521_v37, 0 }
 0x37c   : > { %v1693_v18 = vpack.i.b16 %v1610_v40, %v1560_v58  ;;  %v1694_v39 = vshrl.u32 %v1560_v58, 16  ;;  %v2509_v27 = vpack.i.b16 %v2426_v44, %v2376_v53  ;;  %v2510_v3 = vshrl.u32 %v2376_v53, 16 }
 0x37d   : > { %6527 = vmatpush3.bf16.xpose.msra.mxu1 %v3597_v45  ;;  %v1699_v50 = vpack.i.b16 %v1659_v63, %v1634_v43  ;;  %v1700_v14 = vshrl.u32 %v1634_v43, 16  ;;  %v3780_v2 = vsel %vm3349_vm3, %v2524_v41, 0  ;;  %v3311_v56 = vpack.i.b16 %v7746_v38, %v7743_v54 }
 0x37e   : > { %6684 = vmatprep.subr.msk.bf16.mxu1 %vm3349_vm3, %v2521_v37  ;;  %v1696_v35 = vpack.i.b16 %v1695_v20, %v1694_v39  ;;  %v2512_v8 = vpack.i.b16 %v2511_v32, %v2510_v3  ;;  %v3717_v23 = vsel %vm3349_vm3, %v2509_v27, 0  ;;  %v1660_v4 = vcombine.high %v1659_v63, %v8925_v31 }
 0x37f   : > { %6535 = vmatpush3.bf16.xpose.msra.mxu0 %v3657_v21  ;;  %v1702_v26 = vpack.i.b16 %v1701_v25, %v1700_v14  ;;  %v3317_v1 = vpack.i.b16 %v7779_v13, %v7775_v29  ;;  %v1635_v62 = vcombine.high %v1634_v43, %v8925_v31  ;;  %v4172_v57 = vsel %vm4170_vm4, %v3311_v56, 0 }
 0x380   : > { %6686 = vmatprep.subr.msk.bf16.mxu0 %vm3349_vm3, %v2524_v41  ;;  %v3777_v48 = vsel %vm3349_vm3, %v2512_v8, 0  ;;  %v1707_v19 = vshrl.u32 %v1660_v4, 16  ;;  %v3295_v60 = vpack.i.b16 %v7843_v49, %v7801_v5  ;;  %v3303_v13 = vpack.i.b16 %v7845_v61, %v7818_v46 }
 0x381   : > { %v1705_v22 = vpack.i.b16 %v1660_v4, %v1635_v62  ;;  %v1706_v34 = vshrl.u32 %v1635_v62, 16  ;;  %v4286_v29 = vsel %vm4170_vm4, %v3317_v1, 0  ;;  %v3312_v17 = vshrl.u32 %v7743_v54, 16 }
 0x382   : > { %v8944_v38 = vlaneseq }
 0x383   : > { %v1708_v59 = vpack.i.b16 %v1707_v19, %v1706_v34  ;;  %v7926_v7 = vpack.i.b16 %v3313_v11, %v3312_v17 }
 0x384   : > { %6529 = vmatmul.mubr.msk.bf16.vlgmr.msra.gmra.mxu1 %vm3349_vm3, %v1699_v50  ;;  %v7931_v5 = vand.u32 127, %v8944_v38 }
 0x385   : > { %6541 = vmatpush3.bf16.xpose.msra.mxu1 %v3720_v42  ;;  %6544 = vmatprep.mubr.msk.bf16.mxu1 %vm3349_vm3, %v1693_v18 }
 0x386   : > { %6537 = vmatmul.mubr.msk.bf16.vlgmr.msra.gmra.mxu0 %vm3349_vm3, %v1702_v26  ;;  %6685 = vmatprep.subr.msk.bf16.mxu1 %vm3349_vm3, %v2509_v27  ;;  %vm3856_vm5 = vcmp.lt.s32.totalorder %v7931_v5, 17 }
 0x387   : > { %6549 = vmatpush3.bf16.xpose.msra.mxu0 %v3780_v2  ;;  %6552 = vmatprep.mubr.msk.bf16.mxu0 %vm3349_vm3, %v1696_v35 }
 0x388   : > { %6687 = vmatprep.subr.msk.bf16.mxu0 %vm3349_vm3, %v2512_v8 }
 0x38d   : > { %6543 = vmatpush3.bf16.xpose.msra.mxu1 %v3717_v23 }
 0x38e   : > { %6688 = vmatprep.subr.msk.bf16.mxu1 %vm4170_vm4, %v3311_v56 }
 0x38f   : > { %6551 = vmatpush3.bf16.xpose.msra.mxu0 %v3777_v48 }
 0x390   : > { %6690 = vmatprep.subr.msk.bf16.mxu0 %vm4170_vm4, %v3317_v1 }
 0x394   : > { %6545 = vmatmul.mubr.msk.bf16.vlgmr.msra.gmra.mxu1 %vm3349_vm3, %v1705_v22 }
 0x395   : > { %6557 = vmatpush3.bf16.msra.mxu1 %v4172_v57 }
 0x396   : > { %6553 = vmatmul.mubr.msk.bf16.vlgmr.msra.gmra.mxu0 %vm3349_vm3, %v1708_v59  ;;  %6558 = vmatprep.subr.bf16.mxu1 %v3295_v60 }
 0x397   : > { %6573 = vmatpush3.bf16.msra.mxu0 %v4286_v29 }
 0x398   : > { %6574 = vmatprep.subr.bf16.mxu0 %v3303_v13 }
 0x399   : > { %6559 = vmatpush3.bf16.msra.mxu1 %v3295_v60 }
 0x39a   : > { %6689 = vmatprep.subr.msk.bf16.mxu1 %vm4170_vm4, %v7926_v7 }
 0x39b   : > { %6575 = vmatpush3.bf16.msra.mxu0 %v3303_v13 }
 0x424   : > { %v6498_v49 = vpop.f32.mrf.mxu1 }
 0x425   : > { %v3832_v36 = vmul.f32 0.35355338, %v6498_v49 }
 0x426   : > { %v3396_v46 = vpop.f32.mrf.mxu1  ;;  %v6506_v61 = vpop.f32.mrf.mxu0 }
 0x427   : > { %v3830_v54 = vmul.f32 0.35355338, %v3396_v46  ;;  %v3835_v55 = vmul.f32 0.35355338, %v6506_v61  ;;  %v7936_v45 = vsel %vm3856_vm5, %v3832_v36, -1e+30 }
 0x428   : > { %v6499_v37 = vpop.f32.mrf.mxu1  ;;  %v3456_v24 = vpop.f32.mrf.mxu0  ;;  %v3890_v63 = vsel %vm3883_vm6, %v7936_v45, -inf }
 0x429   : > { %v3833_v51 = vmul.f32 0.35355338, %v3456_v24  ;;  %3891 = vmax.xlane.f32.xlu0 %v3890_v63  ;;  %v7942_v0 = vsel %vm3856_vm5, %v3830_v54, -1e+30  ;;  %v7946_v40 = vsel %vm3856_vm5, %v3835_v55, -1e+30 }
 0x42a   : > { %v3399_v21 = vpop.f32.mrf.mxu1  ;;  %v6507_v41 = vpop.f32.mrf.mxu0  ;;  %v3884_v43 = vsel %vm3883_vm6, %v7942_v0, -inf  ;;  %v3899_v58 = vsel %vm3883_vm6, %v7946_v40, -inf }
 0x42b   : > { %3885 = vmax.xlane.f32.xlu1 %v3884_v43  ;;  %v3831_v25 = vmul.f32 0.35355338, %v3399_v21  ;;  %v7954_v20 = vsel %vm3856_vm5, %v3833_v51, -1e+30 }
 0x42c   : > { %v3459_v44 = vpop.f32.mrf.mxu0  ;;  %v3893_v14 = vsel %vm3883_vm6, %v7954_v20, -inf }
 0x42d   : > { %v3834_v53 = vmul.f32 0.35355338, %v3459_v44  ;;  %3900 = vmax.xlane.f32.xlu0 %v3899_v58  ;;  %v7966_v18 = vsel %vm3856_vm5, %v3831_v25, -1e+30 }
 0x42e   : > { %v3887_v42 = vsel %vm3883_vm6, %v7966_v18, -inf }
 0x42f   : > { %v7958_v50 = vsel %vm3856_vm5, %v3834_v53, -1e+30 }
 0x430   : > { %v3896_v32 = vsel %vm3883_vm6, %v7958_v50, -inf }
 0x431   : > { %3894 = vmax.xlane.f32.xlu0 %v3893_v14  ;;  %3897 = vmax.xlane.f32.xlu1 %v3896_v32 }
 0x434   : > { %v6514_v39 = vpop.f32.mrf.mxu1 }
 0x435   : > { %v3838_v26 = vmul.f32 0.35355338, %v6514_v39  ;;  %3888 = vmax.xlane.f32.xlu0 %v3887_v42 }
 0x436   : > { %v3516_v27 = vpop.f32.mrf.mxu1  ;;  %v6522_v3 = vpop.f32.mrf.mxu0 }
 0x437   : > { %v3836_v35 = vmul.f32 0.35355338, %v3516_v27  ;;  %v3841_v2 = vmul.f32 0.35355338, %v6522_v3  ;;  %v7972_v8 = vsel %vm3856_vm5, %v3838_v26, -1e+30 }
 0x438   : > { %v6515_v23 = vpop.f32.mrf.mxu1  ;;  %v3576_v56 = vpop.f32.mrf.mxu0  ;;  %v3908_v4 = vsel %vm3883_vm6, %v7972_v8, -inf }
 0x439   : > { %v3839_v48 = vmul.f32 0.35355338, %v3576_v56  ;;  %3909 = vmax.xlane.f32.xlu1 %v3908_v4  ;;  %v7978_v1 = vsel %vm3856_vm5, %v3841_v2, -1e+30  ;;  %v7982_v62 = vsel %vm3856_vm5, %v3836_v35, -1e+30 }
 0x43a   : > { %v3519_v19 = vpop.f32.mrf.mxu1  ;;  %v6523_v22 = vpop.f32.mrf.mxu0  ;;  %v3917_v34 = vsel %vm3883_vm6, %v7978_v1, -inf  ;;  %v3902_v60 = vsel %vm3883_vm6, %v7982_v62, -inf }
 0x43b   : > { %v3837_v57 = vmul.f32 0.35355338, %v3519_v19  ;;  %3918 = vmax.xlane.f32.xlu0 %v3917_v34  ;;  %v7994_v13 = vsel %vm3856_vm5, %v3839_v48, -1e+30 }
 0x43c   : > { %v3579_v59 = vpop.f32.mrf.mxu0  ;;  %v3911_v49 = vsel %vm3883_vm6, %v7994_v13, -inf }
 0x43d   : > { %v3840_v11 = vmul.f32 0.35355338, %v3579_v59  ;;  %3903 = vmax.xlane.f32.xlu1 %v3902_v60  ;;  %v7990_v29 = vsel %vm3856_vm5, %v3837_v57, -1e+30 }
 0x43e   : > { %v3905_v17 = vsel %vm3883_vm6, %v7990_v29, -inf }
 0x43f   : > { %3906 = vmax.xlane.f32.xlu0 %v3905_v17  ;;  %v8000_v38 = vsel %vm3856_vm5, %v3840_v11, -1e+30 }
 0x440   : > { %v3914_v36 = vsel %vm3883_vm6, %v8000_v38, -inf }
 0x441   : > { %3912 = vmax.xlane.f32.xlu1 %v3911_v49 }
 0x443   : > { %3915 = vmax.xlane.f32.xlu0 %v3914_v36 }
 0x444   : > { %v6530_v46 = vpop.f32.mrf.mxu1 }
 0x445   : > { %v3844_v61 = vmul.f32 0.35355338, %v6530_v46 }
 0x446   : > { %v3636_v54 = vpop.f32.mrf.mxu1  ;;  %v6538_v55 = vpop.f32.mrf.mxu0 }
 0x447   : > { %v3842_v37 = vmul.f32 0.35355338, %v3636_v54  ;;  %v3847_v24 = vmul.f32 0.35355338, %v6538_v55  ;;  %v8008_v63 = vsel %vm3856_vm5, %v3844_v61, -1e+30 }
 0x448   : > { %v6531_v51 = vpop.f32.mrf.mxu1  ;;  %v3696_v21 = vpop.f32.mrf.mxu0  ;;  %v3926_v41 = vsel %vm3883_vm6, %v8008_v63, -inf }
 0x449   : > { %v3845_v43 = vmul.f32 0.35355338, %v3696_v21  ;;  %3927 = vmax.xlane.f32.xlu1 %v3926_v41  ;;  %v8014_v44 = vsel %vm3856_vm5, %v3847_v24, -1e+30  ;;  %v8018_v58 = vsel %vm3856_vm5, %v3842_v37, -1e+30 }
 0x44a   : > { %v3639_v25 = vpop.f32.mrf.mxu1  ;;  %v6539_v53 = vpop.f32.mrf.mxu0  ;;  %v3935_v14 = vsel %vm3883_vm6, %v8014_v44, -inf  ;;  %v3920_v42 = vsel %vm3883_vm6, %v8018_v58, -inf }
 0x44b   : > { %v3843_v32 = vmul.f32 0.35355338, %v3639_v25  ;;  %3936 = vmax.xlane.f32.xlu0 %v3935_v14  ;;  %v8030_v3 = vsel %vm3856_vm5, %v3845_v43, -1e+30 }
 0x44c   : > { %v3699_v39 = vpop.f32.mrf.mxu0  ;;  %v3929_v23 = vsel %vm3883_vm6, %v8030_v3, -inf }
 0x44d   : > { %v3846_v26 = vmul.f32 0.35355338, %v3699_v39  ;;  %3921 = vmax.xlane.f32.xlu1 %v3920_v42  ;;  %v8026_v27 = vsel %vm3856_vm5, %v3843_v32, -1e+30  ;;  %v8945_v39 = vld [vmem:[#allocation9_spill] sm:$0xff]  ;;  %v8946_v42 = vld [vmem:[#allocation7_spill] sm:$0xff] }
 0x44e   : > { %v3923_v35 = vsel %vm3883_vm6, %v8026_v27, -inf }
 0x44f   : > { %3924 = vmax.xlane.f32.xlu0 %v3923_v35  ;;  %v8036_v2 = vsel %vm3856_vm5, %v3846_v26, -1e+30  ;;  %v8082_v26 = vpop.permute.xlu1 %2529 }
 0x450   : > { %v3932_v56 = vsel %vm3883_vm6, %v8036_v2, -inf }
 0x451   : > { %3930 = vmax.xlane.f32.xlu1 %v3929_v23 }
 0x453   : > { %3933 = vmax.xlane.f32.xlu0 %v3932_v56 }
 0x454   : > { %v6546_v4 = vpop.f32.mrf.mxu1 }
 0x455   : > { %v3850_v48 = vmul.f32 0.35355338, %v6546_v4 }
 0x456   : > { %v3756_v19 = vpop.f32.mrf.mxu1  ;;  %v6554_v22 = vpop.f32.mrf.mxu0 }
 0x457   : > { %v3848_v34 = vmul.f32 0.35355338, %v3756_v19  ;;  %v3853_v57 = vmul.f32 0.35355338, %v6554_v22  ;;  %v8044_v59 = vsel %vm3856_vm5, %v3850_v48, -1e+30 }
 0x458   : > { %v6547_v60 = vpop.f32.mrf.mxu1  ;;  %v3816_v11 = vpop.f32.mrf.mxu0  ;;  %v3944_v17 = vsel %vm3883_vm6, %v8044_v59, -inf }
 0x459   : > { %v3851_v49 = vmul.f32 0.35355338, %v3816_v11  ;;  %3945 = vmax.xlane.f32.xlu1 %v3944_v17  ;;  %v8050_v36 = vsel %vm3856_vm5, %v3853_v57, -1e+30  ;;  %v8054_v46 = vsel %vm3856_vm5, %v3848_v34, -1e+30 }
 0x45a   : > { %v3759_v61 = vpop.f32.mrf.mxu1  ;;  %v6555_v54 = vpop.f32.mrf.mxu0  ;;  %v3953_v55 = vsel %vm3883_vm6, %v8050_v36, -inf  ;;  %v3938_v51 = vsel %vm3883_vm6, %v8054_v46, -inf }
 0x45b   : > { %v3849_v37 = vmul.f32 0.35355338, %v3759_v61  ;;  %3954 = vmax.xlane.f32.xlu0 %v3953_v55  ;;  %v8066_v43 = vsel %vm3856_vm5, %v3851_v49, -1e+30 }
 0x45c   : > { %v3819_v24 = vpop.f32.mrf.mxu0  ;;  %v3947_v14 = vsel %vm3883_vm6, %v8066_v43, -inf }
 0x45d   : > { %v3852_v21 = vmul.f32 0.35355338, %v3819_v24  ;;  %3939 = vmax.xlane.f32.xlu1 %v3938_v51  ;;  %v8062_v41 = vsel %vm3856_vm5, %v3849_v37, -1e+30 }
 0x45e   : > { %v3941_v25 = vsel %vm3883_vm6, %v8062_v41, -inf }
 0x45f   : > { %3942 = vmax.xlane.f32.xlu0 %v3941_v25  ;;  %v8072_v53 = vsel %vm3856_vm5, %v3852_v21, -1e+30 }
 0x460   : > { %v3950_v32 = vsel %vm3883_vm6, %v8072_v53, -inf }
 0x461   : > { %3948 = vmax.xlane.f32.xlu1 %v3947_v14 }
 0x463   : > { %3951 = vmax.xlane.f32.xlu0 %v3950_v32 }
 0x472   : > { %2541 = vrot.lane.b32.xlu1 %v8945_v39, %s6914_s19 }
 0x479   : > { %2535 = vrot.lane.b32.xlu0 %v8946_v42, %s6914_s19 }
 0x4b2   : > { %v3892_v35 = vpop.xlane.xlu0 %3891 }
 0x4b3   : > { %v3958_v5 = vsub.f32 %v7936_v45, %v3892_v35 }
 0x4b4   : > { %v3886_v23 = vpop.xlane.xlu1 %3885 }
 0x4b5   : > { %v3984_v56 = vmul.f32 1.442695, %v3958_v5  ;;  %v3956_v4 = vsub.f32 %v7942_v0, %v3886_v23 }
 0x4b6   : > { %v3901_v48 = vpop.xlane.xlu0 %3900 }
 0x4b7   : > { %6755 = vpow2.f32 %v3984_v56  ;;  %v3980_v19 = vmul.f32 1.442695, %v3956_v4  ;;  %v3961_v22 = vsub.f32 %v7946_v40, %v3901_v48 }
 0x4b9   : > { %6757 = vpow2.f32 %v3980_v19  ;;  %v3990_v34 = vmul.f32 1.442695, %v3961_v22 }
 0x4ba   : > { %v3895_v57 = vpop.xlane.xlu0 %3894  ;;  %v8088_v17 = vpop.xlane.xlu1 %3897 }
 0x4bb   : > { %6759 = vpow2.f32 %v3990_v34  ;;  %v3959_v60 = vsub.f32 %v7954_v20, %v3895_v57 }
 0x4bd   : > { %v3986_v11 = vmul.f32 1.442695, %v3959_v60 }
 0x4be   : > { %v3889_v49 = vpop.xlane.xlu0 %3888 }
 0x4bf   : > { %v3957_v45 = vsub.f32 %v7966_v18, %v3889_v49  ;;  %6761 = vpow2.f32 %v3986_v11 }
 0x4c1   : > { %v3982_v61 = vmul.f32 1.442695, %v3957_v45 }
 0x4c2   : > { %v8091_v0 = vpop.xlane.xlu1 %3909 }
 0x4c3   : > { %6763 = vpow2.f32 %v3982_v61 }
 0x4c4   : > { %v8093_v54 = vpop.eup %6755  ;;  %v3919_v40 = vpop.xlane.xlu0 %3918 }
 0x4c5   : > { %v3967_v55 = vsub.f32 %v7978_v1, %v3919_v40  ;;  %v4034_v37 = vsel %vm3883_vm6, %v8093_v54, 0.0 }
 0x4c6   : > { %v8098_v20 = vpop.eup %6757  ;;  %v3904_v24 = vpop.xlane.xlu1 %3903  ;;  %4035 = vadd.xlane.f32.xlu1 %v4034_v37 }
 0x4c7   : > { %v3962_v51 = vsub.f32 %v7982_v62, %v3904_v24  ;;  %v4002_v21 = vmul.f32 1.442695, %v3967_v55  ;;  %v4028_v39 = vsel %vm3883_vm6, %v8098_v20, 0.0 }
 0x4c8   : > { %v8101_v18 = vpop.eup %6759  ;;  %v3907_v25 = vpop.xlane.xlu0 %3906 }
 0x4c9   : > { %v3992_v14 = vmul.f32 1.442695, %v3962_v51  ;;  %v3963_v32 = vsub.f32 %v7990_v29, %v3907_v25  ;;  %v4043_v1 = vsel %vm3883_vm6, %v8101_v18, 0.0 }
 0x4ca   : > { %4029 = vadd.xlane.f32.xlu1 %v4028_v39  ;;  %4044 = vadd.xlane.f32.xlu0 %v4043_v1  ;;  %v8111_v23 = vpop.xlane.xlu1 %3912 }
 0x4cb   : > { %6765 = vpow2.f32 %v3992_v14  ;;  %v3994_v62 = vmul.f32 1.442695, %v3963_v32 }
 0x4cc   : > { %v3916_v42 = vpop.xlane.xlu0 %3915  ;;  %v8108_v35 = vpop.eup %6761  ;;  %6767 = vpow2.f32 %v4002_v21 }
 0x4cd   : > { %v3966_v5 = vsub.f32 %v8000_v38, %v3916_v42  ;;  %v4037_v29 = vsel %vm3883_vm6, %v8108_v35, 0.0  ;;  %6769 = vpow2.f32 %v3994_v62  ;;  %v3960_v42 = vsub.f32 %v7958_v50, %v8088_v17 }
 0x4ce   : > { %4038 = vadd.xlane.f32.xlu0 %v4037_v29 }
 0x4cf   : > { %v4000_v4 = vmul.f32 1.442695, %v3966_v5 }
 0x4d0   : > { %v8115_v56 = vpop.eup %6763 }
 0x4d1   : > { %v4031_v48 = vsel %vm3883_vm6, %v8115_v56, 0.0  ;;  %6771 = vpow2.f32 %v4000_v4  ;;  %v3988_v4 = vmul.f32 1.442695, %v3960_v42 }
 0x4d2   : > { %v8119_v19 = vpop.xlane.xlu1 %3927  ;;  %4032 = vadd.xlane.f32.xlu0 %v4031_v48  ;;  %v3964_v48 = vsub.f32 %v7972_v8, %v8091_v0  ;;  %v3965_v8 = vsub.f32 %v7994_v13, %v8111_v23 }
 0x4d4   : > { %v3937_v22 = vpop.xlane.xlu0 %3936 }
 0x4d5   : > { %v3973_v38 = vsub.f32 %v8014_v44, %v3937_v22  ;;  %v8947_v44 = vld [vmem:[#allocation10_spill] sm:$0xff] }
 0x4d6   : > { %v8122_v34 = vpop.xlane.xlu1 %3921 }
 0x4d7   : > { %v4014_v57 = vmul.f32 1.442695, %v3973_v38 }
 0x4d8   : > { %v8124_v60 = vpop.eup %6765  ;;  %v3925_v11 = vpop.xlane.xlu0 %3924 }
 0x4d9   : > { %6773 = vpow2.f32 %v4014_v57  ;;  %v3969_v49 = vsub.f32 %v8026_v27, %v3925_v11  ;;  %v4046_v45 = vsel %vm3883_vm6, %v8124_v60, 0.0  ;;  %v8129_v61 = vpop.eup %6767 }
 0x4da   : > { %v3931_v40 = vpop.xlane.xlu1 %3930  ;;  %4047 = vadd.xlane.f32.xlu0 %v4046_v45  ;;  %v4061_v27 = vsel %vm3883_vm6, %v8129_v61, 0.0  ;;  %v8137_v25 = vpop.eup %6769 }
 0x4db   : > { %v3971_v55 = vsub.f32 %v8030_v3, %v3931_v40  ;;  %2547 = vrot.lane.b32.xlu1 %v8947_v44, %s6914_s19  ;;  %v4006_v24 = vmul.f32 1.442695, %v3969_v49  ;;  %v4049_v3 = vsel %vm3883_vm6, %v8137_v25, 0.0  ;;  %v3996_v49 = vmul.f32 1.442695, %v3964_v48 }
 0x4dc   : > { %v3934_v37 = vpop.xlane.xlu0 %3933  ;;  %v3970_v44 = vsub.f32 %v8008_v63, %v8119_v19 }
 0x4dd   : > { %v4010_v51 = vmul.f32 1.442695, %v3971_v55  ;;  %v3972_v21 = vsub.f32 %v8036_v2, %v3934_v37 }
 0x4de   : > { %4062 = vadd.xlane.f32.xlu0 %v4061_v27  ;;  %v8141_v32 = vpop.eup %6771  ;;  %v4008_v23 = vmul.f32 1.442695, %v3970_v44 }
 0x4df   : > { %6775 = vpow2.f32 %v4010_v51  ;;  %v4012_v14 = vmul.f32 1.442695, %v3972_v21  ;;  %v4058_v2 = vsel %vm3883_vm6, %v8141_v32, 0.0 }
 0x4e0   : > { %6777 = vpow2.f32 %v4006_v24  ;;  %v3968_v24 = vsub.f32 %v8018_v58, %v8122_v34 }
 0x4e1   : > { %6779 = vpow2.f32 %v4012_v14 }
 0x4e2   : > { %4050 = vadd.xlane.f32.xlu0 %v4049_v3  ;;  %v3946_v0 = vpop.xlane.xlu1 %3945  ;;  %v4004_v21 = vmul.f32 1.442695, %v3968_v24 }
 0x4e4   : > { %v3955_v39 = vpop.xlane.xlu0 %3954 }
 0x4e5   : > { %v3979_v22 = vsub.f32 %v8050_v36, %v3955_v39 }
 0x4e6   : > { %v8145_v1 = vpop.eup %6773  ;;  %4059 = vadd.xlane.f32.xlu0 %v4058_v2  ;;  %v3940_v37 = vpop.xlane.xlu1 %3939 }
 0x4e7   : > { %v4079_v29 = vsel %vm3883_vm6, %v8145_v1, 0.0  ;;  %v4026_v36 = vmul.f32 1.442695, %v3979_v22  ;;  %v3974_v27 = vsub.f32 %v8054_v46, %v3940_v37 }
 0x4e8   : > { %v3943_v62 = vpop.xlane.xlu0 %3942 }
 0x4e9   : > { %v3975_v5 = vsub.f32 %v8062_v41, %v3943_v62  ;;  %v4016_v39 = vmul.f32 1.442695, %v3974_v27  ;;  %v3976_v62 = vsub.f32 %v8044_v59, %v3946_v0 }
 0x4ea   : > { %4080 = vadd.xlane.f32.xlu0 %v4079_v29  ;;  %v3949_v63 = vpop.xlane.xlu1 %3948 }
 0x4eb   : > { %v4018_v38 = vmul.f32 1.442695, %v3975_v5  ;;  %v3977_v58 = vsub.f32 %v8066_v43, %v3949_v63  ;;  %v4020_v48 = vmul.f32 1.442695, %v3976_v62  ;;  %v8948_v63 = vld [vmem:[#allocation8_spill] sm:$0xff] }
 0x4ec   : > { %v8155_v57 = vpop.eup %6775  ;;  %v3952_v11 = vpop.xlane.xlu0 %3951 }
 0x4ed   : > { %6781 = vpow2.f32 %v4018_v38  ;;  %v3978_v50 = vsub.f32 %v8072_v53, %v3952_v11  ;;  %v4073_v41 = vsel %vm3883_vm6, %v8155_v57, 0.0  ;;  %v8160_v17 = vpop.eup %6777  ;;  %v3998_v53 = vmul.f32 1.442695, %v3965_v8 }
 0x4ee   : > { %6783 = vpow2.f32 %v3988_v4  ;;  %4074 = vadd.xlane.f32.xlu0 %v4073_v41  ;;  %v4067_v40 = vsel %vm3883_vm6, %v8160_v17, 0.0  ;;  %v8166_v55 = vpop.eup %6779  ;;  %v4022_v5 = vmul.f32 1.442695, %v3977_v58 }
 0x4ef   : > { %v4024_v45 = vmul.f32 1.442695, %v3978_v50  ;;  %v4076_v13 = vsel %vm3883_vm6, %v8166_v55, 0.0 }
 0x4f1   : > { %6785 = vpow2.f32 %v4024_v45 }
 0x4f2   : > { %6787 = vpow2.f32 %v3996_v49  ;;  %4068 = vadd.xlane.f32.xlu0 %v4067_v40  ;;  %v2542_v40 = vpop.permute.xlu1 %2541 }
 0x4f3   : > { %6789 = vpow2.f32 %v4026_v36  ;;  %v2593_v58 = vshrl.u32 %v2542_v40, 16 }
 0x4f4   : > { %6791 = vpow2.f32 %v3998_v53  ;;  %v2536_v53 = vpop.permute.xlu0 %2535 }
 0x4f5   : > { %6793 = vpow2.f32 %v4008_v23  ;;  %v2583_v37 = vpack.i.b16 %v2536_v53, %v8082_v26 }
 0x4f6   : > { %4077 = vadd.xlane.f32.xlu0 %v4076_v13  ;;  %6795 = vpow2.f32 %v4004_v21  ;;  %v2586_v13 = vshrl.u32 %v2536_v53, 16  ;;  %v2585_v21 = vshrl.u32 %v8082_v26, 16 }
 0x4f7   : > { %6797 = vpow2.f32 %v4016_v39 }
 0x4f8   : > { %6799 = vpow2.f32 %v4022_v5  ;;  %v2587_v27 = vpack.i.b16 %v2586_v13, %v2585_v21  ;;  %v2868_v5 = vrot.slane %v2583_v37, %v7191_v15 }
 0x4f9   : > { %6801 = vpow2.f32 %v4020_v48 }
 0x4fa   : > { %v8174_v51 = vpop.eup %6781  ;;  %v2927_v26 = vcombine.high %v2587_v27, %v8948_v63 }
 0x4fb   : > { %v8177_v14 = vpop.eup %6783  ;;  %v4085_v19 = vsel %vm3883_vm6, %v8174_v51, 0.0 }
 0x4fc   : > { %4086 = vadd.xlane.f32.xlu0 %v4085_v19  ;;  %v4040_v34 = vsel %vm3883_vm6, %v8177_v14, 0.0  ;;  %v2861_v19 = vcombine.high %v2583_v37, %v8948_v63 }
 0x4fe   : > { %v8181_v3 = vpop.eup %6785 }
 0x4ff   : > { %v8186_v2 = vpop.eup %6787  ;;  %4041 = vadd.xlane.f32.xlu1 %v4040_v34  ;;  %v4094_v46 = vsel %vm3883_vm6, %v8181_v3, 0.0 }
 0x500   : > { %v8190_v42 = vpop.eup %6789  ;;  %4095 = vadd.xlane.f32.xlu0 %v4094_v46  ;;  %v4052_v29 = vsel %vm3883_vm6, %v8186_v2, 0.0 }
 0x501   : > { %v8195_v43 = vpop.eup %6791  ;;  %v4097_v4 = vsel %vm3883_vm6, %v8190_v42, 0.0 }
 0x502   : > { %v4055_v22 = vsel %vm3883_vm6, %v8195_v43, 0.0  ;;  %v8201_v38 = vpop.eup %6793 }
 0x503   : > { %4053 = vadd.xlane.f32.xlu1 %v4052_v29  ;;  %v4070_v59 = vsel %vm3883_vm6, %v8201_v38, 0.0  ;;  %v8205_v11 = vpop.eup %6795 }
 0x504   : > { %4098 = vadd.xlane.f32.xlu0 %v4097_v4  ;;  %v4064_v50 = vsel %vm3883_vm6, %v8205_v11, 0.0  ;;  %v8209_v41 = vpop.eup %6797 }
 0x505   : > { %v4082_v49 = vsel %vm3883_vm6, %v8209_v41, 0.0  ;;  %v8213_v8 = vpop.eup %6799 }
 0x506   : > { %v4091_v0 = vsel %vm3883_vm6, %v8213_v8, 0.0  ;;  %v8217_v36 = vpop.eup %6801 }
 0x507   : > { %4056 = vadd.xlane.f32.xlu1 %v4055_v22  ;;  %v4088_v45 = vsel %vm3883_vm6, %v8217_v36, 0.0  ;;  %v2875_v22 = vrot.slane %v2861_v19, %v7191_v15 }
 0x50b   : > { %4071 = vadd.xlane.f32.xlu1 %v4070_v59 }
 0x50f   : > { %4065 = vadd.xlane.f32.xlu1 %v4064_v50 }
 0x513   : > { %4083 = vadd.xlane.f32.xlu1 %v4082_v49 }
 0x517   : > { %4092 = vadd.xlane.f32.xlu1 %v4091_v0 }
 0x51b   : > { %4089 = vadd.xlane.f32.xlu1 %v4088_v45 }
 0x54f   : > { %v4036_v44 = vpop.xlane.xlu1 %4035 }
 0x550   : > { %6803 = vrcp.f32 %v4036_v44 }
 0x553   : > { %v4030_v23 = vpop.xlane.xlu1 %4029  ;;  %v8222_v24 = vpop.xlane.xlu0 %4044 }
 0x554   : > { %6805 = vrcp.f32 %v4030_v23  ;;  %v2941_v23 = vrot.slane %v2927_v26, %v7191_v15 }
 0x557   : > { %v2548_v39 = vpop.permute.xlu1 %2547  ;;  %v8226_v62 = vpop.xlane.xlu0 %4038 }
 0x558   : > { %v2591_v34 = vpack.i.b16 %v2548_v39, %v2542_v40  ;;  %v2594_v46 = vshrl.u32 %v2548_v39, 16  ;;  %v2934_v40 = vrot.slane %v2587_v27, %v7191_v15 }
 0x55a   : > { %v2595_v29 = vpack.i.b16 %v2594_v46, %v2593_v58  ;;  %v2876_v4 = vcombine.high %v2591_v34, %v8948_v63  ;;  %v2883_v48 = vrot.slane %v2591_v34, %v7191_v15 }
 0x55b   : > { %v4033_v45 = vpop.xlane.xlu0 %4032 }
 0x55c   : > { %v2890_v59 = vrot.slane %v2876_v4, %v7191_v15  ;;  %v2891_v50 = vcombine.low %v2868_v5, %v2883_v48  ;;  %v2892_v49 = vcombine.high %v2868_v5, %v2883_v48  ;;  %v2942_v0 = vcombine.high %v2595_v29, %v8948_v63 }
 0x55d   : > { %v2949_v53 = vrot.slane %v2595_v29, %v7191_v15  ;;  %6807 = vrcp.f32 %v4033_v45 }
 0x55e   : > { %v2899_v44 = vrot.slane %v2891_v50, %v7210_v33  ;;  %v2906_v37 = vrot.slane %v2892_v49, %v7210_v33  ;;  %v2907_v13 = vcombine.low %v2875_v22, %v2890_v59  ;;  %v2908_v21 = vcombine.high %v2875_v22, %v2890_v59 }
 0x55f   : > { %v2956_v19 = vrot.slane %v2942_v0, %v7191_v15  ;;  %v2957_v39 = vcombine.low %v2934_v40, %v2949_v53  ;;  %v2958_v58 = vcombine.high %v2934_v40, %v2949_v53 }
 0x560   : > { %v2915_v63 = vrot.slane %v2907_v13, %v7210_v33  ;;  %v2922_v34 = vrot.slane %v2908_v21, %v7210_v33  ;;  %v3159_v27 = vcombine.low %v2899_v44, %v2906_v37  ;;  %v6319_v46 = vcombine.high %v2899_v44, %v2906_v37 }
 0x561   : > { %v2965_v5 = vrot.slane %v2957_v39, %v7210_v33  ;;  %v2972_v29 = vrot.slane %v2958_v58, %v7210_v33  ;;  %v2973_v4 = vcombine.low %v2941_v23, %v2956_v19  ;;  %v2974_v48 = vcombine.high %v2941_v23, %v2956_v19  ;;  %v6804_v23 = vpop.eup %6803 }
 0x562   : > { %v3166_v22 = vrot.slane %v3159_v27, %v7191_v15  ;;  %v3174_v26 = vrot.slane %v6319_v46, %v7191_v15  ;;  %v3243_v59 = vcombine.low %v2915_v63, %v2922_v34  ;;  %v6322_v50 = vcombine.high %v2915_v63, %v2922_v34 }
 0x563   : > { %v2981_v49 = vrot.slane %v2973_v4, %v7210_v33  ;;  %v2988_v0 = vrot.slane %v2974_v48, %v7210_v33  ;;  %v3209_v45 = vcombine.low %v2965_v5, %v2972_v29  ;;  %v6321_v40 = vcombine.high %v2965_v5, %v2972_v29  ;;  %v4048_v53 = vpop.xlane.xlu0 %4047  ;;  %v6806_v5 = vpop.eup %6805 }
 0x564   : > { %v3250_v44 = vrot.slane %v3243_v59, %v7191_v15  ;;  %v3258_v37 = vrot.slane %v6322_v50, %v7191_v15  ;;  %v3183_v19 = vcombine.low %v3166_v22, %v3174_v26  ;;  %v3182_v29 = vrot.slane %v3175_v10, %v7210_v33 }
 0x565   : > { %v3268_v13 = vcombine.low %v2981_v49, %v2988_v0  ;;  %v6323_v21 = vcombine.high %v2981_v49, %v2988_v0  ;;  %v3216_v39 = vrot.slane %v3209_v45, %v7191_v15  ;;  %v3224_v58 = vrot.slane %v6321_v40, %v7191_v15 }
 0x566   : > { %v3259_v46 = vcombine.low %v3250_v44, %v3258_v37  ;;  %v3190_v4 = vrot.slane %v3183_v19, %v7210_v33  ;;  %v4126_v26 = vmul.f32 %v6804_v23, %v8093_v54  ;;  %6809 = vrcp.f32 %v4048_v53 }
 0x567   : > { %v3275_v63 = vrot.slane %v3268_v13, %v7191_v15  ;;  %v3283_v34 = vrot.slane %v6323_v21, %v7191_v15  ;;  %v4063_v27 = vpop.xlane.xlu0 %4062  ;;  %v3233_v48 = vcombine.low %v3216_v39, %v3224_v58  ;;  %v3232_v49 = vrot.slane %v3225_v6, %v7210_v33 }
 0x568   : > { %v3191_v50 = vcombine.low %v3182_v29, %v3190_v4  ;;  %v4124_v52 = vmul.f32 %v6806_v5, %v8098_v20  ;;  %v8269_v10 = vrot.slane %v3259_v46, %v7210_v33  ;;  %v3192_v53 = vcombine.high %v3182_v29, %v3190_v4 }
 0x569   : > { %v3284_v22 = vcombine.low %v3275_v63, %v3283_v34  ;;  %v3240_v0 = vrot.slane %v3233_v48, %v7210_v33  ;;  %v4149_v12 = vpack.c.bf16 %v4126_v26, %v4126_v26  ;;  %v4229_v13 = vsel %vm4170_vm4, %v7926_v7, 0 }
 0x56a   : > { %v6808_v59 = vpop.eup %6807  ;;  %v3325_v20 = vshrl.u32 %v3191_v50, 16  ;;  %v3333_v19 = vshrl.u32 %v3192_v53, 16 }
 0x56b   : > { %v4051_v45 = vpop.xlane.xlu0 %4050  ;;  %v4125_v9 = vmul.f32 %v6808_v59, %v8115_v56  ;;  %v8272_v54 = vrot.slane %v3284_v22, %v7210_v33  ;;  %v3241_v40 = vcombine.low %v3232_v49, %v3240_v0  ;;  %v3242_v56 = vcombine.high %v3232_v49, %v3240_v0 }
 0x56c   : > { %6811 = vrcp.f32 %v4051_v45 }
 0x56d   : > { %v4148_v44 = vpack.c.bf16 %v4125_v9, %v4124_v52  ;;  %v8276_v28 = vpack.i.b16 %v8272_v54, %v8269_v10  ;;  %v8278_v6 = vpack.i.b16 %v3241_v40, %v3191_v50  ;;  %v3326_v37 = vshrl.u32 %v3241_v40, 16 }
 0x56e   : > { %v8288_v23 = vpack.i.b16 %v3242_v56, %v3192_v53  ;;  %v3334_v39 = vshrl.u32 %v3242_v56, 16  ;;  %6813 = vrcp.f32 %v8222_v24 }
 0x56f   : > { %6560 = vmatprep.mubr.msk.bf16.mxu1 %vm3883_vm6, %v4148_v44  ;;  %6692 = vmatprep.subr.msk.bf16.mxu0 %vm4170_vm4, %v8276_v28  ;;  %v8286_v21 = vpack.i.b16 %v3326_v37, %v3325_v20  ;;  %v4060_v63 = vpop.xlane.xlu0 %4059  ;;  %6815 = vrcp.f32 %v8226_v62 }
 0x570   : > { %6561 = vmatmul.mubr.msk.bf16.vlgmr.msra.gmra.mxu1 %vm3883_vm6, %v4149_v12  ;;  %v8291_v58 = vpack.i.b16 %v3334_v39, %v3333_v19 }
 0x571   : > { %6565 = vmatpush3.bf16.msra.mxu1 %v4229_v13 }
 0x572   : > { %6566 = vmatprep.subr.bf16.mxu1 %v7860_v30 }
 0x573   : > { %v6810_v7 = vpop.eup %6809  ;;  %v4081_v46 = vpop.xlane.xlu0 %4080 }
 0x574   : > { %v4130_v5 = vmul.f32 %v6810_v7, %v8124_v60  ;;  %v3292_v7 = vcombine.high %v8272_v54, %v8925_v31 }
 0x575   : > { %6567 = vmatpush3.bf16.msra.mxu1 %v7860_v30 }
 0x576   : > { %6691 = vmatprep.subr.msk.bf16.mxu1 %vm4170_vm4, %v7820_v16 }
 0x577   : > { %v4075_v48 = vpop.xlane.xlu0 %4074 }
 0x579   : > { %v6812_v34 = vpop.eup %6811 }
 0x57a   : > { %v4131_v29 = vmul.f32 %v6812_v34, %v8137_v25 }
 0x57b   : > { %v4069_v22 = vpop.xlane.xlu0 %4068  ;;  %v6814_v25 = vpop.eup %6813 }
 0x57c   : > { %v4152_v4 = vpack.c.bf16 %v4131_v29, %v4130_v5  ;;  %v6816_v49 = vpop.eup %6815  ;;  %v4129_v62 = vmul.f32 %v6814_v25, %v8101_v18  ;;  %v4343_v18 = vsel %vm4170_vm4, %v7820_v16, 0  ;;  %v4400_v16 = vsel %vm4170_vm4, %v8276_v28, 0 }
 0x57d   : > { %v4127_v52 = vmul.f32 %v6816_v49, %v8108_v35  ;;  %v3341_v35 = vshrl.u32 %v8272_v54, 16  ;;  %v3267_v54 = vcombine.high %v8269_v10, %v8925_v31 }
 0x57e   : > { %6576 = vmatprep.mubr.msk.bf16.mxu0 %vm3883_vm6, %v4152_v4  ;;  %v4151_v44 = vpack.c.bf16 %v4129_v62, %v4129_v62 }
 0x57f   : > { %v4078_v26 = vpop.xlane.xlu0 %4077 }
 0x585   : > { %v4087_v50 = vpop.xlane.xlu0 %4086 }
 0x588   : > { %v4042_v30 = vpop.xlane.xlu1 %4041 }
 0x589   : > { %6817 = vrcp.f32 %v4042_v30  ;;  %v4096_v45 = vpop.xlane.xlu0 %4095  ;;  %v3345_v30 = vpack.i.b16 %v3292_v7, %v3267_v54 }
 0x58c   : > { %v4054_v59 = vpop.xlane.xlu1 %4053 }
 0x58d   : > { %6819 = vrcp.f32 %v4054_v59  ;;  %v4099_v20 = vpop.xlane.xlu0 %4098 }
 0x58e   : > { %6821 = vrcp.f32 %v4063_v27 }
 0x58f   : > { %6823 = vrcp.f32 %v4060_v63  ;;  %v3340_v63 = vshrl.u32 %v8269_v10, 16  ;;  %v3347_v10 = vshrl.u32 %v3292_v7, 16 }
 0x590   : > { %6825 = vrcp.f32 %v4078_v26  ;;  %v4057_v60 = vpop.xlane.xlu1 %4056 }
 0x591   : > { %6827 = vrcp.f32 %v4057_v60  ;;  %v3342_v4 = vpack.i.b16 %v3341_v35, %v3340_v63 }
 0x592   : > { %6829 = vrcp.f32 %v4075_v48 }
 0x593   : > { %6831 = vrcp.f32 %v4081_v46  ;;  %v4457_v26 = vsel %vm4170_vm4, %v3342_v4, 0 }
 0x594   : > { %v4072_v0 = vpop.xlane.xlu1 %4071 }
 0x595   : > { %6833 = vrcp.f32 %v4072_v0 }
 0x596   : > { %v6818_v24 = vpop.eup %6817  ;;  %6835 = vrcp.f32 %v4069_v22 }
 0x597   : > { %v4128_v27 = vmul.f32 %v6818_v24, %v8177_v14 }
 0x598   : > { %v4066_v9 = vpop.xlane.xlu1 %4065 }
 0x599   : > { %6837 = vrcp.f32 %v4066_v9  ;;  %v4150_v40 = vpack.c.bf16 %v4128_v27, %v4127_v52 }
 0x59a   : > { %v6820_v53 = vpop.eup %6819  ;;  %6839 = vrcp.f32 %v4087_v50 }
 0x59b   : > { %v6822_v12 = vpop.eup %6821  ;;  %6568 = vmatprep.mubr.msk.bf16.mxu1 %vm3883_vm6, %v4150_v40  ;;  %v4132_v37 = vmul.f32 %v6820_v53, %v8186_v2 }
 0x59c   : > { %v6824_v56 = vpop.eup %6823  ;;  %v4084_v13 = vpop.xlane.xlu1 %4083  ;;  %6569 = vmatmul.mubr.msk.bf16.vlgmr.msra.gmra.mxu1 %vm3883_vm6, %v4151_v44  ;;  %v4135_v2 = vmul.f32 %v6822_v12, %v8129_v61 }
 0x59d   : > { %v6826_v14 = vpop.eup %6825  ;;  %6841 = vrcp.f32 %v4084_v13  ;;  %6581 = vmatpush3.bf16.msra.mxu1 %v4343_v18  ;;  %v4153_v19 = vpack.c.bf16 %v4132_v37, %v4132_v37  ;;  %v4134_v5 = vmul.f32 %v6824_v56, %v8141_v32  ;;  %v8949_v56 = vmov 0.0  }
 0x59e   : > { %v6828_v39 = vpop.eup %6827  ;;  %6843 = vrcp.f32 %v4099_v20  ;;  %6582 = vmatprep.subr.bf16.mxu1 %v7862_v47  ;;  %v4140_v48 = vmul.f32 %v6826_v14, %v8166_v55 }
 0x59f   : > { %v6830_v34 = vpop.eup %6829  ;;  %6845 = vrcp.f32 %v4096_v45  ;;  %6577 = vmatmul.mubr.msk.bf16.vlgmr.msra.gmra.mxu0 %vm3883_vm6, %v4153_v19  ;;  %v4133_v46 = vmul.f32 %v6828_v39, %v8195_v43  ;;  %v4155_v43 = vpack.c.bf16 %v4135_v2, %v4135_v2 }
 0x5a0   : > { %6589 = vmatpush3.bf16.msra.mxu0 %v4400_v16  ;;  %v4093_v29 = vpop.xlane.xlu1 %4092  ;;  %v6832_v22 = vpop.eup %6831  ;;  %v4139_v32 = vmul.f32 %v6830_v34, %v8155_v57  ;;  %v3346_v57 = vshrl.u32 %v3267_v54, 16 }
 0x5a1   : > { %6847 = vrcp.f32 %v4093_v29  ;;  %6583 = vmatpush3.bf16.msra.mxu1 %v7862_v47  ;;  %6590 = vmatprep.subr.bf16.mxu0 %v8278_v6  ;;  %v4154_v61 = vpack.c.bf16 %v4134_v5, %v4133_v46 }
 0x5a2   : > { %6693 = vmatprep.subr.msk.bf16.mxu1 %vm4170_vm4, %v3342_v4  ;;  %v6834_v28 = vpop.eup %6833  ;;  %v4158_v59 = vpack.c.bf16 %v4140_v48, %v4139_v32  ;;  %v3348_v45 = vpack.i.b16 %v3347_v10, %v3346_v57 }
 0x5a3   : > { %6584 = vmatprep.mubr.msk.bf16.mxu1 %vm3883_vm6, %v4154_v61  ;;  %v6836_v55 = vpop.eup %6835  ;;  %v4138_v60 = vmul.f32 %v6834_v28, %v8201_v38 }
 0x5a4   : > { %6591 = vmatpush3.bf16.msra.mxu0 %v8278_v6  ;;  %v4090_v47 = vpop.xlane.xlu1 %4089  ;;  %6585 = vmatmul.mubr.msk.bf16.vlgmr.msra.gmra.mxu1 %vm3883_vm6, %v4155_v43  ;;  %v4141_v6 = vmul.f32 %v6832_v22, %v8145_v1  ;;  %v4137_v49 = vmul.f32 %v6836_v55, %v8160_v17  ;;  %v4514_v17 = vsel %vm4170_vm4, %v3345_v30, 0 }
 0x5a5   : > { %6849 = vrcp.f32 %v4090_v47  ;;  %6597 = vmatpush3.bf16.msra.mxu1 %v4457_v26  ;;  %6694 = vmatprep.subr.msk.bf16.mxu0 %vm4170_vm4, %v3345_v30  ;;  %v4157_v52 = vpack.c.bf16 %v4138_v60, %v4138_v60 }
 0x5a6   : > { %v6838_v50 = vpop.eup %6837  ;;  %6598 = vmatprep.subr.bf16.mxu1 %v8286_v21  ;;  %6600 = vmatprep.mubr.msk.bf16.mxu1 %vm3883_vm6, %v4158_v59  ;;  %v4159_v27 = vpack.c.bf16 %v4141_v6, %v4141_v6 }
 0x5a7   : > { %v4136_v25 = vmul.f32 %v6838_v50, %v8205_v11  ;;  %v6840_v0 = vpop.eup %6839 }
 0x5a8   : > { %v4143_v1 = vmul.f32 %v6840_v0, %v8174_v51 }
 0x5a9   : > { %6599 = vmatpush3.bf16.msra.mxu1 %v8286_v21  ;;  %v4156_v24 = vpack.c.bf16 %v4137_v49, %v4136_v25  ;;  %v4571_v21 = vsel %vm4170_vm4, %v3348_v45, 0 }
 0x5aa   : > { %v6842_v62 = vpop.eup %6841  ;;  %6695 = vmatprep.subr.msk.bf16.mxu1 %vm4170_vm4, %v3348_v45 }
 0x5ab   : > { %v6844_v9 = vpop.eup %6843  ;;  %6592 = vmatprep.mubr.msk.bf16.mxu0 %vm3883_vm6, %v4156_v24  ;;  %v4142_v38 = vmul.f32 %v6842_v62, %v8209_v41 }
 0x5ac   : > { %v6846_v11 = vpop.eup %6845  ;;  %6593 = vmatmul.mubr.msk.bf16.vlgmr.msra.gmra.mxu0 %vm3883_vm6, %v4157_v52  ;;  %6601 = vmatmul.mubr.msk.bf16.vlgmr.msra.gmra.mxu1 %vm3883_vm6, %v4159_v27  ;;  %v4147_v41 = vmul.f32 %v6844_v9, %v8190_v42 }
 0x5ad   : > { %6605 = vmatpush3.bf16.msra.mxu0 %v4514_v17  ;;  %6613 = vmatpush3.bf16.msra.mxu1 %v4571_v21  ;;  %v4160_v40 = vpack.c.bf16 %v4143_v1, %v4142_v38  ;;  %v4146_v44 = vmul.f32 %v6846_v11, %v8181_v3 }
 0x5ae   : > { %v6848_v53 = vpop.eup %6847  ;;  %6606 = vmatprep.subr.bf16.mxu0 %v8288_v23  ;;  %6614 = vmatprep.subr.bf16.mxu1 %v8291_v58  ;;  %v4163_v37 = vpack.c.bf16 %v4147_v41, %v4147_v41 }
 0x5af   : > { %6608 = vmatprep.mubr.msk.bf16.mxu0 %vm3883_vm6, %v4160_v40  ;;  %v4145_v51 = vmul.f32 %v6848_v53, %v8213_v8 }
 0x5b1   : > { %6607 = vmatpush3.bf16.msra.mxu0 %v8288_v23  ;;  %6615 = vmatpush3.bf16.msra.mxu1 %v8291_v58  ;;  %v4162_v12 = vpack.c.bf16 %v4146_v44, %v4145_v51 }
 0x5b2   : > { %v6850_v20 = vpop.eup %6849  ;;  %6620 = vmatprep.subr.bf16.mxu0 %v8949_v56  ;;  %6636 = vmatprep.subr.bf16.mxu1 %v8949_v56 }
 0x5b3   : > { %6616 = vmatprep.mubr.msk.bf16.mxu1 %vm3883_vm6, %v4162_v12  ;;  %v4144_v42 = vmul.f32 %v6850_v20, %v8217_v36 }
 0x5b4   : > { %6617 = vmatmul.mubr.msk.bf16.vlgmr.msra.gmra.mxu1 %vm3883_vm6, %v4163_v37 }
 0x5b5   : > { %v4161_v8 = vpack.c.bf16 %v4144_v42, %v4144_v42  ;;  %6640 = vmatprep.mubr.msk.bf16.mxu1 %vm6906_vm2, %v8949_v56 }
 0x5b7   : > { %6609 = vmatmul.mubr.msk.bf16.vlgmr.msra.gmra.mxu0 %vm3883_vm6, %v4161_v8 }
 0x5b8   : > { %6624 = vmatprep.mubr.msk.bf16.mxu0 %vm6906_vm2, %v8949_v56 }
 0x630   : > { %v6562_v3 = vpop.f32.mrf.mxu1 }
 0x631   : > { %v4761_v35 = vpack.c.bf16 %v6562_v3, %v6562_v3 }
 0x632   : > { %v4208_v23 = vpop.f32.mrf.mxu1 }
 0x633   : > { %v4768_v2 = vrot.slane %v4761_v35, %v7191_v15 }
 0x634   : > { %v6563_v58 = vpop.f32.mrf.mxu1 }
 0x636   : > { %v4211_v13 = vpop.f32.mrf.mxu1 }
 0x637   : > { %v4621_v7 = vpack.c.bf16 %v4211_v13, %v4208_v23 }
 0x639   : > { %v4629_v22 = vcombine.high %v4621_v7, %v8925_v31  ;;  %v4636_v47 = vrot.slane %v4621_v7, %v7191_v15 }
 0x63b   : > { %v4643_v25 = vrot.slane %v4629_v22, %v7191_v15 }
 0x65c   : > { %v6570_v18 = vpop.f32.mrf.mxu1 }
 0x65d   : > { %v4795_v46 = vpack.c.bf16 %v6570_v18, %v6570_v18 }
 0x65e   : > { %v4265_v14 = vpop.f32.mrf.mxu1 }
 0x65f   : > { %v6578_v19 = vpop.f32.mrf.mxu0  ;;  %v4802_v28 = vrot.slane %v4795_v46, %v7191_v15 }
 0x660   : > { %v4769_v36 = vpack.c.bf16 %v6578_v19, %v6578_v19  ;;  %v6571_v39 = vpop.f32.mrf.mxu1 }
 0x661   : > { %v4322_v63 = vpop.f32.mrf.mxu0 }
 0x662   : > { %v4776_v34 = vrot.slane %v4769_v36, %v7191_v15  ;;  %v4268_v16 = vpop.f32.mrf.mxu1 }
 0x663   : > { %v6579_v5 = vpop.f32.mrf.mxu0  ;;  %v4622_v30 = vpack.c.bf16 %v4268_v16, %v4265_v14 }
 0x664   : > { %v4777_v29 = vcombine.low %v4768_v2, %v4776_v34  ;;  %v4778_v4 = vcombine.high %v4768_v2, %v4776_v34  ;;  %v6586_v48 = vpop.f32.mrf.mxu1 }
 0x665   : > { %v4803_v61 = vpack.c.bf16 %v6586_v48, %v6586_v48  ;;  %v4325_v54 = vpop.f32.mrf.mxu0  ;;  %v4695_v0 = vcombine.high %v4622_v30, %v8925_v31  ;;  %v4702_v16 = vrot.slane %v4622_v30, %v7191_v15 }
 0x666   : > { %v4623_v43 = vpack.c.bf16 %v4325_v54, %v4322_v63  ;;  %v4379_v32 = vpop.f32.mrf.mxu1  ;;  %v4785_v26 = vrot.slane %v4777_v29, %v7210_v33  ;;  %v4792_v59 = vrot.slane %v4778_v4, %v7210_v33 }
 0x667   : > { %v4810_v55 = vrot.slane %v4803_v61, %v7191_v15  ;;  %v4709_v29 = vrot.slane %v4695_v0, %v7191_v15 }
 0x668   : > { %v6587_v10 = vpop.f32.mrf.mxu1  ;;  %v4644_v60 = vcombine.high %v4623_v43, %v8925_v31  ;;  %v4651_v6 = vrot.slane %v4623_v43, %v7191_v15  ;;  %v4793_v52 = vcombine.high %v4785_v26, %v8925_v31  ;;  %v4794_v27 = vcombine.high %v4792_v59, %v8925_v31 }
 0x669   : > { %v4811_v50 = vcombine.low %v4802_v28, %v4810_v55  ;;  %v4812_v57 = vcombine.high %v4802_v28, %v4810_v55  ;;  %v5097_v17 = vshrl.u32 %v4785_v26, 16  ;;  %v5113_v41 = vshrl.u32 %v4792_v59, 16 }
 0x66a   : > { %v4382_v49 = vpop.f32.mrf.mxu1  ;;  %v4659_v62 = vcombine.low %v4636_v47, %v4651_v6  ;;  %v4658_v9 = vrot.slane %v4644_v60, %v7191_v15  ;;  %v4660_v38 = vcombine.high %v4636_v47, %v4651_v6  ;;  %v5105_v7 = vshrl.u32 %v4793_v52, 16 }
 0x66b   : > { %v4819_v45 = vrot.slane %v4811_v50, %v7210_v33  ;;  %v4826_v24 = vrot.slane %v4812_v57, %v7210_v33  ;;  %v4624_v12 = vpack.c.bf16 %v4382_v49, %v4379_v32  ;;  %v5121_v34 = vshrl.u32 %v4794_v27, 16 }
 0x66c   : > { %v8382_v1 = vpop.f32.mrf.mxu0  ;;  %v8384_v11 = vpop.f32.mrf.mxu1  ;;  %v8389_v44 = vrot.slane %v4659_v62, %v7210_v33  ;;  %v8394_v23 = vrot.slane %v4660_v38, %v7210_v33  ;;  %v4675_v35 = vcombine.low %v4643_v25, %v4658_v9  ;;  %v4676_v63 = vcombine.high %v4643_v25, %v4658_v9 }
 0x66d   : > { %v4827_v21 = vcombine.high %v4819_v45, %v8925_v31  ;;  %v4828_v40 = vcombine.high %v4826_v24, %v8925_v31  ;;  %v5098_v53 = vshrl.u32 %v4819_v45, 16  ;;  %v5114_v51 = vshrl.u32 %v4826_v24, 16 }
 0x66e   : > { %v4436_v20 = vpop.f32.mrf.mxu0  ;;  %v8391_v37 = vpop.f32.mrf.mxu1  ;;  %v5095_v42 = vpack.i.b16 %v4819_v45, %v4785_v26  ;;  %v5111_v3 = vpack.i.b16 %v4826_v24, %v4792_v59  ;;  %v8402_v2 = vcombine.high %v8389_v44, %v8925_v31  ;;  %v8406_v46 = vrot.slane %v4675_v35, %v7210_v33 }
 0x66f   : > { %v5103_v8 = vpack.i.b16 %v4827_v21, %v4793_v52  ;;  %v5106_v58 = vshrl.u32 %v4827_v21, 16  ;;  %v5119_v13 = vpack.i.b16 %v4828_v40, %v4794_v27  ;;  %v5122_v18 = vshrl.u32 %v4828_v40, 16 }
 0x670   : > { %v6595_v14 = vpop.f32.mrf.mxu0  ;;  %v6603_v19 = vpop.f32.mrf.mxu1  ;;  %v8396_v36 = vpack.i.b16 %v5098_v53, %v5097_v17  ;;  %v8398_v39 = vpack.i.b16 %v5114_v51, %v5113_v41  ;;  %v8409_v4 = vcombine.low %v5095_v42, %v5111_v3  ;;  %v8412_v48 = vrot.slane %v4676_v63, %v7210_v33 }
 0x671   : > { %v8416_v61 = vcombine.high %v8394_v23, %v8925_v31  ;;  %v8418_v22 = vpack.i.b16 %v5106_v58, %v5105_v7  ;;  %v8420_v43 = vpack.i.b16 %v5122_v18, %v5121_v34  ;;  %v8422_v32 = vcombine.low %v5103_v8, %v5119_v13 }
 0x672   : > { %v4496_v5 = vpop.f32.mrf.mxu1  ;;  %v4439_v54 = vpop.f32.mrf.mxu0  ;;  %v4710_v28 = vcombine.high %v4624_v12, %v8925_v31  ;;  %v5033_v47 = vshrl.u32 %v8389_v44, 16  ;;  %v5041_v26 = vshrl.u32 %v8402_v2, 16  ;;  %v4717_v59 = vrot.slane %v4624_v12, %v7191_v15 }
 0x673   : > { %v8432_v10 = vcombine.high %v8406_v46, %v8925_v31  ;;  %v8436_v50 = vcombine.high %v8412_v48, %v8925_v31  ;;  %v4625_v60 = vpack.c.bf16 %v4439_v54, %v4436_v20  ;;  %v5049_v25 = vshrl.u32 %v8394_v23, 16 }
 0x674   : > { %v6618_v30 = vpop.f32.mrf.mxu1  ;;  %v4724_v57 = vrot.slane %v4710_v28, %v7191_v15  ;;  %v5057_v49 = vshrl.u32 %v8416_v61, 16  ;;  %v4725_v0 = vcombine.low %v4702_v16, %v4717_v59  ;;  %v4726_v45 = vcombine.high %v4702_v16, %v4717_v59 }
 0x675   : > { %v4961_v27 = vpack.c.bf16 %v8382_v1, %v8382_v1  ;;  %v4995_v9 = vpack.c.bf16 %v8384_v11, %v8384_v11  ;;  %v5065_v17 = vshrl.u32 %v8406_v46, 16  ;;  %v4829_v53 = vcombine.high %v4625_v60, %v8925_v31 }
 0x676   : > { %v4607_v6 = vpop.f32.mrf.mxu1  ;;  %v4741_v62 = vcombine.low %v4709_v29, %v4724_v57  ;;  %v4742_v52 = vcombine.high %v4709_v29, %v4724_v57  ;;  %v4733_v21 = vrot.slane %v4725_v0, %v7210_v33  ;;  %v4740_v40 = vrot.slane %v4726_v45, %v7210_v33 }
 0x677   : > { %v6610_v24 = vpop.f32.mrf.mxu0  ;;  %v4968_v18 = vrot.slane %v4961_v27, %v7191_v15  ;;  %v5002_v35 = vrot.slane %v4995_v9, %v7191_v15  ;;  %v8467_v14 = vrot.slane %v4625_v60, %v7191_v15  ;;  %v8475_v7 = vrot.slane %v4829_v53, %v7191_v15 }
 0x678   : > { %v6619_v38 = vpop.f32.mrf.mxu1  ;;  %v8453_v1 = vrot.slane %v4741_v62, %v7210_v33  ;;  %v8456_v11 = vrot.slane %v4742_v52, %v7210_v33  ;;  %v8459_v42 = vcombine.high %v4733_v21, %v8925_v31  ;;  %v8462_v8 = vcombine.high %v4740_v40, %v8925_v31 }
 0x679   : > { %v4550_v41 = vpop.f32.mrf.mxu0  ;;  %v5034_v3 = vshrl.u32 %v4733_v21, 16  ;;  %v5050_v13 = vshrl.u32 %v4740_v40, 16  ;;  %v4626_v34 = vpack.c.bf16 %v4496_v5, %v8391_v37  ;;  %v5031_v16 = vpack.i.b16 %v4733_v21, %v8389_v44 }
 0x67a   : > { %v8471_v19 = vcombine.high %v8453_v1, %v8925_v31  ;;  %v5042_v63 = vshrl.u32 %v8459_v42, 16  ;;  %v5058_v29 = vshrl.u32 %v8462_v8, 16  ;;  %v5066_v54 = vshrl.u32 %v8453_v1, 16  ;;  %v4610_v45 = vpop.f32.mrf.mxu1 }
 0x67b   : > { %v6611_v58 = vpop.f32.mrf.mxu0  ;;  %v5003_v28 = vpack.c.bf16 %v6618_v30, %v6618_v30  ;;  %v8483_v59 = vcombine.high %v8456_v11, %v8925_v31  ;;  %v8485_v57 = vpack.i.b16 %v5034_v3, %v5033_v47  ;;  %v5047_v0 = vpack.i.b16 %v4740_v40, %v8394_v23 }
 0x67c   : > { %v8490_v37 = vpack.i.b16 %v5042_v63, %v5041_v26  ;;  %v8492_v44 = vpack.i.b16 %v5050_v13, %v5049_v25  ;;  %v8498_v52 = vpack.i.b16 %v5058_v29, %v5057_v49  ;;  %v5074_v27 = vshrl.u32 %v8471_v19, 16 }
 0x67d   : > { %v4553_v62 = vpop.f32.mrf.mxu0  ;;  %v8505_v26 = vpack.i.b16 %v5066_v54, %v5065_v17  ;;  %v5010_v25 = vrot.slane %v5003_v28, %v7191_v15  ;;  %v4969_v9 = vpack.c.bf16 %v6610_v24, %v6610_v24  ;;  %v4628_v38 = vpack.c.bf16 %v4610_v45, %v4607_v6 }
 0x67e   : > { %v5082_v21 = vshrl.u32 %v8456_v11, 16  ;;  %v4895_v40 = vcombine.high %v4626_v34, %v8925_v31  ;;  %v4627_v53 = vpack.c.bf16 %v4553_v62, %v4550_v41  ;;  %v5090_v17 = vshrl.u32 %v8483_v59, 16 }
 0x67f   : > { %v5011_v3 = vcombine.low %v5002_v35, %v5010_v25  ;;  %v5012_v58 = vcombine.high %v5002_v35, %v5010_v25  ;;  %v4976_v13 = vrot.slane %v4969_v9, %v7191_v15  ;;  %v4910_v63 = vcombine.high %v4628_v38, %v8925_v31 }
 0x680   : > { %v8515_v29 = vcombine.low %v5031_v16, %v5047_v0  ;;  %v4902_v6 = vrot.slane %v4626_v34, %v7191_v15  ;;  %v4917_v24 = vrot.slane %v4628_v38, %v7191_v15  ;;  %v4909_v35 = vrot.slane %v4895_v40, %v7191_v15 }
 0x681   : > { %v5019_v54 = vrot.slane %v5011_v3, %v7210_v33  ;;  %v5026_v28 = vrot.slane %v5012_v58, %v7210_v33  ;;  %v4977_v45 = vcombine.low %v4968_v18, %v4976_v13  ;;  %v4978_v41 = vcombine.high %v4968_v18, %v4976_v13 }
 0x682   : > { %v4924_v62 = vrot.slane %v4910_v63, %v7191_v15  ;;  %v4925_v25 = vcombine.low %v4902_v6, %v4917_v24  ;;  %v4926_v9 = vcombine.high %v4902_v6, %v4917_v24  ;;  %v4844_v34 = vcombine.high %v4627_v53, %v8925_v31 }
 0x683   : > { %v5027_v55 = vcombine.high %v5019_v54, %v8925_v31  ;;  %v5028_v16 = vcombine.high %v5026_v28, %v8925_v31  ;;  %v5194_v0 = vshrl.u32 %v5019_v54, 16  ;;  %v5210_v38 = vshrl.u32 %v5026_v28, 16 }
 0x684   : > { %v4985_v3 = vrot.slane %v4977_v45, %v7210_v33  ;;  %v4992_v58 = vrot.slane %v4978_v41, %v7210_v33  ;;  %v8529_v18 = vrot.slane %v4925_v25, %v7210_v33  ;;  %v8532_v13 = vrot.slane %v4926_v9, %v7210_v33 }
 0x685   : > { %v5202_v40 = vshrl.u32 %v5027_v55, 16  ;;  %v4941_v63 = vcombine.low %v4909_v35, %v4924_v62  ;;  %v4942_v6 = vcombine.high %v4909_v35, %v4924_v62  ;;  %v5218_v24 = vshrl.u32 %v5028_v16, 16 }
 0x686   : > { %v4993_v47 = vcombine.high %v4985_v3, %v8925_v31  ;;  %v4994_v49 = vcombine.high %v4992_v58, %v8925_v31  ;;  %v5193_v30 = vshrl.u32 %v4985_v3, 16  ;;  %v5191_v23 = vpack.i.b16 %v5019_v54, %v4985_v3 }
 0x687   : > { %v5207_v60 = vpack.i.b16 %v5026_v28, %v4992_v58  ;;  %v5209_v45 = vshrl.u32 %v4992_v58, 16  ;;  %v8537_v41 = vrot.slane %v4941_v63, %v7210_v33  ;;  %v8540_v9 = vrot.slane %v4942_v6, %v7210_v33 }
 0x688   : > { %v5199_v25 = vpack.i.b16 %v5027_v55, %v4993_v47  ;;  %v5201_v5 = vshrl.u32 %v4993_v47, 16  ;;  %v5215_v20 = vpack.i.b16 %v5028_v16, %v4994_v49  ;;  %v8542_v51 = vpack.i.b16 %v5194_v0, %v5193_v30 }
 0x689   : > { %v8544_v35 = vpack.i.b16 %v5210_v38, %v5209_v45  ;;  %v5217_v62 = vshrl.u32 %v4994_v49, 16  ;;  %v8548_v12 = vcombine.high %v8529_v18, %v8925_v31  ;;  %v8952_v54 = vshrl.u32 %v8412_v48, 16 }
 0x68a   : > { %8950 = vst [vmem:[#allocation17_spill] sm:$0xff] %v8542_v51  ;;  %v4851_v55 = vrot.slane %v4627_v53, %v7191_v15  ;;  %v4858_v47 = vrot.slane %v4844_v34, %v7191_v15  ;;  %v8953_v16 = vshrl.u32 %v8432_v10, 16  ;;  %v8560_v30 = vpack.i.b16 %v5202_v40, %v5201_v5 }
 0x68b   : > { %8951 = vst [vmem:[#allocation11_spill] sm:$0xff] %v8544_v35  ;;  %v8552_v28 = vpack.i.b16 %v5082_v21, %v8952_v54  ;;  %v8562_v0 = vpack.i.b16 %v5218_v24, %v5217_v62  ;;  %v4958_v49 = vcombine.high %v8532_v13, %v8925_v31  ;;  %v8956_v38 = vshrl.u32 %v8436_v50, 16 }
 0x68c   : > { %v8558_v3 = vpack.i.b16 %v5074_v27, %v8953_v16  ;;  %8954 = vst [vmem:[#allocation12_spill] sm:$0xff] %v8560_v30  ;;  %v8570_v21 = vcombine.low %v5191_v23, %v5207_v60  ;;  %v8572_v53 = vcombine.low %v5199_v25, %v5215_v20  ;;  %v8576_v34 = vcombine.high %v8537_v41, %v8925_v31 }
 0x68d   : > { %8955 = vst [vmem:[#allocation14_spill] sm:$0xff] %v8562_v0  ;;  %v8568_v58 = vpack.i.b16 %v5090_v17, %v8956_v38  ;;  %v5228_v5 = vrot.slane %v8515_v29, %v7191_v15  ;;  %v8584_v40 = vcombine.high %v8540_v9, %v8925_v31  ;;  %v5130_v17 = vshrl.u32 %v8529_v18, 16 }
 0x68e   : > { %v5138_v60 = vshrl.u32 %v8548_v12, 16  ;;  %v5146_v20 = vshrl.u32 %v8532_v13, 16  ;;  %v4859_v23 = vcombine.low %v8467_v14, %v4851_v55  ;;  %v4860_v63 = vcombine.high %v8467_v14, %v4851_v55 }
 0x68f   : > { %v4875_v6 = vcombine.low %v8475_v7, %v4858_v47  ;;  %v5154_v24 = vshrl.u32 %v4958_v49, 16  ;;  %v4876_v45 = vcombine.high %v8475_v7, %v4858_v47  ;;  %v8957_v25 = vpack.i.b16 %v8462_v8, %v8416_v61 }
 0x690   : > { %v8958_v62 = vpack.i.b16 %v8459_v42, %v8402_v2  ;;  %v4867_v16 = vrot.slane %v4859_v23, %v7210_v33  ;;  %v4874_v38 = vrot.slane %v4860_v63, %v7210_v33  ;;  %v8959_v55 = vpack.i.b16 %v8456_v11, %v8412_v48 }
 0x691   : > { %v4883_v14 = vrot.slane %v4875_v6, %v7210_v33  ;;  %v8960_v29 = vpack.i.b16 %v8453_v1, %v8406_v46  ;;  %v5162_v47 = vshrl.u32 %v8537_v41, 16  ;;  %v5170_v61 = vshrl.u32 %v8576_v34, 16 }
 0x692   : > { %v5229_v54 = vcombine.low %v8958_v62, %v8957_v25  ;;  %v4890_v2 = vrot.slane %v4876_v45, %v7210_v33  ;;  %v8961_v42 = vpack.i.b16 %v8483_v59, %v8436_v50  ;;  %v8962_v8 = vpack.i.b16 %v8471_v19, %v8432_v10 }
 0x693   : > { %v5237_v7 = vcombine.low %v8960_v29, %v8959_v55  ;;  %v5178_v63 = vshrl.u32 %v8540_v9, 16  ;;  %v4891_v48 = vcombine.high %v4867_v16, %v8925_v31  ;;  %v4892_v46 = vcombine.high %v4874_v38, %v8925_v31 }
 0x694   : > { %v5245_v23 = vcombine.low %v8962_v8, %v8961_v42  ;;  %v4893_v1 = vcombine.high %v4883_v14, %v8925_v31  ;;  %v5186_v11 = vshrl.u32 %v8584_v40, 16  ;;  %v5129_v6 = vshrl.u32 %v4867_v16, 16 }
 0x695   : > { %v5145_v29 = vshrl.u32 %v4874_v38, 16  ;;  %v5271_v45 = vcombine.low %v8485_v57, %v8492_v44  ;;  %v5137_v50 = vshrl.u32 %v4891_v48, 16  ;;  %v5153_v59 = vshrl.u32 %v4892_v46, 16 }
 0x696   : > { %v5236_v10 = vrot.slane %v5229_v54, %v7191_v15  ;;  %v5244_v19 = vrot.slane %v5237_v7, %v7191_v15  ;;  %v4894_v25 = vcombine.high %v4890_v2, %v8925_v31  ;;  %v5127_v62 = vpack.i.b16 %v8529_v18, %v4867_v16 }
 0x697   : > { %v5161_v55 = vshrl.u32 %v4883_v14, 16  ;;  %v5252_v42 = vrot.slane %v5245_v23, %v7191_v15  ;;  %v5135_v8 = vpack.i.b16 %v8548_v12, %v4891_v48  ;;  %v5143_v27 = vpack.i.b16 %v8532_v13, %v4874_v38 }
 0x698   : > { %v5151_v0 = vpack.i.b16 %v4958_v49, %v4892_v46  ;;  %v5169_v57 = vshrl.u32 %v4893_v1, 16  ;;  %v5131_v44 = vpack.i.b16 %v5130_v17, %v5129_v6  ;;  %v5147_v30 = vpack.i.b16 %v5146_v20, %v5145_v29  ;;  %v6735_v49 = vld [vmem:[%s8963_s23 + $0x8] sm:$0xff]  }
 0x699   : > { %v5159_v54 = vpack.i.b16 %v8537_v41, %v4883_v14  ;;  %v5177_v35 = vshrl.u32 %v4890_v2, 16  ;;  %v5139_v7 = vpack.i.b16 %v5138_v60, %v5137_v50  ;;  %v5155_v51 = vpack.i.b16 %v5154_v24, %v5153_v59  ;;  %6621 = vmatpush3.bf16.msra.mxu0 %v6735_v49 }
 0x69a   : > { %v5167_v31 = vpack.i.b16 %v8576_v34, %v4893_v1  ;;  %v5175_v18 = vpack.i.b16 %v8540_v9, %v4890_v2  ;;  %v8636_v16 = vpack.i.b16 %v5162_v47, %v5161_v55  ;;  %v8638_v23 = vpack.i.b16 %v5170_v61, %v5169_v57  ;;  %6622 = vmatprep.subr.bf16.mxu0 %v8949_v56 }
 0x69b   : > { %v5183_v12 = vpack.i.b16 %v8584_v40, %v4894_v25  ;;  %v5185_v13 = vshrl.u32 %v4894_v25, 16  ;;  %v5337_v17 = vcombine.low %v5127_v62, %v5143_v27  ;;  %v5345_v20 = vcombine.low %v5135_v8, %v5151_v0 }
 0x69c   : > { %v5253_v38 = vcombine.low %v5228_v5, %v5236_v10  ;;  %v5261_v41 = vcombine.low %v5244_v19, %v5252_v42  ;;  %v8642_v14 = vpack.i.b16 %v5178_v63, %v5177_v35  ;;  %v5279_v34 = vcombine.low %v8490_v37, %v8498_v52  ;;  %v6736_v35 = vld [vmem:[%s8963_s23] sm:$0xff]  }
 0x69d   : > { %v5287_v9 = vcombine.low %v8505_v26, %v8552_v28  ;;  %v5295_v60 = vcombine.low %v8558_v3, %v8568_v58  ;;  %v5387_v40 = vcombine.low %v5131_v44, %v5147_v30  ;;  %v5421_v24 = vcombine.low %v5159_v54, %v5175_v18  ;;  %6623 = vmatpush3.bf16.msra.mxu0 %v6736_v35 }
 0x69e   : > { %v5268_v47 = vrot.slane %v5261_v41, %v7210_v33  ;;  %v5336_v0 = vrot.slane %v8422_v32, %v7191_v15  ;;  %v5278_v5 = vrot.slane %v5271_v45, %v7191_v15  ;;  %v5286_v37 = vrot.slane %v5279_v34, %v7191_v15  ;;  %6652 = vmatprep.subr.bf16.mxu0 %v8949_v56  ;;  %v8969_v34 = vld [vmem:[#allocation14_spill] sm:$0xff] }
 0x69f   : > { %v5294_v52 = vrot.slane %v5287_v9, %v7191_v15  ;;  %v5302_v26 = vrot.slane %v5295_v60, %v7191_v15  ;;  %v5260_v28 = vrot.slane %v5253_v38, %v7210_v33  ;;  %v5328_v3 = vrot.slane %v8409_v4, %v7191_v15  ;;  %v8966_v38 = vld [vmem:[#allocation11_spill] sm:$0xff] }
 0x6a0   : > { %v5344_v30 = vrot.slane %v5337_v17, %v7191_v15  ;;  %v5352_v32 = vrot.slane %v5345_v20, %v7191_v15  ;;  %v5429_v58 = vcombine.low %v5167_v31, %v5183_v12  ;;  %v5303_v27 = vcombine.low %v5278_v5, %v5286_v37 }
 0x6a1   : > { %v5311_v61 = vcombine.low %v5294_v52, %v5302_v26  ;;  %v5379_v2 = vcombine.low %v8418_v22, %v8420_v43  ;;  %v5187_v63 = vpack.i.b16 %v5186_v11, %v5185_v13  ;;  %v8666_v48 = vcombine.low %v5260_v28, %v5268_v47 }
 0x6a2   : > { %v5353_v46 = vcombine.low %v5328_v3, %v5336_v0  ;;  %v5361_v1 = vcombine.low %v5344_v30, %v5352_v32  ;;  %v5310_v4 = vrot.slane %v5303_v27, %v7210_v33  ;;  %v8964_v29 = vcombine.low %v8396_v36, %v8398_v39 }
 0x6a3   : > { %v5318_v6 = vrot.slane %v5311_v61, %v7210_v33  ;;  %v5386_v50 = vrot.slane %v5379_v2, %v7191_v15  ;;  %v5471_v22 = vcombine.low %v8636_v16, %v8642_v14  ;;  %v5270_v43 = vcombine.high %v5260_v28, %v5268_v47  ;;  %v8968_v14 = vld [vmem:[#allocation12_spill] sm:$0xff] }
 0x6a4   : > { %v5378_v45 = vrot.slane %v8964_v29, %v7191_v15  ;;  %v5368_v11 = vrot.slane %v5361_v1, %v7210_v33  ;;  %v5395_v59 = vcombine.low %v5139_v7, %v5155_v51  ;;  %v5436_v62 = vrot.slane %v5429_v58, %v7191_v15 }
 0x6a5   : > { %v5320_v10 = vcombine.high %v5310_v4, %v5318_v6  ;;  %v8679_v19 = vcombine.low %v5310_v4, %v5318_v6  ;;  %v5524_v55 = vshrl.u32 %v8666_v48, 16  ;;  %v5360_v36 = vrot.slane %v5353_v46, %v7210_v33 }
 0x6a6   : > { %v5403_v25 = vcombine.low %v5378_v45, %v5386_v50  ;;  %v5394_v39 = vrot.slane %v5387_v40, %v7191_v15  ;;  %v5402_v42 = vrot.slane %v5395_v59, %v7191_v15  ;;  %v5428_v44 = vrot.slane %v5421_v24, %v7191_v15 }
 0x6a7   : > { %v5529_v8 = vpack.i.b16 %v5320_v10, %v5270_v43  ;;  %v5525_v57 = vshrl.u32 %v8679_v19, 16  ;;  %v5452_v51 = vrot.slane %v8572_v53, %v7191_v15  ;;  %v5444_v54 = vrot.slane %v8570_v21, %v7191_v15  ;;  %v8965_v53 = vld [vmem:[#allocation17_spill] sm:$0xff] }
 0x6a8   : > { %v5370_v7 = vcombine.high %v5360_v36, %v5368_v11  ;;  %v5411_v31 = vcombine.low %v5394_v39, %v5402_v42  ;;  %v8692_v18 = vcombine.low %v5360_v36, %v5368_v11  ;;  %v5531_v12 = vshrl.u32 %v5320_v10, 16 }
 0x6a9   : > { %5563 = vrot.lane.b32.xlu0 %v5529_v8, %s6915_s24  ;;  %v5526_v16 = vpack.i.b16 %v5525_v57, %v5524_v55  ;;  %v5410_v13 = vrot.slane %v5403_v25, %v7210_v33  ;;  %v5453_v49 = vcombine.low %v5428_v44, %v5436_v62  ;;  %v5479_v20 = vcombine.low %v8638_v23, %v5187_v63 }
 0x6aa   : > { %v5418_v17 = vrot.slane %v5411_v31, %v7210_v33  ;;  %v8967_v21 = vcombine.low %v8965_v53, %v8966_v38  ;;  %v8970_v9 = vcombine.low %v8968_v14, %v8969_v34  ;;  %v5530_v40 = vshrl.u32 %v5270_v43, 16  ;;  %v6875_v38 = vld [vmem:[#allocation2] sm:$0xff] }
 0x6ab   : > { %5557 = vrot.lane.b32.xlu1 %v5526_v16, %s6916_s28  ;;  %v5461_v24 = vcombine.low %v5444_v54, %v5452_v51  ;;  %v5478_v47 = vrot.slane %v5471_v22, %v7191_v15  ;;  %v5523_v23 = vpack.i.b16 %v8679_v19, %v8666_v48  ;;  %v5486_v5 = vrot.slane %v5479_v20, %v7191_v15 }
 0x6ac   : > { %v5494_v41 = vrot.slane %v8967_v21, %v7191_v15  ;;  %v5502_v60 = vrot.slane %v8970_v9, %v7191_v15  ;;  %v5420_v0 = vcombine.high %v5410_v13, %v5418_v17  ;;  %v5419_v35 = vcombine.low %v5410_v13, %v5418_v17 }
 0x6ad   : > { %v5532_v52 = vpack.i.b16 %v5531_v12, %v5530_v40  ;;  %v5542_v26 = vshrl.u32 %v5370_v7, 16  ;;  %v5536_v28 = vshrl.u32 %v8692_v18, 16  ;;  %v5460_v32 = vrot.slane %v5453_v49, %v7210_v33  ;;  %v6356_v49 = vld [vmem:[%s8971_s15] ss:$0 sm:$0xff] }
 0x6ae   : > { %v5511_v37 = vcombine.low %v5494_v41, %v5502_v60  ;;  %v5543_v3 = vshrl.u32 %v5420_v0, 16  ;;  %v5537_v30 = vshrl.u32 %v5419_v35, 16  ;;  %v5503_v58 = vcombine.low %v5478_v47, %v5486_v5  ;;  %v6876_v60 = vld [vmem:[#allocation2 + $0x8] sm:$0xff] }
 0x6af   : > { %5569 = vrot.lane.b32.xlu1 %v5532_v52, %s6917_s14  ;;  %v5468_v27 = vrot.slane %v5461_v24, %v7210_v33  ;;  %v5535_v61 = vpack.i.b16 %v5419_v35, %v8692_v18  ;;  %v5541_v50 = vpack.i.b16 %v5420_v0, %v5370_v7  ;;  %v6877_v35 = vld [vmem:[#allocation2 + $0x10] sm:$0xff] }
 0x6b0   : > { %v5544_v2 = vpack.i.b16 %v5543_v3, %v5542_v26  ;;  %v5538_v63 = vpack.i.b16 %v5537_v30, %v5536_v28  ;;  %v5510_v15 = vrot.slane %v5503_v58, %v7210_v33  ;;  %v5518_v48 = vrot.slane %v5511_v37, %v7210_v33  ;;  %v6878_v3 = vld [vmem:[#allocation2 + $0x18] sm:$0xff] }
 0x6b1   : > { %v5470_v46 = vcombine.high %v5460_v32, %v5468_v27  ;;  %v5469_v4 = vcombine.low %v5460_v32, %v5468_v27 }
 0x6b2   : > { %5571 = vrot.lane.b32.xlu0 %v5544_v2, %s6917_s14  ;;  %v5520_v1 = vcombine.high %v5510_v15, %v5518_v48  ;;  %v5519_v6 = vcombine.low %v5510_v15, %v5518_v48  ;;  %v6879_v2 = vld [vmem:[#allocation2 + $0x20] sm:$0xff] }
 0x6b3   : > { %5559 = vrot.lane.b32.xlu1 %v5538_v63, %s6916_s28  ;;  %v5548_v43 = vshrl.u32 %v5469_v4, 16  ;;  %v5554_v33 = vshrl.u32 %v5470_v46, 16 }
 0x6b4   : > { %v5553_v29 = vpack.i.b16 %v5520_v1, %v5470_v46  ;;  %v5547_v45 = vpack.i.b16 %v5519_v6, %v5469_v4  ;;  %v5549_v22 = vshrl.u32 %v5519_v6, 16  ;;  %v5555_v59 = vshrl.u32 %v5520_v1, 16  ;;  %v6880_v4 = vld [vmem:[#allocation2 + $0x28] sm:$0xff] }
 0x6b6   : > { %5567 = vrot.lane.b32.xlu0 %v5553_v29, %s6915_s24  ;;  %v5550_v11 = vpack.i.b16 %v5549_v22, %v5548_v43  ;;  %v5556_v10 = vpack.i.b16 %v5555_v59, %v5554_v33 }
 0x6b7   : > { %5565 = vrot.lane.b32.xlu1 %v5541_v50, %s6915_s24 }
 0x6bb   : > { %5561 = vrot.lane.b32.xlu1 %v5550_v11, %s6916_s28 }
 0x6bf   : > { %5573 = vrot.lane.b32.xlu1 %v5556_v10, %s6917_s14 }
 0x71b   : > { %v5564_v62 = vpop.permute.xlu0 %5563 }
 0x71d   : > { %v5558_v19 = vpop.permute.xlu1 %5557 }
 0x71e   : > { %v5577_v25 = vsel %vm3349_vm3, %v5523_v23, %v5558_v19 }
 0x71f   : > { %v5586_v36 = vsel %vm5584_vm7, %v5577_v25, %v5564_v62 }
 0x721   : > { %v5570_v55 = vpop.permute.xlu1 %5569 }
 0x722   : > { %v5592_v39 = vsel %vm3883_vm6, %v5586_v36, %v5570_v55 }
 0x723   : > { %6625 = vmatmul.mubr.msk.bf16.vlgmr.msra.gmra.mxu0 %vm677_vm1, %v5592_v39 }
 0x724   : > { %6628 = vmatprep.mubr.msk.bf16.mxu0 %vm6906_vm2, %v8949_v56  ;;  %v5572_v44 = vpop.permute.xlu0 %5571 }
 0x725   : > { %v5560_v42 = vpop.permute.xlu1 %5559 }
 0x726   : > { %v5580_v8 = vsel %vm3349_vm3, %v5535_v61, %v5560_v42 }
 0x728   : > { %v5568_v18 = vpop.permute.xlu0 %5567 }
 0x729   : > { %v5566_v57 = vpop.permute.xlu1 %5565 }
 0x72a   : > { %v5588_v51 = vsel %vm5584_vm7, %v5580_v8, %v5566_v57 }
 0x72b   : > { %v5594_v54 = vsel %vm3883_vm6, %v5588_v51, %v5572_v44 }
 0x72c   : > { %6629 = vmatmul.mubr.msk.bf16.gmra.mxu0 %vm677_vm1, %v5594_v54 }
 0x72d   : > { %v5562_v7 = vpop.permute.xlu1 %5561  ;;  %6632 = vmatprep.mubr.msk.bf16.mxu0 %vm6906_vm2, %v8949_v56 }
 0x72e   : > { %v5583_v31 = vsel %vm3349_vm3, %v5547_v45, %v5562_v7 }
 0x72f   : > { %v5590_v12 = vsel %vm5584_vm7, %v5583_v31, %v5568_v18 }
 0x731   : > { %v5574_v16 = vpop.permute.xlu1 %5573 }
 0x732   : > { %v5596_v13 = vsel %vm3883_vm6, %v5590_v12, %v5574_v16 }
 0x734   : > { %6633 = vmatmul.mubr.msk.bf16.gmra.mxu0 %vm677_vm1, %v5596_v13 }
 0x735   : > { %6660 = vmatprep.mubr.msk.bf16.mxu0 %vm6906_vm2, %v8949_v56 }
 0x7e3   : > { %v5660_v17 = vpop.f32.mrf.mxu0 }
 0x7e4   : > { %v5661_v20 = vadd.f32 %v6356_v49, %v5660_v17 }
 0x7e5   : > { %v6626_v53 = vpop.f32.mrf.mxu0 }
 0x7e6   : > { %v8744_v21 = vadd.f32 %v6875_v38, %v5661_v20  ;;  %v6737_v38 = vld [vmem:[%s7050_s3 + $0x8] sm:$0xff]  }
 0x7e7   : > { %v5663_v41 = vpop.f32.mrf.mxu0  ;;  %6637 = vmatpush3.bf16.msra.mxu1 %v6737_v38  ;;  %v6364_v38 = vld [vmem:[%s636_s5] ss:$0 sm:$0xff] }
 0x7e8   : > { %v5664_v14 = vadd.f32 %v6356_v49, %v5663_v41  ;;  %v5691_v34 = vsel %vm677_vm1, %v8744_v21, 0.0  ;;  %6638 = vmatprep.subr.bf16.mxu1 %v8949_v56  ;;  %v6738_v41 = vld [vmem:[%s7050_s3] sm:$0xff]  }
 0x7e9   : > { %5692 = vadd.xlane.f32.xlu0 %v5691_v34  ;;  %v6627_v9 = vpop.f32.mrf.mxu0 }
 0x7ea   : > { %v8748_v40 = vadd.f32 %v6876_v60, %v5664_v14 }
 0x7eb   : > { %6639 = vmatpush3.bf16.msra.mxu1 %v6738_v41 }
 0x7ec   : > { %v5694_v24 = vsel %vm677_vm1, %v8748_v40, 0.0  ;;  %v5668_v47 = vpop.f32.mrf.mxu0 }
 0x7ed   : > { %5695 = vadd.xlane.f32.xlu1 %v5694_v24  ;;  %v5669_v23 = vadd.f32 %v6356_v49, %v5668_v47 }
 0x7ee   : > { %v6630_v0 = vpop.f32.mrf.mxu0 }
 0x7ef   : > { %v8752_v5 = vadd.f32 %v6877_v35, %v5669_v23 }
 0x7f0   : > { %v5671_v37 = vpop.f32.mrf.mxu0 }
 0x7f1   : > { %v5672_v52 = vadd.f32 %v6356_v49, %v5671_v37  ;;  %v5697_v26 = vsel %vm677_vm1, %v8752_v5, 0.0 }
 0x7f2   : > { %5698 = vadd.xlane.f32.xlu0 %v5697_v26  ;;  %v6631_v28 = vpop.f32.mrf.mxu0 }
 0x7f3   : > { %v8756_v30 = vadd.f32 %v6878_v3, %v5672_v52 }
 0x7f4   : > { %v5676_v32 = vpop.f32.mrf.mxu0 }
 0x7f5   : > { %v5677_v58 = vadd.f32 %v6356_v49, %v5676_v32  ;;  %v5700_v27 = vsel %vm677_vm1, %v8756_v30, 0.0 }
 0x7f6   : > { %5701 = vadd.xlane.f32.xlu0 %v5700_v27  ;;  %v6634_v61 = vpop.f32.mrf.mxu0 }
 0x7f7   : > { %v8760_v63 = vadd.f32 %v6879_v2, %v5677_v58  ;;  %v6362_v61 = vld [vmem:[%s625_s13] ss:$0 sm:$0xff] }
 0x7f8   : > { %v5679_v15 = vpop.f32.mrf.mxu0 }
 0x7f9   : > { %v5680_v48 = vadd.f32 %v6356_v49, %v5679_v15  ;;  %v5703_v46 = vsel %vm677_vm1, %v8760_v63, 0.0 }
 0x7fa   : > { %5704 = vadd.xlane.f32.xlu0 %v5703_v46  ;;  %v6635_v1 = vpop.f32.mrf.mxu0 }
 0x7fb   : > { %v8764_v6 = vadd.f32 %v6880_v4, %v5680_v48 }
 0x7fd   : > { %v5706_v29 = vsel %vm677_vm1, %v8764_v6, 0.0 }
 0x7fe   : > { %5707 = vadd.xlane.f32.xlu1 %v5706_v29  ;;  %v6363_v29 = vld [vmem:[%s628_s22] ss:$0 sm:$0xff] }
 0x872   : > { %v5693_v45 = vpop.xlane.xlu0 %5692 }
 0x873   : > { %v5709_v50 = vmul.f32 0.03125, %v5693_v45 }
 0x875   : > { %v5715_v22 = vsub.f32 %v8744_v21, %v5709_v50 }
 0x876   : > { %v5696_v43 = vpop.xlane.xlu1 %5695 }
 0x877   : > { %v5710_v11 = vmul.f32 0.03125, %v5696_v43  ;;  %v5721_v59 = vmul.f32 %v5715_v22, %v5715_v22 }
 0x879   : > { %v5716_v33 = vsub.f32 %v8748_v40, %v5710_v11  ;;  %v5727_v10 = vsel %vm677_vm1, %v5721_v59, 0.0 }
 0x87a   : > { %5728 = vadd.xlane.f32.xlu0 %v5727_v10 }
 0x87b   : > { %v5722_v19 = vmul.f32 %v5716_v33, %v5716_v33  ;;  %v5699_v25 = vpop.xlane.xlu0 %5698 }
 0x87c   : > { %v5711_v62 = vmul.f32 0.03125, %v5699_v25 }
 0x87d   : > { %v5730_v55 = vsel %vm677_vm1, %v5722_v19, 0.0 }
 0x87e   : > { %5731 = vadd.xlane.f32.xlu1 %v5730_v55  ;;  %v5717_v36 = vsub.f32 %v8752_v5, %v5711_v62 }
 0x87f   : > { %v5702_v39 = vpop.xlane.xlu0 %5701 }
 0x880   : > { %v5712_v42 = vmul.f32 0.03125, %v5702_v39  ;;  %v5723_v8 = vmul.f32 %v5717_v36, %v5717_v36 }
 0x882   : > { %v8774_v57 = vsub.f32 %v8756_v30, %v5712_v42  ;;  %v5733_v44 = vsel %vm677_vm1, %v5723_v8, 0.0 }
 0x883   : > { %5734 = vadd.xlane.f32.xlu0 %v5733_v44  ;;  %v5705_v51 = vpop.xlane.xlu0 %5704 }
 0x884   : > { %v5713_v54 = vmul.f32 0.03125, %v5705_v51  ;;  %v5724_v7 = vmul.f32 %v8774_v57, %v8774_v57 }
 0x886   : > { %v5719_v31 = vsub.f32 %v8760_v63, %v5713_v54  ;;  %v5736_v18 = vsel %vm677_vm1, %v5724_v7, 0.0 }
 0x887   : > { %v5708_v16 = vpop.xlane.xlu1 %5707  ;;  %5737 = vadd.xlane.f32.xlu1 %v5736_v18 }
 0x888   : > { %v5714_v12 = vmul.f32 0.03125, %v5708_v16  ;;  %v5725_v13 = vmul.f32 %v5719_v31, %v5719_v31 }
 0x88a   : > { %v5720_v49 = vsub.f32 %v8764_v6, %v5714_v12  ;;  %v5739_v17 = vsel %vm677_vm1, %v5725_v13, 0.0 }
 0x88b   : > { %5740 = vadd.xlane.f32.xlu0 %v5739_v17  ;;  %v6739_v17 = vld [vmem:[%s7060_s16 + $0x18] sm:$0xff]  }
 0x88c   : > { %v5726_v20 = vmul.f32 %v5720_v49, %v5720_v49  ;;  %6653 = vmatpush3.bf16.msra.mxu0 %v6739_v17 }
 0x88d   : > { %6654 = vmatprep.subr.bf16.mxu0 %v8949_v56 }
 0x88e   : > { %v5742_v53 = vsel %vm677_vm1, %v5726_v20, 0.0  ;;  %v6741_v20 = vld [vmem:[%s7060_s16 + $0x8] sm:$0xff]  }
 0x88f   : > { %5743 = vadd.xlane.f32.xlu1 %v5742_v53  ;;  %v6742_v53 = vld [vmem:[%s7060_s16] sm:$0xff]  }
 0x903   : > { %v5729_v14 = vpop.xlane.xlu0 %5728 }
 0x904   : > { %v5745_v34 = vmul.f32 0.03125, %v5729_v14 }
 0x906   : > { %v5751_v9 = vadd.f32 1e-05, %v5745_v34 }
 0x907   : > { %v5732_v60 = vpop.xlane.xlu1 %5731 }
 0x908   : > { %6851 = vrsqrt.f32 %v5751_v9  ;;  %v5746_v24 = vmul.f32 0.03125, %v5732_v60 }
 0x90a   : > { %v5752_v47 = vadd.f32 1e-05, %v5746_v24 }
 0x90c   : > { %6853 = vrsqrt.f32 %v5752_v47  ;;  %v5735_v23 = vpop.xlane.xlu0 %5734 }
 0x90d   : > { %v5747_v0 = vmul.f32 0.03125, %v5735_v23 }
 0x90f   : > { %v5753_v35 = vadd.f32 1e-05, %v5747_v0 }
 0x910   : > { %v5738_v37 = vpop.xlane.xlu1 %5737 }
 0x911   : > { %6855 = vrsqrt.f32 %v5753_v35  ;;  %v5748_v52 = vmul.f32 0.03125, %v5738_v37 }
 0x913   : > { %v5754_v26 = vadd.f32 1e-05, %v5748_v52 }
 0x914   : > { %v5741_v28 = vpop.xlane.xlu0 %5740 }
 0x915   : > { %v6852_v3 = vpop.eup %6851  ;;  %6857 = vrsqrt.f32 %v5754_v26  ;;  %v5749_v32 = vmul.f32 0.03125, %v5741_v28 }
 0x916   : > { %v5763_v58 = vmul.f32 %v6852_v3, %v5715_v22 }
 0x917   : > { %v5755_v27 = vadd.f32 1e-05, %v5749_v32 }
 0x918   : > { %v5744_v2 = vpop.xlane.xlu1 %5743  ;;  %v5775_v1 = vmul.f32 %v6362_v61, %v5763_v58 }
 0x919   : > { %v6854_v15 = vpop.eup %6853  ;;  %6859 = vrsqrt.f32 %v5755_v27  ;;  %v5750_v48 = vmul.f32 0.03125, %v5744_v2 }
 0x91a   : > { %v5764_v46 = vmul.f32 %v6854_v15, %v5716_v33  ;;  %v5787_v22 = vadd.f32 %v6363_v29, %v5775_v1 }
 0x91b   : > { %v5756_v4 = vadd.f32 1e-05, %v5750_v48 }
 0x91c   : > { %v5776_v45 = vmul.f32 %v6362_v61, %v5764_v46 }
 0x91d   : > { %6861 = vrsqrt.f32 %v5756_v4 }
 0x91e   : > { %v6856_v50 = vpop.eup %6855  ;;  %v5788_v43 = vadd.f32 %v6363_v29, %v5776_v45 }
 0x91f   : > { %v5765_v11 = vmul.f32 %v6856_v50, %v5717_v36 }
 0x920   : > { %v5793_v59 = vpack.c.bf16 %v5788_v43, %v5787_v22 }
 0x921   : > { %v5777_v19 = vmul.f32 %v6362_v61, %v5765_v11 }
 0x922   : > { %v6858_v10 = vpop.eup %6857  ;;  %6641 = vmatmul.mubr.msk.bf16.vlgmr.msra.gmra.mxu1 %vm677_vm1, %v5793_v59 }
 0x923   : > { %6644 = vmatprep.mubr.msk.bf16.mxu1 %vm6906_vm2, %v8949_v56  ;;  %v5766_v33 = vmul.f32 %v6858_v10, %v8774_v57  ;;  %v5789_v39 = vadd.f32 %v6363_v29, %v5777_v19 }
 0x925   : > { %v5778_v25 = vmul.f32 %v6362_v61, %v5766_v33 }
 0x926   : > { %v6860_v62 = vpop.eup %6859 }
 0x927   : > { %v5767_v55 = vmul.f32 %v6860_v62, %v5719_v31  ;;  %v5790_v42 = vadd.f32 %v6363_v29, %v5778_v25 }
 0x929   : > { %v6389_v8 = vpack.c.bf16 %v5790_v42, %v5789_v39  ;;  %v5779_v44 = vmul.f32 %v6362_v61, %v5767_v55 }
 0x92a   : > { %v6862_v51 = vpop.eup %6861 }
 0x92b   : > { %6645 = vmatmul.mubr.msk.bf16.gmra.mxu1 %vm677_vm1, %v6389_v8  ;;  %v5768_v36 = vmul.f32 %v6862_v51, %v5720_v49  ;;  %v5791_v54 = vadd.f32 %v6363_v29, %v5779_v44  ;;  %v6740_v49 = vld [vmem:[%s7060_s16 + $0x10] sm:$0xff]  }
 0x92c   : > { %6648 = vmatprep.mubr.msk.bf16.mxu1 %vm6906_vm2, %v8949_v56  ;;  %6655 = vmatpush3.bf16.msra.mxu0 %v6740_v49 }
 0x92d   : > { %v5780_v57 = vmul.f32 %v6362_v61, %v5768_v36  ;;  %v5795_v18 = vpack.c.bf16 %v5791_v54, %v5790_v42  ;;  %6656 = vmatprep.subr.bf16.mxu0 %v8949_v56 }
 0x92f   : > { %v5792_v7 = vadd.f32 %v6363_v29, %v5780_v57  ;;  %v5805_v16 = vunpack.c.h.b16 %v5795_v18 }
 0x930   : > { %6657 = vmatpush3.bf16.msra.mxu0 %v6741_v20 }
 0x931   : > { %v5796_v31 = vpack.c.bf16 %v5792_v7, %v5792_v7  ;;  %6658 = vmatprep.subr.bf16.mxu0 %v8949_v56 }
 0x933   : > { %v5806_v12 = vunpack.c.l.b16 %v5796_v31 }
 0x934   : > { %6659 = vmatpush3.bf16.msra.mxu0 %v6742_v53 }
 0x935   : > { %v5820_v13 = vpack.c.b16 %v5806_v12, %v5805_v16 }
 0x937   : > { %6649 = vmatmul.mubr.msk.bf16.gmra.mxu1 %vm677_vm1, %v5820_v13 }
 0x9e2   : > { %v5876_v41 = vpop.f32.mrf.mxu1 }
 0x9e3   : > { %v5877_v14 = vadd.f32 %v6364_v38, %v5876_v41 }
 0x9e4   : > { %v6642_v34 = vpop.f32.mrf.mxu1 }
 0x9e5   : > { %v5905_v9 = vmul.f32 0.044715, %v5877_v14  ;;  %v5899_v18 = vmul.f32 0.5, %v5877_v14 }
 0x9e6   : > { %v5879_v60 = vpop.f32.mrf.mxu1 }
 0x9e7   : > { %v5911_v24 = vmul.f32 %v5905_v9, %v5877_v14  ;;  %v5880_v47 = vadd.f32 %v6364_v38, %v5879_v60 }
 0x9e8   : > { %v6643_v23 = vpop.f32.mrf.mxu1 }
 0x9e9   : > { %v5917_v0 = vmul.f32 %v5911_v24, %v5877_v14  ;;  %v5906_v35 = vmul.f32 0.044715, %v5880_v47  ;;  %v5900_v31 = vmul.f32 0.5, %v5880_v47 }
 0x9eb   : > { %v5923_v37 = vadd.f32 %v5917_v0, %v5877_v14  ;;  %v5912_v52 = vmul.f32 %v5906_v35, %v5880_v47  ;;  %v5884_v26 = vpop.f32.mrf.mxu1 }
 0x9ec   : > { %v5885_v28 = vadd.f32 %v6364_v38, %v5884_v26 }
 0x9ed   : > { %v5929_v3 = vmul.f32 0.7978846, %v5923_v37  ;;  %v5918_v32 = vmul.f32 %v5912_v52, %v5880_v47  ;;  %v6646_v58 = vpop.f32.mrf.mxu1 }
 0x9ee   : > { %v5907_v27 = vmul.f32 0.044715, %v5885_v28  ;;  %v5901_v9 = vmul.f32 0.5, %v5885_v28 }
 0x9ef   : > { %6863 = vtanh.f32 %v5929_v3  ;;  %v5924_v61 = vadd.f32 %v5918_v32, %v5880_v47  ;;  %v5887_v2 = vpop.f32.mrf.mxu1 }
 0x9f0   : > { %v5913_v15 = vmul.f32 %v5907_v27, %v5885_v28  ;;  %v5888_v48 = vadd.f32 %v6364_v38, %v5887_v2 }
 0x9f1   : > { %v5930_v46 = vmul.f32 0.7978846, %v5924_v61  ;;  %v6647_v1 = vpop.f32.mrf.mxu1  ;;  %v6371_v61 = vld [vmem:[%s644_s20] ss:$0 sm:$0xff] }
 0x9f2   : > { %v5919_v4 = vmul.f32 %v5913_v15, %v5885_v28  ;;  %v5908_v29 = vmul.f32 0.044715, %v5888_v48  ;;  %v5902_v60 = vmul.f32 0.5, %v5888_v48 }
 0x9f3   : > { %6865 = vtanh.f32 %v5930_v46 }
 0x9f4   : > { %v5925_v45 = vadd.f32 %v5919_v4, %v5885_v28  ;;  %v5914_v50 = vmul.f32 %v5908_v29, %v5888_v48 }
 0x9f6   : > { %v5931_v22 = vmul.f32 0.7978846, %v5925_v45  ;;  %v5920_v43 = vmul.f32 %v5914_v50, %v5888_v48 }
 0x9f7   : > { %v5892_v11 = vpop.f32.mrf.mxu1 }
 0x9f8   : > { %6867 = vtanh.f32 %v5931_v22  ;;  %v5926_v59 = vadd.f32 %v5920_v43, %v5888_v48  ;;  %v5893_v10 = vadd.f32 %v6364_v38, %v5892_v11 }
 0x9f9   : > { %v6650_v33 = vpop.f32.mrf.mxu1 }
 0x9fa   : > { %v5932_v19 = vmul.f32 0.7978846, %v5926_v59  ;;  %v5909_v25 = vmul.f32 0.044715, %v5893_v10  ;;  %v5903_v26 = vmul.f32 0.5, %v5893_v10 }
 0x9fb   : > { %v5895_v62 = vpop.f32.mrf.mxu1 }
 0x9fc   : > { %v6864_v55 = vpop.eup %6863  ;;  %6869 = vtanh.f32 %v5932_v19  ;;  %v5915_v39 = vmul.f32 %v5909_v25, %v5893_v10  ;;  %v5896_v42 = vadd.f32 %v6364_v38, %v5895_v62 }
 0x9fd   : > { %v6651_v8 = vpop.f32.mrf.mxu1  ;;  %v5941_v36 = vadd.f32 1.0, %v6864_v55 }
 0x9fe   : > { %v5921_v44 = vmul.f32 %v5915_v39, %v5893_v10  ;;  %v5910_v51 = vmul.f32 0.044715, %v5896_v42  ;;  %v5904_v3 = vmul.f32 0.5, %v5896_v42 }
 0x9ff   : > { %v5947_v17 = vmul.f32 %v5941_v36, %v5899_v18 }
 0xa00   : > { %v6866_v54 = vpop.eup %6865  ;;  %v5927_v57 = vadd.f32 %v5921_v44, %v5893_v10  ;;  %v5916_v7 = vmul.f32 %v5910_v51, %v5896_v42 }
 0xa01   : > { %v5942_v16 = vadd.f32 1.0, %v6866_v54 }
 0xa02   : > { %v5933_v12 = vmul.f32 0.7978846, %v5927_v57  ;;  %v5922_v13 = vmul.f32 %v5916_v7, %v5896_v42 }
 0xa03   : > { %v5948_v49 = vmul.f32 %v5942_v16, %v5900_v31 }
 0xa04   : > { %6871 = vtanh.f32 %v5933_v12  ;;  %v5928_v20 = vadd.f32 %v5922_v13, %v5896_v42 }
 0xa05   : > { %v6868_v53 = vpop.eup %6867  ;;  %v5953_v41 = vpack.c.bf16 %v5948_v49, %v5947_v17 }
 0xa06   : > { %v5934_v38 = vmul.f32 0.7978846, %v5928_v20  ;;  %v5943_v34 = vadd.f32 1.0, %v6868_v53 }
 0xa07   : > { %6661 = vmatmul.mubr.msk.bf16.vlgmr.msra.gmra.mxu0 %vm5995_vm8, %v5953_v41 }
 0xa08   : > { %6873 = vtanh.f32 %v5934_v38  ;;  %6664 = vmatprep.mubr.msk.bf16.mxu0 %vm6906_vm2, %v8949_v56  ;;  %v5949_v47 = vmul.f32 %v5943_v34, %v5901_v9 }
 0xa09   : > { %v6870_v14 = vpop.eup %6869 }
 0xa0a   : > { %v5944_v24 = vadd.f32 1.0, %v6870_v14 }
 0xa0c   : > { %v5950_v23 = vmul.f32 %v5944_v24, %v5902_v60 }
 0xa0e   : > { %v5954_v0 = vpack.c.bf16 %v5950_v23, %v5949_v47 }
 0xa10   : > { %6665 = vmatmul.mubr.msk.bf16.gmra.mxu0 %vm5995_vm8, %v5954_v0 }
 0xa11   : > { %v6872_v35 = vpop.eup %6871  ;;  %6668 = vmatprep.mubr.msk.bf16.mxu0 %vm6906_vm2, %v8949_v56 }
 0xa12   : > { %v5945_v37 = vadd.f32 1.0, %v6872_v35 }
 0xa14   : > { %v5951_v58 = vmul.f32 %v5945_v37, %v5903_v26 }
 0xa15   : > { %v6874_v52 = vpop.eup %6873 }
 0xa16   : > { %v5946_v32 = vadd.f32 1.0, %v6874_v52 }
 0xa18   : > { %v5952_v27 = vmul.f32 %v5946_v32, %v5904_v3 }
 0xa1a   : > { %v5955_v28 = vpack.c.bf16 %v5952_v27, %v5951_v58 }
 0xa1c   : > { %6669 = vmatmul.mubr.msk.bf16.gmra.mxu0 %vm5995_vm8, %v5955_v28 }
 0xac7   : > { %v6039_v2 = vpop.f32.mrf.mxu0 }
 0xac8   : > { %v6040_v15 = vadd.f32 %v6371_v61, %v6039_v2 }
 0xac9   : > { %v6662_v48 = vpop.f32.mrf.mxu0 }
 0xaca   : > { %v6062_v56 = vadd.f32 %v6040_v15, %v8744_v21 }
 0xacb   : > { %v6042_v46 = vpop.f32.mrf.mxu0 }
 0xacc   : > { %6068 = vst.msk [vmem:[#allocation2] sm:$0xff] %vm677_vm1, %v6062_v56  ;;  %v6043_v1 = vadd.f32 %v6371_v61, %v6042_v46 }
 0xacd   : > { %v6663_v4 = vpop.f32.mrf.mxu0 }
 0xace   : > { %v6063_v29 = vadd.f32 %v6043_v1, %v8748_v40 }
 0xad0   : > { %6069 = vst.msk [vmem:[#allocation2 + $0x8] sm:$0xff] %vm677_vm1, %v6063_v29  ;;  %v6047_v45 = vpop.f32.mrf.mxu0 }
 0xad1   : > { %v6048_v50 = vadd.f32 %v6371_v61, %v6047_v45 }
 0xad2   : > { %v6666_v22 = vpop.f32.mrf.mxu0 }
 0xad3   : > { %v6064_v43 = vadd.f32 %v6048_v50, %v8752_v5 }
 0xad4   : > { %v6050_v11 = vpop.f32.mrf.mxu0 }
 0xad5   : > { %6070 = vst.msk [vmem:[#allocation2 + $0x10] sm:$0xff] %vm677_vm1, %v6064_v43  ;;  %v6051_v59 = vadd.f32 %v6371_v61, %v6050_v11 }
 0xad6   : > { %v6667_v10 = vpop.f32.mrf.mxu0 }
 0xad7   : > { %v6065_v21 = vadd.f32 %v6051_v59, %v8756_v30 }
 0xad9   : > { %6071 = vst.msk [vmem:[#allocation2 + $0x18] sm:$0xff] %vm677_vm1, %v6065_v21 }
 0xadc   : > { %v6055_v33 = vpop.f32.mrf.mxu0 }
 0xadd   : > { %v6056_v19 = vadd.f32 %v6371_v61, %v6055_v33 }
 0xade   : > { %v6670_v25 = vpop.f32.mrf.mxu0 }
 0xadf   : > { %v6066_v40 = vadd.f32 %v6056_v19, %v8760_v63 }
 0xae0   : > { %v6058_v62 = vpop.f32.mrf.mxu0 }
 0xae1   : > { %6072 = vst.msk [vmem:[#allocation2 + $0x20] sm:$0xff] %vm677_vm1, %v6066_v40  ;;  %v6059_v55 = vadd.f32 %v6371_v61, %v6058_v62  ;;  %6077 = sbr.rel (%p6379_p6) target bundleno = 2791 (0xae7), region = 80 }
 0xae2   : > { %v6671_v39 = vpop.f32.mrf.mxu0 }
 0xae3   : > { %v6067_v5 = vadd.f32 %v6059_v55, %v8764_v6 }
 0xae5   : > { %6073 = vst.msk [vmem:[#allocation2 + $0x28] sm:$0xff] %vm677_vm1, %v6067_v5 }
 0xae6   : > { %6078 = vst.msk [vmem:[%s8972_s30] sm:$0xff] %vm677_vm1, %v6062_v56  ;;  %6079 = vst.msk [vmem:[%s8972_s30 + $0x8] sm:$0xff] %vm677_vm1, %v6065_v21 }
 0xae7 PF: > { %s8973_s24 = sld [smem:[#allocation4_spill]] }
 0xae8   : > { %s8974_s25 = sld [smem:[#allocation3_spill]] }
 0xae9   : > { %s8975_s26 = sld [smem:[#allocation5_spill]] }
 0xaed   : > { %s23_s27 = sadd.s32 1, %s8973_s24  }
 0xaee   : > { %p20_p7 = scmp.ge.s32.totalorder %s23_s27, 4  }
 0xaf0   :  { %22 = sbr.rel (!%p20_p7) target bundleno = 4 (0x4), region = 146 }

</bundles_post_ra>
